<compile_context>
chip_gen: v7x
topology: tpu7x:2x2x1
jax: 0.10.0
libtpu: 0.0.40
codegen_flags: <defaults>
</compile_context>

<pallas_src>
import functools
import math
import numpy as np
import jax
import jax.numpy as jnp
from jax import lax
from jax.experimental import pallas as pl
from jax.experimental.pallas import tpu as pltpu


# ----------------------------- Pallas kernel ------------------------------ #

def heat1d_kernel(xpad_ref,                         # (bb*C, L+2) f32, rows = (b, c) b-major
                  w0_ref, w1_ref, w2_ref, cb_ref,   # (C, 1) f32 depthwise conv taps / bias
                  wx_ref, bx_ref,                   # (H, C) bf16, (H, 1) f32   x in-projection
                  wz_ref, bz_ref,                   # (H, C) bf16, (H, 1) f32   z (gate) in-projection
                  cos_t_ref, cos_ref,               # (L, L) bf16: cos^T (fwd DCT rhs), cos (inv DCT rhs)
                  decay_t_ref,                      # (bb*H, L) f32  decay^T tiled to the batch block
                  gamma_ref, beta_ref,              # (H, 1) f32  LayerNorm affine
                  wout_ref, bout_ref,               # (H, H) bf16, (H, 1) f32  out projection
                  o_ref,                            # (bb*H, L) f32, rows = (b, h) b-major
                  *, bb, C, H, L):
    f32, bf16 = jnp.float32, jnp.bfloat16

    # Hoist all small constant loads out of the per-batch loops (no re-broadcast).
    w0, w1, w2, cb = w0_ref[...], w1_ref[...], w2_ref[...], cb_ref[...]
    wx, bx = wx_ref[...], bx_ref[...]
    wz, bz = wz_ref[...], bz_ref[...]
    gamma, beta = gamma_ref[...], beta_ref[...]
    wout, bout = wout_ref[...], bout_ref[...]

    xp = xpad_ref[...]                                           # (bb*C, L+2) f32

    # ---- depthwise conv (k=3, pad=1) + dual in-projection, per batch ----
    # The 3 conv taps are lane-shifted static slices; the in-projection
    # contracts C per batch with two aligned (H, C) @ (C, L) dots (N = L lanes).
    x1_parts, z_parts = [], []
    for b in range(bb):
        xpb = xp[b * C:(b + 1) * C, :]                           # (C, L+2)
        xdw = (xpb[:, 0:L] * w0 + xpb[:, 1:L + 1] * w1
               + xpb[:, 2:L + 2] * w2 + cb)                      # (C, L) f32
        xdw16 = xdw.astype(bf16)
        x1_parts.append(jnp.dot(wx, xdw16, preferred_element_type=f32) + bx)   # (H, L) f32
        z_parts.append(jnp.dot(wz, xdw16, preferred_element_type=f32) + bz)    # (H, L) f32
    x1 = jnp.concatenate(x1_parts, axis=0)                       # (bb*H, L) f32

    # ---- spectral section: batch folded into MXU rows, L in lanes ----
    #   x2^T = x1^T @ cos^T   (forward DCT along L)
    #   x3^T = x2^T * decay^T (batch-invariant frequency decay)
    #   x4^T = x3^T @ cos     (inverse DCT)
    x2 = jnp.dot(x1.astype(bf16), cos_t_ref[...], preferred_element_type=f32)  # (bb*H, L) f32
    x3 = x2 * decay_t_ref[...]                                                 # f32
    # TODO(synk): at production L consider keeping x3 in f32 for the inverse DCT
    # (avoids a second bf16 quantization of the spectrum) if the MXU budget allows.
    x4 = jnp.dot(x3.astype(bf16), cos_ref[...], preferred_element_type=f32)    # (bb*H, L) f32

    # ---- LayerNorm over H + SiLU gate + out-projection, per batch ----
    out_parts = []
    for b in range(bb):
        x4b = x4[b * H:(b + 1) * H, :]                           # (H, L) f32
        mean = jnp.mean(x4b, axis=0, keepdims=True)              # (1, L)
        xc = x4b - mean
        var = jnp.mean(xc * xc, axis=0, keepdims=True)
        x5b = xc * lax.rsqrt(var + 1e-5) * gamma + beta          # (H, L)
        zb = z_parts[b]
        sig = pl.reciprocal(1.0 + jnp.exp(-zb), approx=True)     # EUP, off the VPU divide path
        x6b = x5b * (zb * sig)                                   # x5 * SiLU(z)
        out_parts.append(jnp.dot(wout, x6b.astype(bf16),
                                 preferred_element_type=f32) + bout)           # (H, L) f32
    o_ref[...] = jnp.concatenate(out_parts, axis=0)              # (bb*H, L) f32


# ----------------------------- host-side glue ------------------------------ #

def get_cos_map(L):
    x = (jnp.arange(L, dtype=jnp.float32) + 0.5) / L
    n = jnp.arange(L, dtype=jnp.float32)[:, None]
    cosm = jnp.cos(n * x[None, :] * math.pi) * math.sqrt(2.0 / L)
    cosm = cosm.at[0, :].divide(math.sqrt(2.0))
    return cosm                                                  # (L, L)


def compute_decay(freq_embed, params, L):
    # weight_exp[:, None] ** relu(freq @ Wk^T + bk) -- batch invariant -> hoisted.
    w = jnp.linspace(0.0, math.pi, L + 1, dtype=jnp.float32)[:L]
    weight_exp = jnp.exp(-(w ** 2))                              # (L,) > 0
    k = jnp.maximum(freq_embed @ params['wk'].T + params['bk'], 0.0)   # (L, H)
    return jnp.power(weight_exp[:, None], k)                     # (L, H)


def _pick_batch_block(B, C, H):
    # bb must divide B; bb*C and bb*H must be 8-row aligned unless bb == B
    # (full-array blocks are always legal).  Prefer >= 2 grid blocks (DMA
    # pipelining + v7x dual-TensorCore via "parallel") while keeping
    # bb*H >= 256 MXU rows per block when possible.
    divisors = [d for d in range(1, B + 1) if B % d == 0]
    ok = [d for d in divisors if d < B and (d * C) % 8 == 0 and (d * H) % 8 == 0]
    big = [d for d in ok if d * H >= 256]
    if big:
        return min(big)
    if ok:
        return max(ok)
    return B


def _vmem_budget_bytes(bb, C, H, L):
    f32, b16 = 4, 2
    const_bytes = (2 * L * L * b16                     # cos, cos^T
                   + bb * H * L * f32                  # tiled decay^T
                   + (2 * H * C + H * H) * b16         # Wx, Wz, Wout
                   + (4 * C + 6 * H) * f32)            # conv taps/bias, biases, gamma/beta
    block_io = (bb * C * (L + 2) + bb * H * L) * f32   # activation in / out block
    interm = (6 * bb * H * L + 2 * bb * C * L) * f32   # x1/z/x2/x3/x4/x6 + conv temporaries
    est = 2 * const_bytes + 2 * block_io + interm      # x2: double-buffering headroom
    est = (est * 3) // 2                               # compiler temporaries / slack
    return int(min(max(est, 32 * 1024 * 1024), 64 * 1024 * 1024))


def heat1d_forward(x, freq_embed, params):
    B, C, L = x.shape
    H = params['wout'].shape[0]
    assert C == H, "depthwise conv assumes dim == hidden_dim"

    bb = _pick_batch_block(B, C, H)
    assert B % bb == 0
    grid = (B // bb,)
    bf16 = jnp.bfloat16

    # channels-first rows (b, c), L (zero-padded for the k=3 conv) in lanes
    xpad = jnp.pad(x, ((0, 0), (0, 0), (1, 1))).reshape(B * C, L + 2)   # (B*C, L+2) f32

    cos = get_cos_map(L)                                         # (L, L) f32
    decay_t = compute_decay(freq_embed, params, L).T             # (H, L) f32, hoisted
    decay_t_tiled = jnp.tile(decay_t, (bb, 1))                   # (bb*H, L) = one block

    operands = (
        xpad,
        params['w0'], params['w1'], params['w2'], params['convb'],
        params['wx'].astype(bf16), params['bx'],
        params['wz'].astype(bf16), params['bz'],
        cos.T.astype(bf16), cos.astype(bf16),
        decay_t_tiled,
        params['gamma'], params['beta'],
        params['wout'].astype(bf16), params['bout'],
    )

    def const_spec(shape):
        return pl.BlockSpec(shape, lambda i: (0, 0))             # resident constants

    in_specs = [
        pl.BlockSpec((bb * C, L + 2), lambda i: (i, 0)),         # pipelined activation block
        const_spec((C, 1)), const_spec((C, 1)), const_spec((C, 1)), const_spec((C, 1)),
        const_spec((H, C)), const_spec((H, 1)),
        const_spec((H, C)), const_spec((H, 1)),
        const_spec((L, L)), const_spec((L, L)),
        const_spec((bb * H, L)),
        const_spec((H, 1)), const_spec((H, 1)),
        const_spec((H, H)), const_spec((H, 1)),
    ]
    out_specs = pl.BlockSpec((bb * H, L), lambda i: (i, 0))

    kernel = functools.partial(heat1d_kernel, bb=bb, C=C, H=H, L=L)

    flops = (2 * 3 * B * L * C                # depthwise conv MACs
             + 2 * B * L * C * (2 * H)        # x / z in-projections
             + 2 * 2 * B * L * L * H          # DCT + inverse DCT (dominant)
             + 2 * B * L * H * H)             # out projection
    bytes_accessed = sum(int(a.size) * a.dtype.itemsize for a in operands) + B * H * L * 4
    cost = pl.CostEstimate(flops=flops, transcendentals=B * L * H,
                           bytes_accessed=bytes_accessed)

    out2d = pl.pallas_call(
        kernel,
        out_shape=jax.ShapeDtypeStruct((B * H, L), jnp.float32),
        grid=grid,
        in_specs=in_specs,
        out_specs=out_specs,
        cost_estimate=cost,
        compiler_params=pltpu.CompilerParams(
            dimension_semantics=("parallel",),                   # v7x: shard blocks over both TCs
            vmem_limit_bytes=_vmem_budget_bytes(bb, C, H, L)),
    )(*operands)

    # rows are (b, h) b-major -> (B, H, L), matching the PyTorch output layout
    return out2d.reshape(B, H, L)


# ----------------------------- parameters ---------------------------------- #

def init_params(key, H):
    keys = jax.random.split(key, 8)

    def u(k, shape, fan_in):
        s = 1.0 / math.sqrt(fan_in)
        return jax.random.uniform(k, shape, jnp.float32, -s, s)

    conv_w = u(keys[0], (H, 1, 3), 3)          # Conv1d(H, H, 3, groups=H).weight
    conv_b = u(keys[1], (H,), 3)
    lin_w = u(keys[2], (2 * H, H), H)          # Linear(H, 2H).weight  (out, in)
    lin_b = u(keys[3], (2 * H,), H)
    out_w = u(keys[4], (H, H), H)              # out_linear.weight
    out_b = u(keys[5], (H,), H)
    k_w = u(keys[6], (H, H), H)                # to_k[0].weight
    k_b = u(keys[7], (H,), H)

    return dict(
        w0=conv_w[:, 0, 0].reshape(H, 1), w1=conv_w[:, 0, 1].reshape(H, 1),
        w2=conv_w[:, 0, 2].reshape(H, 1), convb=conv_b.reshape(H, 1),
        wx=lin_w[:H, :], bx=lin_b[:H].reshape(H, 1),      # x chunk of Linear(H, 2H)
        wz=lin_w[H:, :], bz=lin_b[H:].reshape(H, 1),      # z chunk
        wk=k_w, bk=k_b,
        gamma=jnp.ones((H, 1), jnp.float32), beta=jnp.zeros((H, 1), jnp.float32),
        wout=out_w, bout=out_b.reshape(H, 1),
    )


# ----------------------------- pure-JAX reference -------------------------- #

def heat1d_reference(x, freq_embed, params, mxu_dtype=jnp.float32):
    """Module math in (B, L, H); `mxu_dtype=bf16` mirrors the kernel's MXU-input policy."""
    B, C, L = x.shape
    H = params['wout'].shape[0]
    md = lambda a: a.astype(mxu_dtype)
    cos = get_cos_map(L)

    xt = jnp.transpose(x, (0, 2, 1))                                   # (B, L, C)
    xp = jnp.pad(xt, ((0, 0), (1, 1), (0, 0)))
    xdw = (xp[:, :L, :] * params['w0'][:, 0] + xp[:, 1:L + 1, :] * params['w1'][:, 0]
           + xp[:, 2:, :] * params['w2'][:, 0] + params['convb'][:, 0])

    x1 = jnp.einsum('blc,hc->blh', md(xdw), md(params['wx']),
                    preferred_element_type=jnp.float32) + params['bx'][:, 0]
    z = jnp.einsum('blc,hc->blh', md(xdw), md(params['wz']),
                   preferred_element_type=jnp.float32) + params['bz'][:, 0]

    x2 = jnp.einsum('nl,blh->bnh', md(cos), md(x1), preferred_element_type=jnp.float32)
    x3 = x2 * compute_decay(freq_embed, params, L)
    x4 = jnp.einsum('nl,bnh->blh', md(cos), md(x3), preferred_element_type=jnp.float32)

    mean = jnp.mean(x4, -1, keepdims=True)
    var = jnp.mean((x4 - mean) ** 2, -1, keepdims=True)
    x5 = (x4 - mean) * jax.lax.rsqrt(var + 1e-5) * params['gamma'][:, 0] + params['beta'][:, 0]
    x6 = x5 * (z * (1.0 / (1.0 + jnp.exp(-z))))
    out = jnp.einsum('blh,gh->blg', md(x6), md(params['wout']),
                     preferred_element_type=jnp.float32) + params['bout'][:, 0]
    return jnp.transpose(out, (0, 2, 1))                               # (B, H, L)


# ----------------------------------- main ---------------------------------- #

if __name__ == "__main__":
    # B=16 so the batch-block heuristic yields bb=8 -> grid=(2,): two pipelined,
    # "parallel" blocks, each folding 8 batches into 256 MXU rows for the DCTs.
    B, H, L = 16, 32, 16
    key = jax.random.PRNGKey(0)
    kx, kf, kp = jax.random.split(key, 3)

    x = jax.random.normal(kx, (B, H, L), jnp.float32)          # (B, C, L) like PyTorch
    freq_embed = jax.random.normal(kf, (L, H), jnp.float32)    # per-position freq embedding
    params = init_params(kp, H)

    out = jax.block_until_ready(heat1d_forward(x, freq_embed, params))
    assert out.shape == (B, H, L)

    # Check vs a reference mirroring the kernel's precision policy (bf16 MXU inputs,
    # f32 accumulation / elementwise).  Tolerance absorbs the EUP approx-reciprocal
    # used for the sigmoid and f32 accumulation-order differences.
    ref_bf16 = heat1d_reference(x, freq_embed, params, mxu_dtype=jnp.bfloat16)
    np.testing.assert_allclose(np.asarray(out), np.asarray(ref_bf16), rtol=5e-3, atol=5e-3)

    # Loose sanity bound vs the full-f32 reference (bounds bf16 MXU-input drift).
    ref_f32 = heat1d_reference(x, freq_embed, params, mxu_dtype=jnp.float32)
    np.testing.assert_allclose(np.asarray(out), np.asarray(ref_f32), rtol=1e-1, atol=1e-1)

    print("KERNEL_OK")
</pallas_src>

<mosaic_0001>
module attributes {stable_mosaic.version = 11 : i64} {
  func.func @heat1d_kernel(%arg0: i32, %arg1: memref<256x18xf32, #tpu.memory_space<vmem>>, %arg2: memref<32x1xf32, #tpu.memory_space<vmem>>, %arg3: memref<32x1xf32, #tpu.memory_space<vmem>>, %arg4: memref<32x1xf32, #tpu.memory_space<vmem>>, %arg5: memref<32x1xf32, #tpu.memory_space<vmem>>, %arg6: memref<32x32xbf16, #tpu.memory_space<vmem>>, %arg7: memref<32x1xf32, #tpu.memory_space<vmem>>, %arg8: memref<32x32xbf16, #tpu.memory_space<vmem>>, %arg9: memref<32x1xf32, #tpu.memory_space<vmem>>, %arg10: memref<16x16xbf16, #tpu.memory_space<vmem>>, %arg11: memref<16x16xbf16, #tpu.memory_space<vmem>>, %arg12: memref<256x16xf32, #tpu.memory_space<vmem>>, %arg13: memref<32x1xf32, #tpu.memory_space<vmem>>, %arg14: memref<32x1xf32, #tpu.memory_space<vmem>>, %arg15: memref<32x32xbf16, #tpu.memory_space<vmem>>, %arg16: memref<32x1xf32, #tpu.memory_space<vmem>>, %arg17: memref<256x16xf32, #tpu.memory_space<vmem>>) attributes {dimension_semantics = [#tpu.dimension_semantics<parallel>], iteration_bounds = array<i64: 2>, scalar_prefetch = 0 : i64, scratch_operands = 0 : i64, tpu.core_type = #tpu.core_type<tc>, window_params = [{transform_indices = @transform_0, window_bounds = array<i64: 256, 18>}, {pipeline_mode = #tpu.pipeline_mode<synchronous>, transform_indices = @transform_1, window_bounds = array<i64: 32, 1>}, {pipeline_mode = #tpu.pipeline_mode<synchronous>, transform_indices = @transform_2, window_bounds = array<i64: 32, 1>}, {pipeline_mode = #tpu.pipeline_mode<synchronous>, transform_indices = @transform_3, window_bounds = array<i64: 32, 1>}, {pipeline_mode = #tpu.pipeline_mode<synchronous>, transform_indices = @transform_4, window_bounds = array<i64: 32, 1>}, {pipeline_mode = #tpu.pipeline_mode<synchronous>, transform_indices = @transform_5, window_bounds = array<i64: 32, 32>}, {pipeline_mode = #tpu.pipeline_mode<synchronous>, transform_indices = @transform_6, window_bounds = array<i64: 32, 1>}, {pipeline_mode = #tpu.pipeline_mode<synchronous>, transform_indices = @transform_7, window_bounds = array<i64: 32, 32>}, {pipeline_mode = #tpu.pipeline_mode<synchronous>, transform_indices = @transform_8, window_bounds = array<i64: 32, 1>}, {pipeline_mode = #tpu.pipeline_mode<synchronous>, transform_indices = @transform_9, window_bounds = array<i64: 16, 16>}, {pipeline_mode = #tpu.pipeline_mode<synchronous>, transform_indices = @transform_10, window_bounds = array<i64: 16, 16>}, {pipeline_mode = #tpu.pipeline_mode<synchronous>, transform_indices = @transform_11, window_bounds = array<i64: 256, 16>}, {pipeline_mode = #tpu.pipeline_mode<synchronous>, transform_indices = @transform_12, window_bounds = array<i64: 32, 1>}, {pipeline_mode = #tpu.pipeline_mode<synchronous>, transform_indices = @transform_13, window_bounds = array<i64: 32, 1>}, {pipeline_mode = #tpu.pipeline_mode<synchronous>, transform_indices = @transform_14, window_bounds = array<i64: 32, 32>}, {pipeline_mode = #tpu.pipeline_mode<synchronous>, transform_indices = @transform_15, window_bounds = array<i64: 32, 1>}, {transform_indices = @transform_16, window_bounds = array<i64: 256, 16>}]} {
    %c0 = arith.constant 0 : index
    %c0_0 = arith.constant 0 : index
    %0 = vector.load %arg2[%c0, %c0_0] : memref<32x1xf32, #tpu.memory_space<vmem>>, vector<32x1xf32>
    %c0_1 = arith.constant 0 : index
    %c0_2 = arith.constant 0 : index
    %1 = vector.load %arg3[%c0_1, %c0_2] : memref<32x1xf32, #tpu.memory_space<vmem>>, vector<32x1xf32>
    %c0_3 = arith.constant 0 : index
    %c0_4 = arith.constant 0 : index
    %2 = vector.load %arg4[%c0_3, %c0_4] : memref<32x1xf32, #tpu.memory_space<vmem>>, vector<32x1xf32>
    %c0_5 = arith.constant 0 : index
    %c0_6 = arith.constant 0 : index
    %3 = vector.load %arg5[%c0_5, %c0_6] : memref<32x1xf32, #tpu.memory_space<vmem>>, vector<32x1xf32>
    %c0_7 = arith.constant 0 : index
    %c0_8 = arith.constant 0 : index
    %4 = vector.load %arg6[%c0_7, %c0_8] : memref<32x32xbf16, #tpu.memory_space<vmem>>, vector<32x32xbf16>
    %c0_9 = arith.constant 0 : index
    %c0_10 = arith.constant 0 : index
    %5 = vector.load %arg7[%c0_9, %c0_10] : memref<32x1xf32, #tpu.memory_space<vmem>>, vector<32x1xf32>
    %c0_11 = arith.constant 0 : index
    %c0_12 = arith.constant 0 : index
    %6 = vector.load %arg8[%c0_11, %c0_12] : memref<32x32xbf16, #tpu.memory_space<vmem>>, vector<32x32xbf16>
    %c0_13 = arith.constant 0 : index
    %c0_14 = arith.constant 0 : index
    %7 = vector.load %arg9[%c0_13, %c0_14] : memref<32x1xf32, #tpu.memory_space<vmem>>, vector<32x1xf32>
    %c0_15 = arith.constant 0 : index
    %c0_16 = arith.constant 0 : index
    %8 = vector.load %arg13[%c0_15, %c0_16] : memref<32x1xf32, #tpu.memory_space<vmem>>, vector<32x1xf32>
    %c0_17 = arith.constant 0 : index
    %c0_18 = arith.constant 0 : index
    %9 = vector.load %arg14[%c0_17, %c0_18] : memref<32x1xf32, #tpu.memory_space<vmem>>, vector<32x1xf32>
    %c0_19 = arith.constant 0 : index
    %c0_20 = arith.constant 0 : index
    %10 = vector.load %arg15[%c0_19, %c0_20] : memref<32x32xbf16, #tpu.memory_space<vmem>>, vector<32x32xbf16>
    %c0_21 = arith.constant 0 : index
    %c0_22 = arith.constant 0 : index
    %11 = vector.load %arg16[%c0_21, %c0_22] : memref<32x1xf32, #tpu.memory_space<vmem>>, vector<32x1xf32>
    %c0_23 = arith.constant 0 : index
    %c0_24 = arith.constant 0 : index
    %12 = vector.load %arg1[%c0_23, %c0_24] : memref<256x18xf32, #tpu.memory_space<vmem>>, vector<256x18xf32>
    %13 = vector.extract_strided_slice %12 {offsets = [0, 0], sizes = [32, 18], strides = [1, 1]} : vector<256x18xf32> to vector<32x18xf32>
    %14 = vector.extract_strided_slice %13 {offsets = [0, 0], sizes = [32, 16], strides = [1, 1]} : vector<32x18xf32> to vector<32x16xf32>
    %15 = vector.broadcast %0 : vector<32x1xf32> to vector<32x16xf32>
    %16 = arith.mulf %14, %15 : vector<32x16xf32>
    %17 = vector.extract_strided_slice %13 {offsets = [0, 1], sizes = [32, 16], strides = [1, 1]} : vector<32x18xf32> to vector<32x16xf32>
    %18 = vector.broadcast %1 : vector<32x1xf32> to vector<32x16xf32>
    %19 = arith.mulf %17, %18 : vector<32x16xf32>
    %20 = arith.addf %16, %19 : vector<32x16xf32>
    %21 = vector.extract_strided_slice %13 {offsets = [0, 2], sizes = [32, 16], strides = [1, 1]} : vector<32x18xf32> to vector<32x16xf32>
    %22 = vector.broadcast %2 : vector<32x1xf32> to vector<32x16xf32>
    %23 = arith.mulf %21, %22 : vector<32x16xf32>
    %24 = arith.addf %20, %23 : vector<32x16xf32>
    %25 = vector.broadcast %3 : vector<32x1xf32> to vector<32x16xf32>
    %26 = arith.addf %24, %25 : vector<32x16xf32>
    %27 = arith.truncf %26 : vector<32x16xf32> to vector<32x16xbf16>
    %cst = arith.constant dense<0.000000e+00> : vector<32x16xf32>
    %28 = tpu.matmul %4, %27, %cst {dimension_numbers = #tpu.dot_dimension_numbers<[1], [0], [0], [1], [0, 0, 1, 1], [], []>} : vector<32x32xbf16>, vector<32x16xbf16>, vector<32x16xf32> -> vector<32x16xf32>
    %29 = vector.broadcast %5 : vector<32x1xf32> to vector<32x16xf32>
    %30 = arith.addf %28, %29 : vector<32x16xf32>
    %cst_25 = arith.constant dense<0.000000e+00> : vector<32x16xf32>
    %31 = tpu.matmul %6, %27, %cst_25 {dimension_numbers = #tpu.dot_dimension_numbers<[1], [0], [0], [1], [0, 0, 1, 1], [], []>} : vector<32x32xbf16>, vector<32x16xbf16>, vector<32x16xf32> -> vector<32x16xf32>
    %32 = vector.broadcast %7 : vector<32x1xf32> to vector<32x16xf32>
    %33 = arith.addf %31, %32 : vector<32x16xf32>
    %34 = vector.extract_strided_slice %12 {offsets = [32, 0], sizes = [32, 18], strides = [1, 1]} : vector<256x18xf32> to vector<32x18xf32>
    %35 = vector.extract_strided_slice %34 {offsets = [0, 0], sizes = [32, 16], strides = [1, 1]} : vector<32x18xf32> to vector<32x16xf32>
    %36 = vector.broadcast %0 : vector<32x1xf32> to vector<32x16xf32>
    %37 = arith.mulf %35, %36 : vector<32x16xf32>
    %38 = vector.extract_strided_slice %34 {offsets = [0, 1], sizes = [32, 16], strides = [1, 1]} : vector<32x18xf32> to vector<32x16xf32>
    %39 = vector.broadcast %1 : vector<32x1xf32> to vector<32x16xf32>
    %40 = arith.mulf %38, %39 : vector<32x16xf32>
    %41 = arith.addf %37, %40 : vector<32x16xf32>
    %42 = vector.extract_strided_slice %34 {offsets = [0, 2], sizes = [32, 16], strides = [1, 1]} : vector<32x18xf32> to vector<32x16xf32>
    %43 = vector.broadcast %2 : vector<32x1xf32> to vector<32x16xf32>
    %44 = arith.mulf %42, %43 : vector<32x16xf32>
    %45 = arith.addf %41, %44 : vector<32x16xf32>
    %46 = vector.broadcast %3 : vector<32x1xf32> to vector<32x16xf32>
    %47 = arith.addf %45, %46 : vector<32x16xf32>
    %48 = arith.truncf %47 : vector<32x16xf32> to vector<32x16xbf16>
    %cst_26 = arith.constant dense<0.000000e+00> : vector<32x16xf32>
    %49 = tpu.matmul %4, %48, %cst_26 {dimension_numbers = #tpu.dot_dimension_numbers<[1], [0], [0], [1], [0, 0, 1, 1], [], []>} : vector<32x32xbf16>, vector<32x16xbf16>, vector<32x16xf32> -> vector<32x16xf32>
    %50 = vector.broadcast %5 : vector<32x1xf32> to vector<32x16xf32>
    %51 = arith.addf %49, %50 : vector<32x16xf32>
    %cst_27 = arith.constant dense<0.000000e+00> : vector<32x16xf32>
    %52 = tpu.matmul %6, %48, %cst_27 {dimension_numbers = #tpu.dot_dimension_numbers<[1], [0], [0], [1], [0, 0, 1, 1], [], []>} : vector<32x32xbf16>, vector<32x16xbf16>, vector<32x16xf32> -> vector<32x16xf32>
    %53 = vector.broadcast %7 : vector<32x1xf32> to vector<32x16xf32>
    %54 = arith.addf %52, %53 : vector<32x16xf32>
    %55 = vector.extract_strided_slice %12 {offsets = [64, 0], sizes = [32, 18], strides = [1, 1]} : vector<256x18xf32> to vector<32x18xf32>
    %56 = vector.extract_strided_slice %55 {offsets = [0, 0], sizes = [32, 16], strides = [1, 1]} : vector<32x18xf32> to vector<32x16xf32>
    %57 = vector.broadcast %0 : vector<32x1xf32> to vector<32x16xf32>
    %58 = arith.mulf %56, %57 : vector<32x16xf32>
    %59 = vector.extract_strided_slice %55 {offsets = [0, 1], sizes = [32, 16], strides = [1, 1]} : vector<32x18xf32> to vector<32x16xf32>
    %60 = vector.broadcast %1 : vector<32x1xf32> to vector<32x16xf32>
    %61 = arith.mulf %59, %60 : vector<32x16xf32>
    %62 = arith.addf %58, %61 : vector<32x16xf32>
    %63 = vector.extract_strided_slice %55 {offsets = [0, 2], sizes = [32, 16], strides = [1, 1]} : vector<32x18xf32> to vector<32x16xf32>
    %64 = vector.broadcast %2 : vector<32x1xf32> to vector<32x16xf32>
    %65 = arith.mulf %63, %64 : vector<32x16xf32>
    %66 = arith.addf %62, %65 : vector<32x16xf32>
    %67 = vector.broadcast %3 : vector<32x1xf32> to vector<32x16xf32>
    %68 = arith.addf %66, %67 : vector<32x16xf32>
    %69 = arith.truncf %68 : vector<32x16xf32> to vector<32x16xbf16>
    %cst_28 = arith.constant dense<0.000000e+00> : vector<32x16xf32>
    %70 = tpu.matmul %4, %69, %cst_28 {dimension_numbers = #tpu.dot_dimension_numbers<[1], [0], [0], [1], [0, 0, 1, 1], [], []>} : vector<32x32xbf16>, vector<32x16xbf16>, vector<32x16xf32> -> vector<32x16xf32>
    %71 = vector.broadcast %5 : vector<32x1xf32> to vector<32x16xf32>
    %72 = arith.addf %70, %71 : vector<32x16xf32>
    %cst_29 = arith.constant dense<0.000000e+00> : vector<32x16xf32>
    %73 = tpu.matmul %6, %69, %cst_29 {dimension_numbers = #tpu.dot_dimension_numbers<[1], [0], [0], [1], [0, 0, 1, 1], [], []>} : vector<32x32xbf16>, vector<32x16xbf16>, vector<32x16xf32> -> vector<32x16xf32>
    %74 = vector.broadcast %7 : vector<32x1xf32> to vector<32x16xf32>
    %75 = arith.addf %73, %74 : vector<32x16xf32>
    %76 = vector.extract_strided_slice %12 {offsets = [96, 0], sizes = [32, 18], strides = [1, 1]} : vector<256x18xf32> to vector<32x18xf32>
    %77 = vector.extract_strided_slice %76 {offsets = [0, 0], sizes = [32, 16], strides = [1, 1]} : vector<32x18xf32> to vector<32x16xf32>
    %78 = vector.broadcast %0 : vector<32x1xf32> to vector<32x16xf32>
    %79 = arith.mulf %77, %78 : vector<32x16xf32>
    %80 = vector.extract_strided_slice %76 {offsets = [0, 1], sizes = [32, 16], strides = [1, 1]} : vector<32x18xf32> to vector<32x16xf32>
    %81 = vector.broadcast %1 : vector<32x1xf32> to vector<32x16xf32>
    %82 = arith.mulf %80, %81 : vector<32x16xf32>
    %83 = arith.addf %79, %82 : vector<32x16xf32>
    %84 = vector.extract_strided_slice %76 {offsets = [0, 2], sizes = [32, 16], strides = [1, 1]} : vector<32x18xf32> to vector<32x16xf32>
    %85 = vector.broadcast %2 : vector<32x1xf32> to vector<32x16xf32>
    %86 = arith.mulf %84, %85 : vector<32x16xf32>
    %87 = arith.addf %83, %86 : vector<32x16xf32>
    %88 = vector.broadcast %3 : vector<32x1xf32> to vector<32x16xf32>
    %89 = arith.addf %87, %88 : vector<32x16xf32>
    %90 = arith.truncf %89 : vector<32x16xf32> to vector<32x16xbf16>
    %cst_30 = arith.constant dense<0.000000e+00> : vector<32x16xf32>
    %91 = tpu.matmul %4, %90, %cst_30 {dimension_numbers = #tpu.dot_dimension_numbers<[1], [0], [0], [1], [0, 0, 1, 1], [], []>} : vector<32x32xbf16>, vector<32x16xbf16>, vector<32x16xf32> -> vector<32x16xf32>
    %92 = vector.broadcast %5 : vector<32x1xf32> to vector<32x16xf32>
    %93 = arith.addf %91, %92 : vector<32x16xf32>
    %cst_31 = arith.constant dense<0.000000e+00> : vector<32x16xf32>
    %94 = tpu.matmul %6, %90, %cst_31 {dimension_numbers = #tpu.dot_dimension_numbers<[1], [0], [0], [1], [0, 0, 1, 1], [], []>} : vector<32x32xbf16>, vector<32x16xbf16>, vector<32x16xf32> -> vector<32x16xf32>
    %95 = vector.broadcast %7 : vector<32x1xf32> to vector<32x16xf32>
    %96 = arith.addf %94, %95 : vector<32x16xf32>
    %97 = vector.extract_strided_slice %12 {offsets = [128, 0], sizes = [32, 18], strides = [1, 1]} : vector<256x18xf32> to vector<32x18xf32>
    %98 = vector.extract_strided_slice %97 {offsets = [0, 0], sizes = [32, 16], strides = [1, 1]} : vector<32x18xf32> to vector<32x16xf32>
    %99 = vector.broadcast %0 : vector<32x1xf32> to vector<32x16xf32>
    %100 = arith.mulf %98, %99 : vector<32x16xf32>
    %101 = vector.extract_strided_slice %97 {offsets = [0, 1], sizes = [32, 16], strides = [1, 1]} : vector<32x18xf32> to vector<32x16xf32>
    %102 = vector.broadcast %1 : vector<32x1xf32> to vector<32x16xf32>
    %103 = arith.mulf %101, %102 : vector<32x16xf32>
    %104 = arith.addf %100, %103 : vector<32x16xf32>
    %105 = vector.extract_strided_slice %97 {offsets = [0, 2], sizes = [32, 16], strides = [1, 1]} : vector<32x18xf32> to vector<32x16xf32>
    %106 = vector.broadcast %2 : vector<32x1xf32> to vector<32x16xf32>
    %107 = arith.mulf %105, %106 : vector<32x16xf32>
    %108 = arith.addf %104, %107 : vector<32x16xf32>
    %109 = vector.broadcast %3 : vector<32x1xf32> to vector<32x16xf32>
    %110 = arith.addf %108, %109 : vector<32x16xf32>
    %111 = arith.truncf %110 : vector<32x16xf32> to vector<32x16xbf16>
    %cst_32 = arith.constant dense<0.000000e+00> : vector<32x16xf32>
    %112 = tpu.matmul %4, %111, %cst_32 {dimension_numbers = #tpu.dot_dimension_numbers<[1], [0], [0], [1], [0, 0, 1, 1], [], []>} : vector<32x32xbf16>, vector<32x16xbf16>, vector<32x16xf32> -> vector<32x16xf32>
    %113 = vector.broadcast %5 : vector<32x1xf32> to vector<32x16xf32>
    %114 = arith.addf %112, %113 : vector<32x16xf32>
    %cst_33 = arith.constant dense<0.000000e+00> : vector<32x16xf32>
    %115 = tpu.matmul %6, %111, %cst_33 {dimension_numbers = #tpu.dot_dimension_numbers<[1], [0], [0], [1], [0, 0, 1, 1], [], []>} : vector<32x32xbf16>, vector<32x16xbf16>, vector<32x16xf32> -> vector<32x16xf32>
    %116 = vector.broadcast %7 : vector<32x1xf32> to vector<32x16xf32>
    %117 = arith.addf %115, %116 : vector<32x16xf32>
    %118 = vector.extract_strided_slice %12 {offsets = [160, 0], sizes = [32, 18], strides = [1, 1]} : vector<256x18xf32> to vector<32x18xf32>
    %119 = vector.extract_strided_slice %118 {offsets = [0, 0], sizes = [32, 16], strides = [1, 1]} : vector<32x18xf32> to vector<32x16xf32>
    %120 = vector.broadcast %0 : vector<32x1xf32> to vector<32x16xf32>
    %121 = arith.mulf %119, %120 : vector<32x16xf32>
    %122 = vector.extract_strided_slice %118 {offsets = [0, 1], sizes = [32, 16], strides = [1, 1]} : vector<32x18xf32> to vector<32x16xf32>
    %123 = vector.broadcast %1 : vector<32x1xf32> to vector<32x16xf32>
    %124 = arith.mulf %122, %123 : vector<32x16xf32>
    %125 = arith.addf %121, %124 : vector<32x16xf32>
    %126 = vector.extract_strided_slice %118 {offsets = [0, 2], sizes = [32, 16], strides = [1, 1]} : vector<32x18xf32> to vector<32x16xf32>
    %127 = vector.broadcast %2 : vector<32x1xf32> to vector<32x16xf32>
    %128 = arith.mulf %126, %127 : vector<32x16xf32>
    %129 = arith.addf %125, %128 : vector<32x16xf32>
    %130 = vector.broadcast %3 : vector<32x1xf32> to vector<32x16xf32>
    %131 = arith.addf %129, %130 : vector<32x16xf32>
    %132 = arith.truncf %131 : vector<32x16xf32> to vector<32x16xbf16>
    %cst_34 = arith.constant dense<0.000000e+00> : vector<32x16xf32>
    %133 = tpu.matmul %4, %132, %cst_34 {dimension_numbers = #tpu.dot_dimension_numbers<[1], [0], [0], [1], [0, 0, 1, 1], [], []>} : vector<32x32xbf16>, vector<32x16xbf16>, vector<32x16xf32> -> vector<32x16xf32>
    %134 = vector.broadcast %5 : vector<32x1xf32> to vector<32x16xf32>
    %135 = arith.addf %133, %134 : vector<32x16xf32>
    %cst_35 = arith.constant dense<0.000000e+00> : vector<32x16xf32>
    %136 = tpu.matmul %6, %132, %cst_35 {dimension_numbers = #tpu.dot_dimension_numbers<[1], [0], [0], [1], [0, 0, 1, 1], [], []>} : vector<32x32xbf16>, vector<32x16xbf16>, vector<32x16xf32> -> vector<32x16xf32>
    %137 = vector.broadcast %7 : vector<32x1xf32> to vector<32x16xf32>
    %138 = arith.addf %136, %137 : vector<32x16xf32>
    %139 = vector.extract_strided_slice %12 {offsets = [192, 0], sizes = [32, 18], strides = [1, 1]} : vector<256x18xf32> to vector<32x18xf32>
    %140 = vector.extract_strided_slice %139 {offsets = [0, 0], sizes = [32, 16], strides = [1, 1]} : vector<32x18xf32> to vector<32x16xf32>
    %141 = vector.broadcast %0 : vector<32x1xf32> to vector<32x16xf32>
    %142 = arith.mulf %140, %141 : vector<32x16xf32>
    %143 = vector.extract_strided_slice %139 {offsets = [0, 1], sizes = [32, 16], strides = [1, 1]} : vector<32x18xf32> to vector<32x16xf32>
    %144 = vector.broadcast %1 : vector<32x1xf32> to vector<32x16xf32>
    %145 = arith.mulf %143, %144 : vector<32x16xf32>
    %146 = arith.addf %142, %145 : vector<32x16xf32>
    %147 = vector.extract_strided_slice %139 {offsets = [0, 2], sizes = [32, 16], strides = [1, 1]} : vector<32x18xf32> to vector<32x16xf32>
    %148 = vector.broadcast %2 : vector<32x1xf32> to vector<32x16xf32>
    %149 = arith.mulf %147, %148 : vector<32x16xf32>
    %150 = arith.addf %146, %149 : vector<32x16xf32>
    %151 = vector.broadcast %3 : vector<32x1xf32> to vector<32x16xf32>
    %152 = arith.addf %150, %151 : vector<32x16xf32>
    %153 = arith.truncf %152 : vector<32x16xf32> to vector<32x16xbf16>
    %cst_36 = arith.constant dense<0.000000e+00> : vector<32x16xf32>
    %154 = tpu.matmul %4, %153, %cst_36 {dimension_numbers = #tpu.dot_dimension_numbers<[1], [0], [0], [1], [0, 0, 1, 1], [], []>} : vector<32x32xbf16>, vector<32x16xbf16>, vector<32x16xf32> -> vector<32x16xf32>
    %155 = vector.broadcast %5 : vector<32x1xf32> to vector<32x16xf32>
    %156 = arith.addf %154, %155 : vector<32x16xf32>
    %cst_37 = arith.constant dense<0.000000e+00> : vector<32x16xf32>
    %157 = tpu.matmul %6, %153, %cst_37 {dimension_numbers = #tpu.dot_dimension_numbers<[1], [0], [0], [1], [0, 0, 1, 1], [], []>} : vector<32x32xbf16>, vector<32x16xbf16>, vector<32x16xf32> -> vector<32x16xf32>
    %158 = vector.broadcast %7 : vector<32x1xf32> to vector<32x16xf32>
    %159 = arith.addf %157, %158 : vector<32x16xf32>
    %160 = vector.extract_strided_slice %12 {offsets = [224, 0], sizes = [32, 18], strides = [1, 1]} : vector<256x18xf32> to vector<32x18xf32>
    %161 = vector.extract_strided_slice %160 {offsets = [0, 0], sizes = [32, 16], strides = [1, 1]} : vector<32x18xf32> to vector<32x16xf32>
    %162 = vector.broadcast %0 : vector<32x1xf32> to vector<32x16xf32>
    %163 = arith.mulf %161, %162 : vector<32x16xf32>
    %164 = vector.extract_strided_slice %160 {offsets = [0, 1], sizes = [32, 16], strides = [1, 1]} : vector<32x18xf32> to vector<32x16xf32>
    %165 = vector.broadcast %1 : vector<32x1xf32> to vector<32x16xf32>
    %166 = arith.mulf %164, %165 : vector<32x16xf32>
    %167 = arith.addf %163, %166 : vector<32x16xf32>
    %168 = vector.extract_strided_slice %160 {offsets = [0, 2], sizes = [32, 16], strides = [1, 1]} : vector<32x18xf32> to vector<32x16xf32>
    %169 = vector.broadcast %2 : vector<32x1xf32> to vector<32x16xf32>
    %170 = arith.mulf %168, %169 : vector<32x16xf32>
    %171 = arith.addf %167, %170 : vector<32x16xf32>
    %172 = vector.broadcast %3 : vector<32x1xf32> to vector<32x16xf32>
    %173 = arith.addf %171, %172 : vector<32x16xf32>
    %174 = arith.truncf %173 : vector<32x16xf32> to vector<32x16xbf16>
    %cst_38 = arith.constant dense<0.000000e+00> : vector<32x16xf32>
    %175 = tpu.matmul %4, %174, %cst_38 {dimension_numbers = #tpu.dot_dimension_numbers<[1], [0], [0], [1], [0, 0, 1, 1], [], []>} : vector<32x32xbf16>, vector<32x16xbf16>, vector<32x16xf32> -> vector<32x16xf32>
    %176 = vector.broadcast %5 : vector<32x1xf32> to vector<32x16xf32>
    %177 = arith.addf %175, %176 : vector<32x16xf32>
    %cst_39 = arith.constant dense<0.000000e+00> : vector<32x16xf32>
    %178 = tpu.matmul %6, %174, %cst_39 {dimension_numbers = #tpu.dot_dimension_numbers<[1], [0], [0], [1], [0, 0, 1, 1], [], []>} : vector<32x32xbf16>, vector<32x16xbf16>, vector<32x16xf32> -> vector<32x16xf32>
    %179 = vector.broadcast %7 : vector<32x1xf32> to vector<32x16xf32>
    %180 = arith.addf %178, %179 : vector<32x16xf32>
    %181 = tpu.concatenate %30, %51, %72, %93, %114, %135, %156, %177 in 0 : vector<32x16xf32>, vector<32x16xf32>, vector<32x16xf32>, vector<32x16xf32>, vector<32x16xf32>, vector<32x16xf32>, vector<32x16xf32>, vector<32x16xf32> -> vector<256x16xf32>
    %182 = arith.truncf %181 : vector<256x16xf32> to vector<256x16xbf16>
    %c0_40 = arith.constant 0 : index
    %c0_41 = arith.constant 0 : index
    %183 = vector.load %arg10[%c0_40, %c0_41] : memref<16x16xbf16, #tpu.memory_space<vmem>>, vector<16x16xbf16>
    %cst_42 = arith.constant dense<0.000000e+00> : vector<256x16xf32>
    %184 = tpu.matmul %182, %183, %cst_42 {dimension_numbers = #tpu.dot_dimension_numbers<[1], [0], [0], [1], [0, 0, 1, 1], [], []>} : vector<256x16xbf16>, vector<16x16xbf16>, vector<256x16xf32> -> vector<256x16xf32>
    %c0_43 = arith.constant 0 : index
    %c0_44 = arith.constant 0 : index
    %185 = vector.load %arg12[%c0_43, %c0_44] : memref<256x16xf32, #tpu.memory_space<vmem>>, vector<256x16xf32>
    %186 = arith.mulf %184, %185 : vector<256x16xf32>
    %187 = arith.truncf %186 : vector<256x16xf32> to vector<256x16xbf16>
    %c0_45 = arith.constant 0 : index
    %c0_46 = arith.constant 0 : index
    %188 = vector.load %arg11[%c0_45, %c0_46] : memref<16x16xbf16, #tpu.memory_space<vmem>>, vector<16x16xbf16>
    %cst_47 = arith.constant dense<0.000000e+00> : vector<256x16xf32>
    %189 = tpu.matmul %187, %188, %cst_47 {dimension_numbers = #tpu.dot_dimension_numbers<[1], [0], [0], [1], [0, 0, 1, 1], [], []>} : vector<256x16xbf16>, vector<16x16xbf16>, vector<256x16xf32> -> vector<256x16xf32>
    %190 = vector.extract_strided_slice %189 {offsets = [0, 0], sizes = [32, 16], strides = [1, 1]} : vector<256x16xf32> to vector<32x16xf32>
    %cst_48 = arith.constant dense<0.000000e+00> : vector<16xf32>
    %191 = vector.multi_reduction <add>, %190, %cst_48 [0] : vector<32x16xf32> to vector<16xf32>
    %192 = vector.shape_cast %191 : vector<16xf32> to vector<1x16xf32>
    %cst_49 = arith.constant 3.200000e+01 : f32
    %193 = vector.broadcast %cst_49 : f32 to vector<1x16xf32>
    %194 = arith.divf %192, %193 : vector<1x16xf32>
    %195 = vector.broadcast %194 : vector<1x16xf32> to vector<32x16xf32>
    %196 = arith.subf %190, %195 : vector<32x16xf32>
    %197 = arith.mulf %196, %196 : vector<32x16xf32>
    %cst_50 = arith.constant dense<0.000000e+00> : vector<16xf32>
    %198 = vector.multi_reduction <add>, %197, %cst_50 [0] : vector<32x16xf32> to vector<16xf32>
    %199 = vector.shape_cast %198 : vector<16xf32> to vector<1x16xf32>
    %cst_51 = arith.constant 3.200000e+01 : f32
    %200 = vector.broadcast %cst_51 : f32 to vector<1x16xf32>
    %201 = arith.divf %199, %200 : vector<1x16xf32>
    %cst_52 = arith.constant 9.99999974E-6 : f32
    %202 = vector.broadcast %cst_52 : f32 to vector<1x16xf32>
    %203 = arith.addf %201, %202 : vector<1x16xf32>
    %204 = math.rsqrt %203 : vector<1x16xf32>
    %205 = vector.broadcast %204 : vector<1x16xf32> to vector<32x16xf32>
    %206 = arith.mulf %196, %205 : vector<32x16xf32>
    %207 = vector.broadcast %8 : vector<32x1xf32> to vector<32x16xf32>
    %208 = arith.mulf %206, %207 : vector<32x16xf32>
    %209 = vector.broadcast %9 : vector<32x1xf32> to vector<32x16xf32>
    %210 = arith.addf %208, %209 : vector<32x16xf32>
    %cst_53 = arith.constant 0.000000e+00 : f32
    %211 = vector.broadcast %cst_53 : f32 to vector<32x16xf32>
    %212 = arith.subf %211, %33 : vector<32x16xf32>
    %213 = math.exp %212 : vector<32x16xf32>
    %cst_54 = arith.constant 1.000000e+00 : f32
    %214 = vector.broadcast %cst_54 : f32 to vector<32x16xf32>
    %215 = arith.addf %214, %213 : vector<32x16xf32>
    %216 = tpu.reciprocal %215 {approx = true} : vector<32x16xf32> -> vector<32x16xf32>
    %217 = arith.mulf %33, %216 : vector<32x16xf32>
    %218 = arith.mulf %210, %217 : vector<32x16xf32>
    %219 = arith.truncf %218 : vector<32x16xf32> to vector<32x16xbf16>
    %cst_55 = arith.constant dense<0.000000e+00> : vector<32x16xf32>
    %220 = tpu.matmul %10, %219, %cst_55 {dimension_numbers = #tpu.dot_dimension_numbers<[1], [0], [0], [1], [0, 0, 1, 1], [], []>} : vector<32x32xbf16>, vector<32x16xbf16>, vector<32x16xf32> -> vector<32x16xf32>
    %221 = vector.broadcast %11 : vector<32x1xf32> to vector<32x16xf32>
    %222 = arith.addf %220, %221 : vector<32x16xf32>
    %223 = vector.extract_strided_slice %189 {offsets = [32, 0], sizes = [32, 16], strides = [1, 1]} : vector<256x16xf32> to vector<32x16xf32>
    %cst_56 = arith.constant dense<0.000000e+00> : vector<16xf32>
    %224 = vector.multi_reduction <add>, %223, %cst_56 [0] : vector<32x16xf32> to vector<16xf32>
    %225 = vector.shape_cast %224 : vector<16xf32> to vector<1x16xf32>
    %cst_57 = arith.constant 3.200000e+01 : f32
    %226 = vector.broadcast %cst_57 : f32 to vector<1x16xf32>
    %227 = arith.divf %225, %226 : vector<1x16xf32>
    %228 = vector.broadcast %227 : vector<1x16xf32> to vector<32x16xf32>
    %229 = arith.subf %223, %228 : vector<32x16xf32>
    %230 = arith.mulf %229, %229 : vector<32x16xf32>
    %cst_58 = arith.constant dense<0.000000e+00> : vector<16xf32>
    %231 = vector.multi_reduction <add>, %230, %cst_58 [0] : vector<32x16xf32> to vector<16xf32>
    %232 = vector.shape_cast %231 : vector<16xf32> to vector<1x16xf32>
    %cst_59 = arith.constant 3.200000e+01 : f32
    %233 = vector.broadcast %cst_59 : f32 to vector<1x16xf32>
    %234 = arith.divf %232, %233 : vector<1x16xf32>
    %cst_60 = arith.constant 9.99999974E-6 : f32
    %235 = vector.broadcast %cst_60 : f32 to vector<1x16xf32>
    %236 = arith.addf %234, %235 : vector<1x16xf32>
    %237 = math.rsqrt %236 : vector<1x16xf32>
    %238 = vector.broadcast %237 : vector<1x16xf32> to vector<32x16xf32>
    %239 = arith.mulf %229, %238 : vector<32x16xf32>
    %240 = vector.broadcast %8 : vector<32x1xf32> to vector<32x16xf32>
    %241 = arith.mulf %239, %240 : vector<32x16xf32>
    %242 = vector.broadcast %9 : vector<32x1xf32> to vector<32x16xf32>
    %243 = arith.addf %241, %242 : vector<32x16xf32>
    %cst_61 = arith.constant 0.000000e+00 : f32
    %244 = vector.broadcast %cst_61 : f32 to vector<32x16xf32>
    %245 = arith.subf %244, %54 : vector<32x16xf32>
    %246 = math.exp %245 : vector<32x16xf32>
    %cst_62 = arith.constant 1.000000e+00 : f32
    %247 = vector.broadcast %cst_62 : f32 to vector<32x16xf32>
    %248 = arith.addf %247, %246 : vector<32x16xf32>
    %249 = tpu.reciprocal %248 {approx = true} : vector<32x16xf32> -> vector<32x16xf32>
    %250 = arith.mulf %54, %249 : vector<32x16xf32>
    %251 = arith.mulf %243, %250 : vector<32x16xf32>
    %252 = arith.truncf %251 : vector<32x16xf32> to vector<32x16xbf16>
    %cst_63 = arith.constant dense<0.000000e+00> : vector<32x16xf32>
    %253 = tpu.matmul %10, %252, %cst_63 {dimension_numbers = #tpu.dot_dimension_numbers<[1], [0], [0], [1], [0, 0, 1, 1], [], []>} : vector<32x32xbf16>, vector<32x16xbf16>, vector<32x16xf32> -> vector<32x16xf32>
    %254 = vector.broadcast %11 : vector<32x1xf32> to vector<32x16xf32>
    %255 = arith.addf %253, %254 : vector<32x16xf32>
    %256 = vector.extract_strided_slice %189 {offsets = [64, 0], sizes = [32, 16], strides = [1, 1]} : vector<256x16xf32> to vector<32x16xf32>
    %cst_64 = arith.constant dense<0.000000e+00> : vector<16xf32>
    %257 = vector.multi_reduction <add>, %256, %cst_64 [0] : vector<32x16xf32> to vector<16xf32>
    %258 = vector.shape_cast %257 : vector<16xf32> to vector<1x16xf32>
    %cst_65 = arith.constant 3.200000e+01 : f32
    %259 = vector.broadcast %cst_65 : f32 to vector<1x16xf32>
    %260 = arith.divf %258, %259 : vector<1x16xf32>
    %261 = vector.broadcast %260 : vector<1x16xf32> to vector<32x16xf32>
    %262 = arith.subf %256, %261 : vector<32x16xf32>
    %263 = arith.mulf %262, %262 : vector<32x16xf32>
    %cst_66 = arith.constant dense<0.000000e+00> : vector<16xf32>
    %264 = vector.multi_reduction <add>, %263, %cst_66 [0] : vector<32x16xf32> to vector<16xf32>
    %265 = vector.shape_cast %264 : vector<16xf32> to vector<1x16xf32>
    %cst_67 = arith.constant 3.200000e+01 : f32
    %266 = vector.broadcast %cst_67 : f32 to vector<1x16xf32>
    %267 = arith.divf %265, %266 : vector<1x16xf32>
    %cst_68 = arith.constant 9.99999974E-6 : f32
    %268 = vector.broadcast %cst_68 : f32 to vector<1x16xf32>
    %269 = arith.addf %267, %268 : vector<1x16xf32>
    %270 = math.rsqrt %269 : vector<1x16xf32>
    %271 = vector.broadcast %270 : vector<1x16xf32> to vector<32x16xf32>
    %272 = arith.mulf %262, %271 : vector<32x16xf32>
    %273 = vector.broadcast %8 : vector<32x1xf32> to vector<32x16xf32>
    %274 = arith.mulf %272, %273 : vector<32x16xf32>
    %275 = vector.broadcast %9 : vector<32x1xf32> to vector<32x16xf32>
    %276 = arith.addf %274, %275 : vector<32x16xf32>
    %cst_69 = arith.constant 0.000000e+00 : f32
    %277 = vector.broadcast %cst_69 : f32 to vector<32x16xf32>
    %278 = arith.subf %277, %75 : vector<32x16xf32>
    %279 = math.exp %278 : vector<32x16xf32>
    %cst_70 = arith.constant 1.000000e+00 : f32
    %280 = vector.broadcast %cst_70 : f32 to vector<32x16xf32>
    %281 = arith.addf %280, %279 : vector<32x16xf32>
    %282 = tpu.reciprocal %281 {approx = true} : vector<32x16xf32> -> vector<32x16xf32>
    %283 = arith.mulf %75, %282 : vector<32x16xf32>
    %284 = arith.mulf %276, %283 : vector<32x16xf32>
    %285 = arith.truncf %284 : vector<32x16xf32> to vector<32x16xbf16>
    %cst_71 = arith.constant dense<0.000000e+00> : vector<32x16xf32>
    %286 = tpu.matmul %10, %285, %cst_71 {dimension_numbers = #tpu.dot_dimension_numbers<[1], [0], [0], [1], [0, 0, 1, 1], [], []>} : vector<32x32xbf16>, vector<32x16xbf16>, vector<32x16xf32> -> vector<32x16xf32>
    %287 = vector.broadcast %11 : vector<32x1xf32> to vector<32x16xf32>
    %288 = arith.addf %286, %287 : vector<32x16xf32>
    %289 = vector.extract_strided_slice %189 {offsets = [96, 0], sizes = [32, 16], strides = [1, 1]} : vector<256x16xf32> to vector<32x16xf32>
    %cst_72 = arith.constant dense<0.000000e+00> : vector<16xf32>
    %290 = vector.multi_reduction <add>, %289, %cst_72 [0] : vector<32x16xf32> to vector<16xf32>
    %291 = vector.shape_cast %290 : vector<16xf32> to vector<1x16xf32>
    %cst_73 = arith.constant 3.200000e+01 : f32
    %292 = vector.broadcast %cst_73 : f32 to vector<1x16xf32>
    %293 = arith.divf %291, %292 : vector<1x16xf32>
    %294 = vector.broadcast %293 : vector<1x16xf32> to vector<32x16xf32>
    %295 = arith.subf %289, %294 : vector<32x16xf32>
    %296 = arith.mulf %295, %295 : vector<32x16xf32>
    %cst_74 = arith.constant dense<0.000000e+00> : vector<16xf32>
    %297 = vector.multi_reduction <add>, %296, %cst_74 [0] : vector<32x16xf32> to vector<16xf32>
    %298 = vector.shape_cast %297 : vector<16xf32> to vector<1x16xf32>
    %cst_75 = arith.constant 3.200000e+01 : f32
    %299 = vector.broadcast %cst_75 : f32 to vector<1x16xf32>
    %300 = arith.divf %298, %299 : vector<1x16xf32>
    %cst_76 = arith.constant 9.99999974E-6 : f32
    %301 = vector.broadcast %cst_76 : f32 to vector<1x16xf32>
    %302 = arith.addf %300, %301 : vector<1x16xf32>
    %303 = math.rsqrt %302 : vector<1x16xf32>
    %304 = vector.broadcast %303 : vector<1x16xf32> to vector<32x16xf32>
    %305 = arith.mulf %295, %304 : vector<32x16xf32>
    %306 = vector.broadcast %8 : vector<32x1xf32> to vector<32x16xf32>
    %307 = arith.mulf %305, %306 : vector<32x16xf32>
    %308 = vector.broadcast %9 : vector<32x1xf32> to vector<32x16xf32>
    %309 = arith.addf %307, %308 : vector<32x16xf32>
    %cst_77 = arith.constant 0.000000e+00 : f32
    %310 = vector.broadcast %cst_77 : f32 to vector<32x16xf32>
    %311 = arith.subf %310, %96 : vector<32x16xf32>
    %312 = math.exp %311 : vector<32x16xf32>
    %cst_78 = arith.constant 1.000000e+00 : f32
    %313 = vector.broadcast %cst_78 : f32 to vector<32x16xf32>
    %314 = arith.addf %313, %312 : vector<32x16xf32>
    %315 = tpu.reciprocal %314 {approx = true} : vector<32x16xf32> -> vector<32x16xf32>
    %316 = arith.mulf %96, %315 : vector<32x16xf32>
    %317 = arith.mulf %309, %316 : vector<32x16xf32>
    %318 = arith.truncf %317 : vector<32x16xf32> to vector<32x16xbf16>
    %cst_79 = arith.constant dense<0.000000e+00> : vector<32x16xf32>
    %319 = tpu.matmul %10, %318, %cst_79 {dimension_numbers = #tpu.dot_dimension_numbers<[1], [0], [0], [1], [0, 0, 1, 1], [], []>} : vector<32x32xbf16>, vector<32x16xbf16>, vector<32x16xf32> -> vector<32x16xf32>
    %320 = vector.broadcast %11 : vector<32x1xf32> to vector<32x16xf32>
    %321 = arith.addf %319, %320 : vector<32x16xf32>
    %322 = vector.extract_strided_slice %189 {offsets = [128, 0], sizes = [32, 16], strides = [1, 1]} : vector<256x16xf32> to vector<32x16xf32>
    %cst_80 = arith.constant dense<0.000000e+00> : vector<16xf32>
    %323 = vector.multi_reduction <add>, %322, %cst_80 [0] : vector<32x16xf32> to vector<16xf32>
    %324 = vector.shape_cast %323 : vector<16xf32> to vector<1x16xf32>
    %cst_81 = arith.constant 3.200000e+01 : f32
    %325 = vector.broadcast %cst_81 : f32 to vector<1x16xf32>
    %326 = arith.divf %324, %325 : vector<1x16xf32>
    %327 = vector.broadcast %326 : vector<1x16xf32> to vector<32x16xf32>
    %328 = arith.subf %322, %327 : vector<32x16xf32>
    %329 = arith.mulf %328, %328 : vector<32x16xf32>
    %cst_82 = arith.constant dense<0.000000e+00> : vector<16xf32>
    %330 = vector.multi_reduction <add>, %329, %cst_82 [0] : vector<32x16xf32> to vector<16xf32>
    %331 = vector.shape_cast %330 : vector<16xf32> to vector<1x16xf32>
    %cst_83 = arith.constant 3.200000e+01 : f32
    %332 = vector.broadcast %cst_83 : f32 to vector<1x16xf32>
    %333 = arith.divf %331, %332 : vector<1x16xf32>
    %cst_84 = arith.constant 9.99999974E-6 : f32
    %334 = vector.broadcast %cst_84 : f32 to vector<1x16xf32>
    %335 = arith.addf %333, %334 : vector<1x16xf32>
    %336 = math.rsqrt %335 : vector<1x16xf32>
    %337 = vector.broadcast %336 : vector<1x16xf32> to vector<32x16xf32>
    %338 = arith.mulf %328, %337 : vector<32x16xf32>
    %339 = vector.broadcast %8 : vector<32x1xf32> to vector<32x16xf32>
    %340 = arith.mulf %338, %339 : vector<32x16xf32>
    %341 = vector.broadcast %9 : vector<32x1xf32> to vector<32x16xf32>
    %342 = arith.addf %340, %341 : vector<32x16xf32>
    %cst_85 = arith.constant 0.000000e+00 : f32
    %343 = vector.broadcast %cst_85 : f32 to vector<32x16xf32>
    %344 = arith.subf %343, %117 : vector<32x16xf32>
    %345 = math.exp %344 : vector<32x16xf32>
    %cst_86 = arith.constant 1.000000e+00 : f32
    %346 = vector.broadcast %cst_86 : f32 to vector<32x16xf32>
    %347 = arith.addf %346, %345 : vector<32x16xf32>
    %348 = tpu.reciprocal %347 {approx = true} : vector<32x16xf32> -> vector<32x16xf32>
    %349 = arith.mulf %117, %348 : vector<32x16xf32>
    %350 = arith.mulf %342, %349 : vector<32x16xf32>
    %351 = arith.truncf %350 : vector<32x16xf32> to vector<32x16xbf16>
    %cst_87 = arith.constant dense<0.000000e+00> : vector<32x16xf32>
    %352 = tpu.matmul %10, %351, %cst_87 {dimension_numbers = #tpu.dot_dimension_numbers<[1], [0], [0], [1], [0, 0, 1, 1], [], []>} : vector<32x32xbf16>, vector<32x16xbf16>, vector<32x16xf32> -> vector<32x16xf32>
    %353 = vector.broadcast %11 : vector<32x1xf32> to vector<32x16xf32>
    %354 = arith.addf %352, %353 : vector<32x16xf32>
    %355 = vector.extract_strided_slice %189 {offsets = [160, 0], sizes = [32, 16], strides = [1, 1]} : vector<256x16xf32> to vector<32x16xf32>
    %cst_88 = arith.constant dense<0.000000e+00> : vector<16xf32>
    %356 = vector.multi_reduction <add>, %355, %cst_88 [0] : vector<32x16xf32> to vector<16xf32>
    %357 = vector.shape_cast %356 : vector<16xf32> to vector<1x16xf32>
    %cst_89 = arith.constant 3.200000e+01 : f32
    %358 = vector.broadcast %cst_89 : f32 to vector<1x16xf32>
    %359 = arith.divf %357, %358 : vector<1x16xf32>
    %360 = vector.broadcast %359 : vector<1x16xf32> to vector<32x16xf32>
    %361 = arith.subf %355, %360 : vector<32x16xf32>
    %362 = arith.mulf %361, %361 : vector<32x16xf32>
    %cst_90 = arith.constant dense<0.000000e+00> : vector<16xf32>
    %363 = vector.multi_reduction <add>, %362, %cst_90 [0] : vector<32x16xf32> to vector<16xf32>
    %364 = vector.shape_cast %363 : vector<16xf32> to vector<1x16xf32>
    %cst_91 = arith.constant 3.200000e+01 : f32
    %365 = vector.broadcast %cst_91 : f32 to vector<1x16xf32>
    %366 = arith.divf %364, %365 : vector<1x16xf32>
    %cst_92 = arith.constant 9.99999974E-6 : f32
    %367 = vector.broadcast %cst_92 : f32 to vector<1x16xf32>
    %368 = arith.addf %366, %367 : vector<1x16xf32>
    %369 = math.rsqrt %368 : vector<1x16xf32>
    %370 = vector.broadcast %369 : vector<1x16xf32> to vector<32x16xf32>
    %371 = arith.mulf %361, %370 : vector<32x16xf32>
    %372 = vector.broadcast %8 : vector<32x1xf32> to vector<32x16xf32>
    %373 = arith.mulf %371, %372 : vector<32x16xf32>
    %374 = vector.broadcast %9 : vector<32x1xf32> to vector<32x16xf32>
    %375 = arith.addf %373, %374 : vector<32x16xf32>
    %cst_93 = arith.constant 0.000000e+00 : f32
    %376 = vector.broadcast %cst_93 : f32 to vector<32x16xf32>
    %377 = arith.subf %376, %138 : vector<32x16xf32>
    %378 = math.exp %377 : vector<32x16xf32>
    %cst_94 = arith.constant 1.000000e+00 : f32
    %379 = vector.broadcast %cst_94 : f32 to vector<32x16xf32>
    %380 = arith.addf %379, %378 : vector<32x16xf32>
    %381 = tpu.reciprocal %380 {approx = true} : vector<32x16xf32> -> vector<32x16xf32>
    %382 = arith.mulf %138, %381 : vector<32x16xf32>
    %383 = arith.mulf %375, %382 : vector<32x16xf32>
    %384 = arith.truncf %383 : vector<32x16xf32> to vector<32x16xbf16>
    %cst_95 = arith.constant dense<0.000000e+00> : vector<32x16xf32>
    %385 = tpu.matmul %10, %384, %cst_95 {dimension_numbers = #tpu.dot_dimension_numbers<[1], [0], [0], [1], [0, 0, 1, 1], [], []>} : vector<32x32xbf16>, vector<32x16xbf16>, vector<32x16xf32> -> vector<32x16xf32>
    %386 = vector.broadcast %11 : vector<32x1xf32> to vector<32x16xf32>
    %387 = arith.addf %385, %386 : vector<32x16xf32>
    %388 = vector.extract_strided_slice %189 {offsets = [192, 0], sizes = [32, 16], strides = [1, 1]} : vector<256x16xf32> to vector<32x16xf32>
    %cst_96 = arith.constant dense<0.000000e+00> : vector<16xf32>
    %389 = vector.multi_reduction <add>, %388, %cst_96 [0] : vector<32x16xf32> to vector<16xf32>
    %390 = vector.shape_cast %389 : vector<16xf32> to vector<1x16xf32>
    %cst_97 = arith.constant 3.200000e+01 : f32
    %391 = vector.broadcast %cst_97 : f32 to vector<1x16xf32>
    %392 = arith.divf %390, %391 : vector<1x16xf32>
    %393 = vector.broadcast %392 : vector<1x16xf32> to vector<32x16xf32>
    %394 = arith.subf %388, %393 : vector<32x16xf32>
    %395 = arith.mulf %394, %394 : vector<32x16xf32>
    %cst_98 = arith.constant dense<0.000000e+00> : vector<16xf32>
    %396 = vector.multi_reduction <add>, %395, %cst_98 [0] : vector<32x16xf32> to vector<16xf32>
    %397 = vector.shape_cast %396 : vector<16xf32> to vector<1x16xf32>
    %cst_99 = arith.constant 3.200000e+01 : f32
    %398 = vector.broadcast %cst_99 : f32 to vector<1x16xf32>
    %399 = arith.divf %397, %398 : vector<1x16xf32>
    %cst_100 = arith.constant 9.99999974E-6 : f32
    %400 = vector.broadcast %cst_100 : f32 to vector<1x16xf32>
    %401 = arith.addf %399, %400 : vector<1x16xf32>
    %402 = math.rsqrt %401 : vector<1x16xf32>
    %403 = vector.broadcast %402 : vector<1x16xf32> to vector<32x16xf32>
    %404 = arith.mulf %394, %403 : vector<32x16xf32>
    %405 = vector.broadcast %8 : vector<32x1xf32> to vector<32x16xf32>
    %406 = arith.mulf %404, %405 : vector<32x16xf32>
    %407 = vector.broadcast %9 : vector<32x1xf32> to vector<32x16xf32>
    %408 = arith.addf %406, %407 : vector<32x16xf32>
    %cst_101 = arith.constant 0.000000e+00 : f32
    %409 = vector.broadcast %cst_101 : f32 to vector<32x16xf32>
    %410 = arith.subf %409, %159 : vector<32x16xf32>
    %411 = math.exp %410 : vector<32x16xf32>
    %cst_102 = arith.constant 1.000000e+00 : f32
    %412 = vector.broadcast %cst_102 : f32 to vector<32x16xf32>
    %413 = arith.addf %412, %411 : vector<32x16xf32>
    %414 = tpu.reciprocal %413 {approx = true} : vector<32x16xf32> -> vector<32x16xf32>
    %415 = arith.mulf %159, %414 : vector<32x16xf32>
    %416 = arith.mulf %408, %415 : vector<32x16xf32>
    %417 = arith.truncf %416 : vector<32x16xf32> to vector<32x16xbf16>
    %cst_103 = arith.constant dense<0.000000e+00> : vector<32x16xf32>
    %418 = tpu.matmul %10, %417, %cst_103 {dimension_numbers = #tpu.dot_dimension_numbers<[1], [0], [0], [1], [0, 0, 1, 1], [], []>} : vector<32x32xbf16>, vector<32x16xbf16>, vector<32x16xf32> -> vector<32x16xf32>
    %419 = vector.broadcast %11 : vector<32x1xf32> to vector<32x16xf32>
    %420 = arith.addf %418, %419 : vector<32x16xf32>
    %421 = vector.extract_strided_slice %189 {offsets = [224, 0], sizes = [32, 16], strides = [1, 1]} : vector<256x16xf32> to vector<32x16xf32>
    %cst_104 = arith.constant dense<0.000000e+00> : vector<16xf32>
    %422 = vector.multi_reduction <add>, %421, %cst_104 [0] : vector<32x16xf32> to vector<16xf32>
    %423 = vector.shape_cast %422 : vector<16xf32> to vector<1x16xf32>
    %cst_105 = arith.constant 3.200000e+01 : f32
    %424 = vector.broadcast %cst_105 : f32 to vector<1x16xf32>
    %425 = arith.divf %423, %424 : vector<1x16xf32>
    %426 = vector.broadcast %425 : vector<1x16xf32> to vector<32x16xf32>
    %427 = arith.subf %421, %426 : vector<32x16xf32>
    %428 = arith.mulf %427, %427 : vector<32x16xf32>
    %cst_106 = arith.constant dense<0.000000e+00> : vector<16xf32>
    %429 = vector.multi_reduction <add>, %428, %cst_106 [0] : vector<32x16xf32> to vector<16xf32>
    %430 = vector.shape_cast %429 : vector<16xf32> to vector<1x16xf32>
    %cst_107 = arith.constant 3.200000e+01 : f32
    %431 = vector.broadcast %cst_107 : f32 to vector<1x16xf32>
    %432 = arith.divf %430, %431 : vector<1x16xf32>
    %cst_108 = arith.constant 9.99999974E-6 : f32
    %433 = vector.broadcast %cst_108 : f32 to vector<1x16xf32>
    %434 = arith.addf %432, %433 : vector<1x16xf32>
    %435 = math.rsqrt %434 : vector<1x16xf32>
    %436 = vector.broadcast %435 : vector<1x16xf32> to vector<32x16xf32>
    %437 = arith.mulf %427, %436 : vector<32x16xf32>
    %438 = vector.broadcast %8 : vector<32x1xf32> to vector<32x16xf32>
    %439 = arith.mulf %437, %438 : vector<32x16xf32>
    %440 = vector.broadcast %9 : vector<32x1xf32> to vector<32x16xf32>
    %441 = arith.addf %439, %440 : vector<32x16xf32>
    %cst_109 = arith.constant 0.000000e+00 : f32
    %442 = vector.broadcast %cst_109 : f32 to vector<32x16xf32>
    %443 = arith.subf %442, %180 : vector<32x16xf32>
    %444 = math.exp %443 : vector<32x16xf32>
    %cst_110 = arith.constant 1.000000e+00 : f32
    %445 = vector.broadcast %cst_110 : f32 to vector<32x16xf32>
    %446 = arith.addf %445, %444 : vector<32x16xf32>
    %447 = tpu.reciprocal %446 {approx = true} : vector<32x16xf32> -> vector<32x16xf32>
    %448 = arith.mulf %180, %447 : vector<32x16xf32>
    %449 = arith.mulf %441, %448 : vector<32x16xf32>
    %450 = arith.truncf %449 : vector<32x16xf32> to vector<32x16xbf16>
    %cst_111 = arith.constant dense<0.000000e+00> : vector<32x16xf32>
    %451 = tpu.matmul %10, %450, %cst_111 {dimension_numbers = #tpu.dot_dimension_numbers<[1], [0], [0], [1], [0, 0, 1, 1], [], []>} : vector<32x32xbf16>, vector<32x16xbf16>, vector<32x16xf32> -> vector<32x16xf32>
    %452 = vector.broadcast %11 : vector<32x1xf32> to vector<32x16xf32>
    %453 = arith.addf %451, %452 : vector<32x16xf32>
    %454 = tpu.concatenate %222, %255, %288, %321, %354, %387, %420, %453 in 0 : vector<32x16xf32>, vector<32x16xf32>, vector<32x16xf32>, vector<32x16xf32>, vector<32x16xf32>, vector<32x16xf32>, vector<32x16xf32>, vector<32x16xf32> -> vector<256x16xf32>
    %c0_112 = arith.constant 0 : index
    %c0_113 = arith.constant 0 : index
    %455 = vector.load %arg17[%c0_112, %c0_113] : memref<256x16xf32, #tpu.memory_space<vmem>>, vector<256x16xf32>
    tpu.vector_store %arg17[%c0_112, %c0_113], %454 {strides = array<i32>} : memref<256x16xf32, #tpu.memory_space<vmem>>, vector<256x16xf32>,
    return
  }
  func.func @transform_0(%arg0: i32) -> (i32, i32) {
    %c0_i32 = arith.constant 0 : i32
    %c0_i32_0 = arith.constant 0 : i32
    return %arg0, %c0_i32 : i32, i32
  }
  func.func @transform_1(%arg0: i32) -> (i32, i32) {
    %c0_i32 = arith.constant 0 : i32
    %c0_i32_0 = arith.constant 0 : i32
    %c0_i32_1 = arith.constant 0 : i32
    return %c0_i32, %c0_i32_0 : i32, i32
  }
  func.func @transform_2(%arg0: i32) -> (i32, i32) {
    %c0_i32 = arith.constant 0 : i32
    %c0_i32_0 = arith.constant 0 : i32
    %c0_i32_1 = arith.constant 0 : i32
    return %c0_i32, %c0_i32_0 : i32, i32
  }
  func.func @transform_3(%arg0: i32) -> (i32, i32) {
    %c0_i32 = arith.constant 0 : i32
    %c0_i32_0 = arith.constant 0 : i32
    %c0_i32_1 = arith.constant 0 : i32
    return %c0_i32, %c0_i32_0 : i32, i32
  }
  func.func @transform_4(%arg0: i32) -> (i32, i32) {
    %c0_i32 = arith.constant 0 : i32
    %c0_i32_0 = arith.constant 0 : i32
    %c0_i32_1 = arith.constant 0 : i32
    return %c0_i32, %c0_i32_0 : i32, i32
  }
  func.func @transform_5(%arg0: i32) -> (i32, i32) {
    %c0_i32 = arith.constant 0 : i32
    %c0_i32_0 = arith.constant 0 : i32
    %c0_i32_1 = arith.constant 0 : i32
    return %c0_i32, %c0_i32_0 : i32, i32
  }
  func.func @transform_6(%arg0: i32) -> (i32, i32) {
    %c0_i32 = arith.constant 0 : i32
    %c0_i32_0 = arith.constant 0 : i32
    %c0_i32_1 = arith.constant 0 : i32
    return %c0_i32, %c0_i32_0 : i32, i32
  }
  func.func @transform_7(%arg0: i32) -> (i32, i32) {
    %c0_i32 = arith.constant 0 : i32
    %c0_i32_0 = arith.constant 0 : i32
    %c0_i32_1 = arith.constant 0 : i32
    return %c0_i32, %c0_i32_0 : i32, i32
  }
  func.func @transform_8(%arg0: i32) -> (i32, i32) {
    %c0_i32 = arith.constant 0 : i32
    %c0_i32_0 = arith.constant 0 : i32
    %c0_i32_1 = arith.constant 0 : i32
    return %c0_i32, %c0_i32_0 : i32, i32
  }
  func.func @transform_9(%arg0: i32) -> (i32, i32) {
    %c0_i32 = arith.constant 0 : i32
    %c0_i32_0 = arith.constant 0 : i32
    %c0_i32_1 = arith.constant 0 : i32
    return %c0_i32, %c0_i32_0 : i32, i32
  }
  func.func @transform_10(%arg0: i32) -> (i32, i32) {
    %c0_i32 = arith.constant 0 : i32
    %c0_i32_0 = arith.constant 0 : i32
    %c0_i32_1 = arith.constant 0 : i32
    return %c0_i32, %c0_i32_0 : i32, i32
  }
  func.func @transform_11(%arg0: i32) -> (i32, i32) {
    %c0_i32 = arith.constant 0 : i32
    %c0_i32_0 = arith.constant 0 : i32
    %c0_i32_1 = arith.constant 0 : i32
    return %c0_i32, %c0_i32_0 : i32, i32
  }
  func.func @transform_12(%arg0: i32) -> (i32, i32) {
    %c0_i32 = arith.constant 0 : i32
    %c0_i32_0 = arith.constant 0 : i32
    %c0_i32_1 = arith.constant 0 : i32
    return %c0_i32, %c0_i32_0 : i32, i32
  }
  func.func @transform_13(%arg0: i32) -> (i32, i32) {
    %c0_i32 = arith.constant 0 : i32
    %c0_i32_0 = arith.constant 0 : i32
    %c0_i32_1 = arith.constant 0 : i32
    return %c0_i32, %c0_i32_0 : i32, i32
  }
  func.func @transform_14(%arg0: i32) -> (i32, i32) {
    %c0_i32 = arith.constant 0 : i32
    %c0_i32_0 = arith.constant 0 : i32
    %c0_i32_1 = arith.constant 0 : i32
    return %c0_i32, %c0_i32_0 : i32, i32
  }
  func.func @transform_15(%arg0: i32) -> (i32, i32) {
    %c0_i32 = arith.constant 0 : i32
    %c0_i32_0 = arith.constant 0 : i32
    %c0_i32_1 = arith.constant 0 : i32
    return %c0_i32, %c0_i32_0 : i32, i32
  }
  func.func @transform_16(%arg0: i32) -> (i32, i32) {
    %c0_i32 = arith.constant 0 : i32
    %c0_i32_0 = arith.constant 0 : i32
    return %arg0, %c0_i32 : i32, i32
  }
}

</mosaic_0001>

<bundles_post_ra>
// kernel: tpu_custom_call.1
= control target key start
LH: loop header
LB: loop body
LE: loop exit
PB: predicated region body
PF: predicated region fallthrough
CT: control target
= control target key end

     0   :  { %s4486_s21 = smov 0   ;;  %s6391_s0 = inlined_call_operand.vmem [shape: f32[512,18], index: 0, kind: input, shape index: {}]   ;;  %s6392_s1 = inlined_call_operand.vmem [shape: f32[32,1], index: 1, kind: input, shape index: {}]   ;;  %s6393_s2 = inlined_call_operand.vmem [shape: f32[32,1], index: 2, kind: input, shape index: {}]   ;;  %s6394_s3 = inlined_call_operand.vmem [shape: f32[32,1], index: 3, kind: input, shape index: {}]   ;;  %s6395_s4 = inlined_call_operand.vmem [shape: f32[32,1], index: 4, kind: input, shape index: {}]   ;;  %s6396_s5 = inlined_call_operand.vmem [shape: bf16[32,32], index: 5, kind: input, shape index: {}]   ;;  %s6397_s6 = inlined_call_operand.vmem [shape: f32[32,1], index: 6, kind: input, shape index: {}]   ;;  %s6398_s7 = inlined_call_operand.vmem [shape: bf16[32,32], index: 7, kind: input, shape index: {}]   ;;  %s6399_s8 = inlined_call_operand.vmem [shape: f32[32,1], index: 8, kind: input, shape index: {}]   ;;  %s6400_s9 = inlined_call_operand.vmem [shape: bf16[16,16], index: 9, kind: input, shape index: {}]   ;;  %s6401_s10 = inlined_call_operand.vmem [shape: bf16[16,16], index: 10, kind: input, shape index: {}]   ;;  %s6402_s11 = inlined_call_operand.vmem [shape: f32[256,16], index: 11, kind: input, shape index: {}]   ;;  %s6403_s12 = inlined_call_operand.vmem [shape: f32[32,1], index: 12, kind: input, shape index: {}]   ;;  %s6404_s13 = inlined_call_operand.vmem [shape: f32[32,1], index: 13, kind: input, shape index: {}]   ;;  %s6405_s14 = inlined_call_operand.vmem [shape: bf16[32,32], index: 14, kind: input, shape index: {}]   ;;  %s6406_s15 = inlined_call_operand.vmem [shape: f32[32,1], index: 15, kind: input, shape index: {}]   ;;  %s6407_s16 = inlined_call_operand.vmem [shape: f32[512,16], index: 16, kind: output, shape index: {}]  }
   0x1   :  { %6432 = sst [smem:[#allocation30_spill]] %s6391_s0 }
   0x2 LB: > { %s3735_s22 = sadd.s32 4294967295, %s4396_s21   ;;  %p3739_p0 = scmp.ge.s32.totalorder %s4396_s21, 1  ;;  %s4396_s21 = sphi %s4486_s21, %s26_s21  }
   0x3   : > { %p463_p1 = scmp.lt.s32.totalorder %s4396_s21, 3 }
   0x5   : > { %p464_p2 = pnand %p3739_p0, %p463_p1 }
   0x7   : > { %467 = sbr.rel (%p464_p2) target bundleno = 1351 (0x547), region = 84 }
   0xe   : > { %v534_v0 = vld [vmem:[%s6394_s3] sm:$0xff]  ;;  %v4398_v2 = vmov 0   ;;  %v535_v3 = vld [vmem:[%s6394_s3 + $0x8] sm:$0xff]  ;;  %v533_v5 = vld [vmem:[%s6393_s2 + $0x18] sm:$0xff]  ;;  %s3740_s29 = sshll.u32 %s3735_s22, 5  ;;  %s6433_s18 = sld [smem:[#allocation30_spill]] }
   0xf   : > { %v530_v1 = vld [vmem:[%s6393_s2] sm:$0xff]  ;;  %4236 = vset.pattern.permute.xlu1 %v4398_v2  ;;  %4235 = vset.pattern.permute.xlu0 %v4398_v2  ;;  %v531_v4 = vld [vmem:[%s6393_s2 + $0x8] sm:$0xff]  ;;  %v532_v6 = vld [vmem:[%s6393_s2 + $0x10] sm:$0xff]  ;;  %p514_p3 = scmp.lt.s32.totalorder %s3740_s29, 63  ;;  %s4399_s22 = smov 127   ;;  %vm774_vm0 = vcmask 261120  }
  0x10   : > { %676 = vperm.xlu1 %4236, %v534_v0   ;;  %632 = vperm.xlu0 %4235, %v530_v1   ;;  %v537_v7 = vld [vmem:[%s6394_s3 + $0x18] sm:$0xff]  ;;  %v536_v8 = vld [vmem:[%s6394_s3 + $0x10] sm:$0xff]  ;;  %v527_v9 = vld [vmem:[%s6392_s1 + $0x8] sm:$0xff]  ;;  %s4400_s20 = smov 126   ;;  %vm2031_vm1 = vcmask 130048  }
  0x11   : > { %v526_v10 = vld [vmem:[%s6392_s1] sm:$0xff]  ;;  %v529_v11 = vld [vmem:[%s6392_s1 + $0x18] sm:$0xff]  ;;  %v528_v12 = vld [vmem:[%s6392_s1 + $0x10] sm:$0xff]  ;;  %s6542_s29 = smov (!%p514_p3, %s3740_s29), 63 }
  0x12   : > { %v539_v13 = vld [vmem:[%s6395_s4 + $0x8] sm:$0xff]  ;;  %v538_v14 = vld [vmem:[%s6395_s4] sm:$0xff]  ;;  %v541_v15 = vld [vmem:[%s6395_s4 + $0x18] sm:$0xff]  ;;  %s3741_s30 = sshll.u32 %s6542_s29, 3 }
  0x13   : > { %v540_v16 = vld [vmem:[%s6395_s4 + $0x10] sm:$0xff]  ;;  %s6288_s27 = scalar_lea.vmem %s6407_s16, %s3741_s30 }
  0x14   : > { %681 = vperm.xlu1 %4236, %v535_v3   ;;  %637 = vperm.xlu0 %4235, %v531_v4   ;;  %s4552_s19 = scalar_lea.vmem %s6433_s18, %s3741_s30 }
  0x15   : > { %v4555_v17 = vld [vmem:[%s4552_s19] sm:$0xff]  ;;  %v4564_v21 = vld [vmem:[%s4552_s19 + $0x8] sm:$0xff]  ;;  %v4588_v30 = vld [vmem:[%s4552_s19 + $0x10] sm:$0xff] }
  0x16   : > { %v4574_v25 = vld [vmem:[%s4552_s19 + $0x88] sm:$0xff]  ;;  %6434 = vst [vmem:[#allocation2_spill] sm:$0xff] %v4588_v30  ;;  %v4609_v36 = vld [vmem:[%s4552_s19 + $0x90] sm:$0xff]  ;;  %v4612_v37 = vld [vmem:[%s4552_s19 + $0x98] sm:$0xff] }
  0x17   : > { %v4577_v26 = vld [vmem:[%s4552_s19 + $0xa8] sm:$0xff]  ;;  %v4619_v39 = vld [vmem:[%s4552_s19 + $0xb0] sm:$0xff]  ;;  %v4638_v45 = vld [vmem:[%s4552_s19 + $0xb8] sm:$0xff] }
  0x18   : > { %647 = vperm.xlu1 %4236, %v533_v5   ;;  %642 = vperm.xlu0 %4235, %v532_v6   ;;  %v4582_v28 = vld [vmem:[%s4552_s19 + $0xc8] sm:$0xff]  ;;  %v4641_v46 = vld [vmem:[%s4552_s19 + $0xd0] sm:$0xff]  ;;  %v4644_v47 = vld [vmem:[%s4552_s19 + $0xd8] sm:$0xff] }
  0x19   : > { %v4585_v29 = vld [vmem:[%s4552_s19 + $0xe8] sm:$0xff]  ;;  %v4647_v48 = vld [vmem:[%s4552_s19 + $0x18] sm:$0xff]  ;;  %v4688_v60 = vld [vmem:[%s4552_s19 + $0xf0] sm:$0xff] }
  0x1a   : > { %6435 = vst [vmem:[#allocation3_spill] sm:$0xff] %v4647_v48  ;;  %v4691_v61 = vld [vmem:[%s4552_s19 + $0x20] sm:$0xff]  ;;  %v605_v62 = vld [vmem:[%s4552_s19 + $0xf8] sm:$0xff] }
  0x1b   : > { %6436 = vst [vmem:[#allocation4_spill] sm:$0xff] %v4691_v61 }
  0x1c   : > { %691 = vperm.xlu1 %4236, %v537_v7   ;;  %686 = vperm.xlu0 %4235, %v536_v8  }
  0x20   : > { %613 = vperm.xlu1 %4236, %v527_v9   ;;  %608 = vperm.xlu0 %4235, %v526_v10   ;;  %v4733_v10 = vld [vmem:[%s4552_s19 + $0x28] sm:$0xff] }
  0x21   : > { %6437 = vst [vmem:[#allocation5_spill] sm:$0xff] %v4733_v10 }
  0x24   : > { %623 = vperm.xlu1 %4236, %v529_v11   ;;  %618 = vperm.xlu0 %4235, %v528_v12   ;;  %v4736_v11 = vld [vmem:[%s4552_s19 + $0x30] sm:$0xff] }
  0x28   : > { %725 = vperm.xlu1 %4236, %v539_v13   ;;  %720 = vperm.xlu0 %4235, %v538_v14   ;;  %v4746_v14 = vld [vmem:[%s4552_s19 + $0x60] sm:$0xff] }
  0x2c   : > { %735 = vperm.xlu1 %4236, %v541_v15   ;;  %730 = vperm.xlu0 %4235, %v540_v16   ;;  %v4754_v16 = vld [vmem:[%s6396_s5] sm:$0xff]  }
  0x2d   : > { %6439 = vst [vmem:[#allocation7_spill] sm:$0xff] %v4754_v16  ;;  %3968 = vmatprep.mubr.msk.bf16.mxu0 %vm774_vm0, %v4754_v16 }
  0x8f   : > { %v4557_v18 = vpop.permute.xlu1 %676  ;;  %v4559_v19 = vpop.permute.xlu0 %632 }
  0x90   : > { %v650_v20 = vmul.f32 %v4559_v19, %v4555_v17  ;;  %v694_v22 = vmul.f32 %v4557_v18, %v4555_v17  ;;  %v919_v9 = vmul.f32 %v4559_v19, %v4691_v61  ;;  %v943_v16 = vmul.f32 %v4557_v18, %v4691_v61  ;;  %v4821_v61 = vld [vmem:[%s4552_s19 + $0xc0] sm:$0xff] }
  0x92   : > { %658 = vrot.lane.b32.xlu0 %v650_v20, %s4399_s22  ;;  %v4759_v20 = vld [vmem:[%s6398_s7] sm:$0xff]  }
  0x93   : > { %v4569_v23 = vpop.permute.xlu1 %681  ;;  %v4571_v24 = vpop.permute.xlu0 %637  ;;  %6440 = vst [vmem:[#allocation8_spill] sm:$0xff] %v4759_v20  ;;  %3976 = vmatprep.mubr.msk.bf16.mxu1 %vm774_vm0, %v4759_v20  ;;  %v4798_v20 = vld [vmem:[%s4552_s19 + $0x70] sm:$0xff] }
  0x94   : > { %v651_v27 = vmul.f32 %v4571_v24, %v4564_v21  ;;  %v4594_v31 = vmul.f32 %v4571_v24, %v4574_v25  ;;  %v4598_v32 = vmul.f32 %v4569_v23, %v4574_v25  ;;  %v4602_v33 = vmul.f32 %v4571_v24, %v4577_v26 }
  0x95   : > { %v4616_v38 = vmul.f32 %v4569_v23, %v4577_v26  ;;  %v4623_v40 = vmul.f32 %v4571_v24, %v4582_v28  ;;  %v4627_v41 = vmul.f32 %v4569_v23, %v4582_v28  ;;  %v4631_v42 = vmul.f32 %v4571_v24, %v4585_v29 }
  0x96   : > { %660 = vrot.lane.b32.xlu1 %v651_v27, %s4399_s22  ;;  %702 = vrot.lane.b32.xlu0 %v694_v22, %s4400_s20  ;;  %v695_v43 = vmul.f32 %v4569_v23, %v4564_v21  ;;  %v4681_v57 = vmul.f32 %v4569_v23, %v4585_v29  ;;  %v4764_v22 = vld [vmem:[%s4552_s19 + $0x68] sm:$0xff]  ;;  %v4767_v27 = vld [vmem:[%s4552_s19 + $0x80] sm:$0xff] }
  0x97   : > { %v4604_v34 = vpop.permute.xlu1 %647  ;;  %v4606_v35 = vpop.permute.xlu0 %642 }
  0x98   : > { %v652_v44 = vmul.f32 %v4606_v35, %v4588_v30  ;;  %v4653_v49 = vmul.f32 %v4606_v35, %v4609_v36  ;;  %v4657_v50 = vmul.f32 %v4604_v34, %v4612_v37  ;;  %v4661_v51 = vmul.f32 %v4606_v35, %v4619_v39 }
  0x99   : > { %v4669_v54 = vmul.f32 %v4604_v34, %v4638_v45  ;;  %v4673_v55 = vmul.f32 %v4606_v35, %v4641_v46  ;;  %v4677_v56 = vmul.f32 %v4604_v34, %v4644_v47  ;;  %v653_v58 = vmul.f32 %v4604_v34, %v4647_v48 }
  0x9a   : > { %704 = vrot.lane.b32.xlu1 %v695_v43, %s4400_s20  ;;  %662 = vrot.lane.b32.xlu0 %v652_v44, %s4399_s22  ;;  %v4726_v7 = vmul.f32 %v4606_v35, %v4688_v60  ;;  %v4739_v12 = vmul.f32 %v4604_v34, %v605_v62 }
  0x9b   : > { %v4663_v52 = vpop.permute.xlu1 %691  ;;  %v4665_v53 = vpop.permute.xlu0 %686 }
  0x9c   : > { %v696_v59 = vmul.f32 %v4665_v53, %v4588_v30  ;;  %v4698_v63 = vmul.f32 %v4665_v53, %v4609_v36  ;;  %v4702_v0 = vmul.f32 %v4663_v52, %v4612_v37  ;;  %v4706_v1 = vmul.f32 %v4665_v53, %v4619_v39 }
  0x9d   : > { %v4714_v4 = vmul.f32 %v4663_v52, %v4638_v45  ;;  %v4718_v5 = vmul.f32 %v4665_v53, %v4641_v46  ;;  %v4722_v6 = vmul.f32 %v4663_v52, %v4644_v47  ;;  %v697_v8 = vmul.f32 %v4663_v52, %v4647_v48  ;;  %v4808_v48 = vld [vmem:[%s4552_s19 + $0xa0] sm:$0xff] }
  0x9e   : > { %664 = vrot.lane.b32.xlu1 %v653_v58, %s4399_s22  ;;  %706 = vrot.lane.b32.xlu0 %v696_v59, %s4400_s20  ;;  %v4743_v13 = vmul.f32 %v4665_v53, %v4688_v60  ;;  %v4749_v15 = vmul.f32 %v4663_v52, %v605_v62 }
  0x9f   : > { %v4708_v2 = vpop.permute.xlu1 %613  ;;  %v4710_v3 = vpop.permute.xlu0 %608 }
  0xa0   : > { %6438 = vst [vmem:[#allocation6_spill] sm:$0xff] %v4749_v15  ;;  %v4771_v43 = vmul.f32 %v4710_v3, %v4746_v14  ;;  %v4783_v59 = vmul.f32 %v4708_v2, %v4764_v22  ;;  %v4801_v15 = vld [vmem:[%s4552_s19 + $0x78] sm:$0xff] }
  0xa2   : > { %708 = vrot.lane.b32.xlu1 %v697_v8, %s4400_s20  ;;  %927 = vrot.lane.b32.xlu0 %v919_v9, %s4399_s22  ;;  %6441 = vst [vmem:[#allocation9_spill] sm:$0xff] %v4771_v43  ;;  %6442 = vst [vmem:[#allocation10_spill] sm:$0xff] %v4783_v59  ;;  %v4787_v8 = vmul.f32 %v4710_v3, %v4767_v27  ;;  %v4791_v9 = vmul.f32 %v4708_v2, %v4574_v25 }
  0xa3   : > { %v4773_v44 = vpop.permute.xlu1 %623  ;;  %v4775_v58 = vpop.permute.xlu0 %618  ;;  %v920_v43 = vmul.f32 %v4571_v24, %v4733_v10  ;;  %v944_v59 = vmul.f32 %v4569_v23, %v4733_v10 }
  0xa4   : > { %6443 = vst [vmem:[#allocation11_spill] sm:$0xff] %v4787_v8  ;;  %6444 = vst [vmem:[#allocation12_spill] sm:$0xff] %v4791_v9  ;;  %v921_v8 = vmul.f32 %v4606_v35, %v4736_v11  ;;  %v4812_v25 = vmul.f32 %v4775_v58, %v4798_v20  ;;  %v4816_v9 = vmul.f32 %v4773_v44, %v4801_v15 }
  0xa5   : > { %v4825_v10 = vmul.f32 %v4775_v58, %v4609_v36  ;;  %v4829_v30 = vmul.f32 %v4773_v44, %v4612_v37  ;;  %v4848_v36 = vmul.f32 %v4773_v44, %v4638_v45  ;;  %v4852_v37 = vmul.f32 %v4710_v3, %v4821_v61 }
  0xa6   : > { %6445 = vst [vmem:[#allocation13_spill] sm:$0xff] %v4812_v25  ;;  %6446 = vst [vmem:[#allocation14_spill] sm:$0xff] %v4816_v9  ;;  %929 = vrot.lane.b32.xlu1 %v920_v43, %s4399_s22  ;;  %951 = vrot.lane.b32.xlu0 %v943_v16, %s4400_s20  ;;  %v4833_v25 = vmul.f32 %v4710_v3, %v4808_v48  ;;  %v4836_v9 = vld [vmem:[%s4552_s19 + $0xe0] sm:$0xff]  ;;  %v4840_v43 = vmul.f32 %v4708_v2, %v4577_v26 }
  0xa7   : > { %v4844_v16 = vmul.f32 %v4775_v58, %v4619_v39  ;;  %6448 = vst [vmem:[#allocation16_spill] sm:$0xff] %v4848_v36  ;;  %6449 = vst [vmem:[#allocation17_spill] sm:$0xff] %v4852_v37  ;;  %v4860_v26 = vmul.f32 %v4775_v58, %v4641_v46  ;;  %v4864_v39 = vmul.f32 %v4773_v44, %v4644_v47  ;;  %v4871_v36 = vld [vmem:[%s4552_s19 + $0x38] sm:$0xff] }
  0xa8   : > { %6447 = vst [vmem:[#allocation15_spill] sm:$0xff] %v4833_v25  ;;  %v4856_v25 = vmul.f32 %v4708_v2, %v4582_v28  ;;  %v4868_v45 = vmul.f32 %v4710_v3, %v4836_v9  ;;  %v4875_v37 = vmul.f32 %v4708_v2, %v4585_v29  ;;  %v4879_v28 = vmul.f32 %v4775_v58, %v4688_v60  ;;  %v4891_v29 = vld [vmem:[%s4552_s19 + $0x40] sm:$0xff] }
  0xa9   : > { %v4882_v46 = vmul.f32 %v4773_v44, %v605_v62  ;;  %v922_v47 = vmul.f32 %v4604_v34, %v4871_v36  ;;  %v946_v60 = vmul.f32 %v4663_v52, %v4871_v36  ;;  %v1075_v62 = vmul.f32 %v4559_v19, %v4891_v29 }
  0xaa   : > { %6450 = vst [vmem:[#allocation18_spill] sm:$0xff] %v4868_v45  ;;  %6451 = vst [vmem:[#allocation19_spill] sm:$0xff] %v4875_v37  ;;  %953 = vrot.lane.b32.xlu1 %v944_v59, %s4400_s20  ;;  %931 = vrot.lane.b32.xlu0 %v921_v8, %s4399_s22  ;;  %v945_v45 = vmul.f32 %v4665_v53, %v4736_v11  ;;  %v4900_v59 = vld [vmem:[%s4552_s19 + $0x48] sm:$0xff]  ;;  %v1231_v37 = vmul.f32 %v4559_v19, %v4746_v14 }
  0xab   : > { %6452 = vst [vmem:[#allocation20_spill] sm:$0xff] %v4879_v28  ;;  %6453 = vst [vmem:[#allocation21_spill] sm:$0xff] %v4882_v46  ;;  %v1076_v8 = vmul.f32 %v4571_v24, %v4900_v59  ;;  %v4909_v46 = vld [vmem:[%s4552_s19 + $0x50] sm:$0xff]  ;;  %v4918_v28 = vld [vmem:[%s4552_s19 + $0x58] sm:$0xff] }
  0xae   : > { %933 = vrot.lane.b32.xlu1 %v922_v47, %s4399_s22  ;;  %955 = vrot.lane.b32.xlu0 %v945_v45, %s4400_s20  ;;  %v1099_v47 = vmul.f32 %v4557_v18, %v4891_v29  ;;  %v1100_v45 = vmul.f32 %v4569_v23, %v4900_v59 }
  0xb2   : > { %957 = vrot.lane.b32.xlu1 %v946_v60, %s4400_s20  ;;  %1083 = vrot.lane.b32.xlu0 %v1075_v62, %s4399_s22  ;;  %v1077_v60 = vmul.f32 %v4606_v35, %v4909_v46  ;;  %v1078_v62 = vmul.f32 %v4604_v34, %v4918_v28 }
  0xb6   : > { %1085 = vrot.lane.b32.xlu1 %v1076_v8, %s4399_s22  ;;  %1107 = vrot.lane.b32.xlu0 %v1099_v47, %s4400_s20  ;;  %v1101_v8 = vmul.f32 %v4665_v53, %v4909_v46  ;;  %v1102_v47 = vmul.f32 %v4663_v52, %v4918_v28 }
  0xba   : > { %1109 = vrot.lane.b32.xlu1 %v1100_v45, %s4400_s20  ;;  %1087 = vrot.lane.b32.xlu0 %v1077_v60, %s4399_s22  ;;  %v1232_v45 = vmul.f32 %v4571_v24, %v4764_v22  ;;  %v1255_v60 = vmul.f32 %v4557_v18, %v4746_v14  ;;  %v1234_v24 = vmul.f32 %v4604_v34, %v4801_v15 }
  0xbb   : > { %v1257_v14 = vmul.f32 %v4665_v53, %v4798_v20  ;;  %v1411_v34 = vmul.f32 %v4557_v18, %v4767_v27  ;;  %v626_v53 = vmul.f32 %v4710_v3, %v4555_v17 }
  0xbe   : > { %1089 = vrot.lane.b32.xlu1 %v1078_v62, %s4399_s22  ;;  %1111 = vrot.lane.b32.xlu0 %v1101_v8, %s4400_s20  ;;  %v1256_v62 = vmul.f32 %v4569_v23, %v4764_v22  ;;  %v1233_v8 = vmul.f32 %v4606_v35, %v4798_v20  ;;  %v1258_v23 = vmul.f32 %v4663_v52, %v4801_v15  ;;  %v6455_v20 = vld [vmem:[#allocation3_spill] sm:$0xff] }
  0xbf   : > { %v1387_v35 = vmul.f32 %v4559_v19, %v4767_v27  ;;  %v1543_v52 = vmul.f32 %v4559_v19, %v4808_v48 }
  0xc2   : > { %1113 = vrot.lane.b32.xlu1 %v1102_v47, %s4400_s20  ;;  %1239 = vrot.lane.b32.xlu0 %v1231_v37, %s4399_s22  ;;  %v548_v37 = vld [vmem:[%s6397_s6 + $0x10] sm:$0xff] }
  0xc6   : > { %1241 = vrot.lane.b32.xlu1 %v1232_v45, %s4399_s22  ;;  %1263 = vrot.lane.b32.xlu0 %v1255_v60, %s4400_s20 }
  0xca   : > { %1265 = vrot.lane.b32.xlu1 %v1256_v62, %s4400_s20  ;;  %1243 = vrot.lane.b32.xlu0 %v1233_v8, %s4399_s22 }
  0xce   : > { %1245 = vrot.lane.b32.xlu1 %v1234_v24, %s4399_s22  ;;  %1267 = vrot.lane.b32.xlu0 %v1257_v14, %s4400_s20  ;;  %v6457_v24 = vld [vmem:[#allocation4_spill] sm:$0xff] }
  0xcf   : > { %v915_v14 = vmul.f32 %v4710_v3, %v6457_v24 }
  0xd2   : > { %1269 = vrot.lane.b32.xlu1 %v1258_v23, %s4400_s20  ;;  %1395 = vrot.lane.b32.xlu0 %v1387_v35, %s4399_s22  ;;  %v549_v23 = vld [vmem:[%s6397_s6 + $0x18] sm:$0xff]  ;;  %v554_v35 = vld [vmem:[%s6399_s8] sm:$0xff] }
  0xd6   : > { %1397 = vrot.lane.b32.xlu1 %v4594_v31, %s4399_s22  ;;  %1419 = vrot.lane.b32.xlu0 %v1411_v34, %s4400_s20  ;;  %v1567_v31 = vmul.f32 %v4557_v18, %v4808_v48  ;;  %v5005_v48 = vpop.permute.xlu1 %725 }
  0xda   : > { %1421 = vrot.lane.b32.xlu1 %v4598_v32, %s4400_s20  ;;  %1399 = vrot.lane.b32.xlu0 %v4653_v49, %s4399_s22  ;;  %v1699_v32 = vmul.f32 %v4559_v19, %v4821_v61 }
  0xde   : > { %1401 = vrot.lane.b32.xlu1 %v4657_v50, %s4399_s22  ;;  %1423 = vrot.lane.b32.xlu0 %v4698_v63, %s4400_s20 }
  0xe2   : > { %1425 = vrot.lane.b32.xlu1 %v4702_v0, %s4400_s20  ;;  %1551 = vrot.lane.b32.xlu0 %v1543_v52, %s4399_s22 }
  0xe6   : > { %1553 = vrot.lane.b32.xlu1 %v4602_v33, %s4399_s22  ;;  %1575 = vrot.lane.b32.xlu0 %v1567_v31, %s4400_s20  ;;  %v1723_v33 = vmul.f32 %v4557_v18, %v4821_v61 }
  0xea   : > { %1577 = vrot.lane.b32.xlu1 %v4616_v38, %s4400_s20  ;;  %1555 = vrot.lane.b32.xlu0 %v4661_v51, %s4399_s22  ;;  %v4999_v38 = vpop.permute.xlu0 %720  ;;  %v1879_v51 = vmul.f32 %v4557_v18, %v4836_v9 }
  0xee   : > { %1557 = vrot.lane.b32.xlu1 %v4669_v54, %s4399_s22  ;;  %1579 = vrot.lane.b32.xlu0 %v4706_v1, %s4400_s20  ;;  %v5011_v49 = vpop.permute.xlu0 %730  ;;  %v6454_v1 = vld [vmem:[#allocation2_spill] sm:$0xff] }
  0xf2   : > { %1581 = vrot.lane.b32.xlu1 %v4714_v4, %s4400_s20  ;;  %1707 = vrot.lane.b32.xlu0 %v1699_v32, %s4399_s22  ;;  %v546_v4 = vld [vmem:[%s6397_s6] sm:$0xff] }
  0xf6   : > { %1709 = vrot.lane.b32.xlu1 %v4623_v40, %s4399_s22  ;;  %1731 = vrot.lane.b32.xlu0 %v1723_v33, %s4400_s20  ;;  %v1855_v40 = vmul.f32 %v4559_v19, %v4836_v9  ;;  %v547_v9 = vld [vmem:[%s6397_s6 + $0x8] sm:$0xff]  ;;  %v6458_v33 = vld [vmem:[#allocation5_spill] sm:$0xff] }
  0xfa   : > { %1733 = vrot.lane.b32.xlu1 %v4627_v41, %s4400_s20  ;;  %1711 = vrot.lane.b32.xlu0 %v4673_v55, %s4399_s22  ;;  %v5018_v41 = vpop.permute.xlu1 %735 }
  0xfe   : > { %1713 = vrot.lane.b32.xlu1 %v4677_v56, %s4399_s22  ;;  %1735 = vrot.lane.b32.xlu0 %v4718_v5, %s4400_s20  ;;  %v627_v56 = vmul.f32 %v4708_v2, %v4564_v21 }
 0x102   : > { %1737 = vrot.lane.b32.xlu1 %v4722_v6, %s4400_s20  ;;  %1863 = vrot.lane.b32.xlu0 %v1855_v40, %s4399_s22  ;;  %v916_v40 = vmul.f32 %v4708_v2, %v6458_v33  ;;  %v1073_v33 = vmul.f32 %v4775_v58, %v4909_v46 }
 0x104   : > { %v659_v50 = vpop.permute.xlu0 %658 }
 0x105   : > { %v670_v55 = vadd.f32 %v659_v50, %v626_v53  ;;  %v555_v50 = vld [vmem:[%s6399_s8 + $0x8] sm:$0xff] }
 0x106   : > { %1865 = vrot.lane.b32.xlu1 %v4631_v42, %s4399_s22  ;;  %1887 = vrot.lane.b32.xlu0 %v1879_v51, %s4400_s20 }
 0x108   : > { %v661_v19 = vpop.permute.xlu1 %660  ;;  %v703_v54 = vpop.permute.xlu0 %702 }
 0x109   : > { %v671_v18 = vadd.f32 %v661_v19, %v627_v56  ;;  %v714_v61 = vadd.f32 %v703_v54, %v670_v55  ;;  %v556_v19 = vld [vmem:[%s6399_s8 + $0x10] sm:$0xff]  ;;  %v5075_v54 = vld [vmem:[%s6396_s5 + $0x8] sm:$0xff]  }
 0x10a   : > { %1889 = vrot.lane.b32.xlu1 %v4681_v57, %s4400_s20  ;;  %1867 = vrot.lane.b32.xlu0 %v4726_v7, %s4399_s22  ;;  %v628_v57 = vmul.f32 %v4775_v58, %v6454_v1  ;;  %v5080_v55 = vld [vmem:[%s6398_s7 + $0x8] sm:$0xff]  }
 0x10b   : > { %v738_v17 = vadd.f32 %v4999_v38, %v714_v61 }
 0x10c   : > { %v705_v42 = vpop.permute.xlu1 %704  ;;  %v663_v63 = vpop.permute.xlu0 %662 }
 0x10d   : > { %v715_v0 = vadd.f32 %v705_v42, %v671_v18  ;;  %v672_v15 = vadd.f32 %v663_v63, %v628_v57 }
 0x10e   : > { %1869 = vrot.lane.b32.xlu1 %v4739_v12, %s4399_s22  ;;  %1891 = vrot.lane.b32.xlu0 %v4743_v13, %s4400_s20  ;;  %v629_v12 = vmul.f32 %v4773_v44, %v6455_v20  ;;  %v6456_v13 = vld [vmem:[#allocation6_spill] sm:$0xff] }
 0x10f   : > { %v739_v21 = vadd.f32 %v5005_v48, %v715_v0  ;;  %v917_v0 = vmul.f32 %v4775_v58, %v4736_v11  ;;  %v6460_v11 = vld [vmem:[#allocation8_spill] sm:$0xff] }
 0x110   : > { %v665_v5 = vpop.permute.xlu1 %664  ;;  %v707_v6 = vpop.permute.xlu0 %706 }
 0x111   : > { %v742_v7 = vpack.c.bf16 %v739_v21, %v738_v17  ;;  %v673_v22 = vadd.f32 %v665_v5, %v629_v12  ;;  %v716_v27 = vadd.f32 %v707_v6, %v672_v15  ;;  %v557_v17 = vld [vmem:[%s6399_s8 + $0x18] sm:$0xff]  ;;  %v558_v21 = vld [vmem:[%s6403_s12] sm:$0xff]  ;;  %v559_v12 = vld [vmem:[%s6403_s12 + $0x8] sm:$0xff] }
 0x112   : > { %1893 = vrot.lane.b32.xlu1 %v6456_v13, %s4400_s20  ;;  %746 = vperm.xlu0 %4235, %v546_v4   ;;  %v6459_v4 = vld [vmem:[#allocation7_spill] sm:$0xff]  ;;  %v562_v13 = vld [vmem:[%s6404_s13] sm:$0xff] }
 0x113   : > { %3964 = vmatprep.subr.bf16.mxu0 %v742_v7  ;;  %3972 = vmatprep.subr.bf16.mxu1 %v742_v7  ;;  %v740_v62 = vadd.f32 %v5011_v49, %v716_v27 }
 0x114   : > { %v709_v47 = vpop.permute.xlu1 %708  ;;  %v928_v45 = vpop.permute.xlu0 %927  ;;  %3965 = vmatpush3.bf16.msra.mxu0 %v742_v7  ;;  %3973 = vmatpush3.bf16.msra.mxu1 %v742_v7  ;;  %v918_v7 = vmul.f32 %v4773_v44, %v4871_v36 }
 0x115   : > { %v717_v60 = vadd.f32 %v709_v47, %v673_v22  ;;  %v939_v32 = vadd.f32 %v928_v45, %v915_v14  ;;  %v1071_v47 = vmul.f32 %v4710_v3, %v4891_v29  ;;  %v563_v45 = vld [vmem:[%s6404_s13 + $0x8] sm:$0xff]  ;;  %v561_v3 = vld [vmem:[%s6403_s12 + $0x18] sm:$0xff]  ;;  %v564_v29 = vld [vmem:[%s6404_s13 + $0x10] sm:$0xff] }
 0x116   : > { %751 = vperm.xlu1 %4236, %v547_v9   ;;  %756 = vperm.xlu0 %4235, %v548_v37  }
 0x117   : > { %v741_v8 = vadd.f32 %v5018_v41, %v717_v60  ;;  %v560_v60 = vld [vmem:[%s6403_s12 + $0x10] sm:$0xff] }
 0x118   : > { %v930_v34 = vpop.permute.xlu1 %929  ;;  %v952_v52 = vpop.permute.xlu0 %951 }
 0x119   : > { %v743_v31 = vpack.c.bf16 %v741_v8, %v740_v62  ;;  %v940_v51 = vadd.f32 %v930_v34, %v916_v40  ;;  %v963_v53 = vadd.f32 %v952_v52, %v939_v32  ;;  %v565_v40 = vld [vmem:[%s6404_s13 + $0x18] sm:$0xff] }
 0x11a   : > { %761 = vperm.xlu1 %4236, %v549_v23   ;;  %832 = vperm.xlu0 %4235, %v554_v35   ;;  %v1072_v23 = vmul.f32 %v4708_v2, %v4900_v59 }
 0x11b   : > { %3966 = vmatprep.subr.bf16.mxu0 %v743_v31  ;;  %3974 = vmatprep.subr.bf16.mxu1 %v743_v31  ;;  %v967_v42 = vadd.f32 %v963_v53, %v4999_v38 }
 0x11c   : > { %v954_v56 = vpop.permute.xlu1 %953  ;;  %v932_v18 = vpop.permute.xlu0 %931  ;;  %3967 = vmatpush3.bf16.msra.mxu0 %v743_v31  ;;  %3975 = vmatpush3.bf16.msra.mxu1 %v743_v31 }
 0x11d   : > { %v964_v61 = vadd.f32 %v954_v56, %v940_v51  ;;  %v941_v6 = vadd.f32 %v932_v18, %v917_v0 }
 0x11e   : > { %837 = vperm.xlu1 %4236, %v555_v50   ;;  %842 = vperm.xlu0 %4235, %v556_v19   ;;  %v570_v50 = vld [vmem:[%s6406_s15] sm:$0xff]  ;;  %v1074_v19 = vmul.f32 %v4773_v44, %v4918_v28 }
 0x11f   : > { %v968_v63 = vadd.f32 %v964_v61, %v5005_v48  ;;  %3969 = vmatmul.mubr.msk.bf16.vlgmr.msra.gmra.mrb[0].mxu0 %vm774_vm0, %v5075_v54  ;;  %3977 = vmatmul.mubr.msk.bf16.vlgmr.msra.gmra.mrb[0].mxu1 %vm774_vm0, %v5080_v55  ;;  %v571_v61 = vld [vmem:[%s6406_s15 + $0x8] sm:$0xff] }
 0x120   : > { %v934_v1 = vpop.permute.xlu1 %933  ;;  %v956_v57 = vpop.permute.xlu0 %955  ;;  %3984 = vmatprep.mubr.msk.bf16.mxu0 %vm774_vm0, %v6459_v4  ;;  %3992 = vmatprep.mubr.msk.bf16.mxu1 %vm774_vm0, %v6460_v11 }
 0x121   : > { %v971_v5 = vpack.c.bf16 %v968_v63, %v967_v42  ;;  %v942_v15 = vadd.f32 %v934_v1, %v918_v7  ;;  %v965_v20 = vadd.f32 %v956_v57, %v941_v6  ;;  %v572_v42 = vld [vmem:[%s6406_s15 + $0x10] sm:$0xff]  ;;  %v6461_v6 = vld [vmem:[#allocation9_spill] sm:$0xff] }
 0x122   : > { %847 = vperm.xlu1 %4236, %v557_v17   ;;  %2583 = vperm.xlu0 %4235, %v558_v21   ;;  %v573_v21 = vld [vmem:[%s6406_s15 + $0x18] sm:$0xff] }
 0x123   : > { %3980 = vmatprep.subr.bf16.mxu0 %v971_v5  ;;  %3988 = vmatprep.subr.bf16.mxu1 %v971_v5  ;;  %v969_v36 = vadd.f32 %v965_v20, %v5011_v49 }
 0x124   : > { %v958_v22 = vpop.permute.xlu1 %957  ;;  %v1084_v27 = vpop.permute.xlu0 %1083  ;;  %3981 = vmatpush3.bf16.msra.mxu0 %v971_v5  ;;  %3989 = vmatpush3.bf16.msra.mxu1 %v971_v5 }
 0x125   : > { %v966_v9 = vadd.f32 %v958_v22, %v942_v15  ;;  %v1095_v14 = vadd.f32 %v1084_v27, %v1071_v47  ;;  %v6462_v15 = vld [vmem:[#allocation10_spill] sm:$0xff] }
 0x126   : > { %2588 = vperm.xlu1 %4236, %v559_v12   ;;  %2607 = vperm.xlu0 %4235, %v562_v13  }
 0x127   : > { %v970_v37 = vadd.f32 %v966_v9, %v5018_v41 }
 0x128   : > { %v1086_v62 = vpop.permute.xlu1 %1085  ;;  %v1108_v8 = vpop.permute.xlu0 %1107 }
 0x129   : > { %v972_v24 = vpack.c.bf16 %v970_v37, %v969_v36  ;;  %v1096_v35 = vadd.f32 %v1086_v62, %v1072_v23  ;;  %v1119_v34 = vadd.f32 %v1108_v8, %v1095_v14  ;;  %v6464_v8 = vld [vmem:[#allocation14_spill] sm:$0xff] }
 0x12a   : > { %2612 = vperm.xlu1 %4236, %v563_v45   ;;  %2593 = vperm.xlu0 %4235, %v560_v60   ;;  %v6463_v60 = vld [vmem:[#allocation13_spill] sm:$0xff] }
 0x12b   : > { %3982 = vmatprep.subr.bf16.mxu0 %v972_v24  ;;  %3990 = vmatprep.subr.bf16.mxu1 %v972_v24  ;;  %v1123_v2 = vadd.f32 %v1119_v34, %v4999_v38 }
 0x12c   : > { %v1110_v52 = vpop.permute.xlu1 %1109  ;;  %v1088_v31 = vpop.permute.xlu0 %1087  ;;  %3983 = vmatpush3.bf16.msra.mxu0 %v972_v24  ;;  %3991 = vmatpush3.bf16.msra.mxu1 %v972_v24 }
 0x12d   : > { %v1120_v32 = vadd.f32 %v1110_v52, %v1096_v35  ;;  %v1097_v46 = vadd.f32 %v1088_v31, %v1073_v33  ;;  %v6466_v33 = vld [vmem:[#allocation12_spill] sm:$0xff] }
 0x12e   : > { %2598 = vperm.xlu1 %4236, %v561_v3   ;;  %2617 = vperm.xlu0 %4235, %v564_v29  }
 0x12f   : > { %v1124_v59 = vadd.f32 %v1120_v32, %v5005_v48  ;;  %3985 = vmatmul.mubr.msk.bf16.vlgmr.msra.gmra.mrb[4].mxu0 %vm774_vm0, %v5075_v54  ;;  %3993 = vmatmul.mubr.msk.bf16.vlgmr.msra.gmra.mrb[4].mxu1 %vm774_vm0, %v5080_v55 }
 0x130   : > { %v1090_v51 = vpop.permute.xlu1 %1089  ;;  %v1112_v53 = vpop.permute.xlu0 %1111  ;;  %4000 = vmatprep.mubr.msk.bf16.mxu0 %vm774_vm0, %v6459_v4  ;;  %4008 = vmatprep.mubr.msk.bf16.mxu1 %vm774_vm0, %v6460_v11 }
 0x131   : > { %v1127_v58 = vpack.c.bf16 %v1124_v59, %v1123_v2  ;;  %v1098_v56 = vadd.f32 %v1090_v51, %v1074_v19  ;;  %v1121_v18 = vadd.f32 %v1112_v53, %v1097_v46  ;;  %v6465_v2 = vld [vmem:[#allocation11_spill] sm:$0xff] }
 0x132   : > { %2622 = vperm.xlu1 %4236, %v565_v40   ;;  %2661 = vperm.xlu0 %4235, %v570_v50  }
 0x133   : > { %3996 = vmatprep.subr.bf16.mxu0 %v1127_v58  ;;  %4004 = vmatprep.subr.bf16.mxu1 %v1127_v58  ;;  %v1125_v44 = vadd.f32 %v1121_v18, %v5011_v49 }
 0x134   : > { %v1114_v63 = vpop.permute.xlu1 %1113  ;;  %v1240_v0 = vpop.permute.xlu0 %1239  ;;  %3997 = vmatpush3.bf16.msra.mxu0 %v1127_v58  ;;  %4005 = vmatpush3.bf16.msra.mxu1 %v1127_v58 }
 0x135   : > { %v1122_v17 = vadd.f32 %v1114_v63, %v1098_v56  ;;  %v1251_v7 = vadd.f32 %v1240_v0, %v6461_v6 }
 0x136   : > { %2666 = vperm.xlu1 %4236, %v571_v61   ;;  %2671 = vperm.xlu0 %4235, %v572_v42  }
 0x137   : > { %v1126_v28 = vadd.f32 %v1122_v17, %v5018_v41 }
 0x138   : > { %v1242_v1 = vpop.permute.xlu1 %1241  ;;  %v1264_v57 = vpop.permute.xlu0 %1263 }
 0x139   : > { %v1128_v5 = vpack.c.bf16 %v1126_v28, %v1125_v44  ;;  %v1252_v20 = vadd.f32 %v1242_v1, %v6462_v15  ;;  %v1275_v12 = vadd.f32 %v1264_v57, %v1251_v7  ;;  %v6467_v7 = vld [vmem:[#allocation15_spill] sm:$0xff] }
 0x13a   : > { %2676 = vperm.xlu1 %4236, %v573_v21  }
 0x13b   : > { %3998 = vmatprep.subr.bf16.mxu0 %v1128_v5  ;;  %4006 = vmatprep.subr.bf16.mxu1 %v1128_v5  ;;  %v1279_v9 = vadd.f32 %v1275_v12, %v4999_v38 }
 0x13c   : > { %v1266_v13 = vpop.permute.xlu1 %1265  ;;  %v1244_v22 = vpop.permute.xlu0 %1243  ;;  %3999 = vmatpush3.bf16.msra.mxu0 %v1128_v5  ;;  %4007 = vmatpush3.bf16.msra.mxu1 %v1128_v5 }
 0x13d   : > { %v1276_v27 = vadd.f32 %v1266_v13, %v1252_v20  ;;  %v1253_v62 = vadd.f32 %v1244_v22, %v6463_v60 }
 0x13f   : > { %v1280_v36 = vadd.f32 %v1276_v27, %v5005_v48  ;;  %4001 = vmatmul.mubr.msk.bf16.vlgmr.msra.gmra.mrb[8].mxu0 %vm774_vm0, %v5075_v54  ;;  %4009 = vmatmul.mubr.msk.bf16.vlgmr.msra.gmra.mrb[8].mxu1 %vm774_vm0, %v5080_v55 }
 0x140   : > { %v1246_v37 = vpop.permute.xlu1 %1245  ;;  %v1268_v47 = vpop.permute.xlu0 %1267  ;;  %4016 = vmatprep.mubr.msk.bf16.mxu0 %vm774_vm0, %v6459_v4  ;;  %4024 = vmatprep.mubr.msk.bf16.mxu1 %vm774_vm0, %v6460_v11 }
 0x141   : > { %v1283_v45 = vpack.c.bf16 %v1280_v36, %v1279_v9  ;;  %v1254_v24 = vadd.f32 %v1246_v37, %v6464_v8  ;;  %v1277_v14 = vadd.f32 %v1268_v47, %v1253_v62  ;;  %v6468_v47 = vld [vmem:[#allocation16_spill] sm:$0xff] }
 0x143   : > { %4012 = vmatprep.subr.bf16.mxu0 %v1283_v45  ;;  %4020 = vmatprep.subr.bf16.mxu1 %v1283_v45  ;;  %v1281_v3 = vadd.f32 %v1277_v14, %v5011_v49 }
 0x144   : > { %v1270_v23 = vpop.permute.xlu1 %1269  ;;  %v1396_v35 = vpop.permute.xlu0 %1395  ;;  %4013 = vmatpush3.bf16.msra.mxu0 %v1283_v45  ;;  %4021 = vmatpush3.bf16.msra.mxu1 %v1283_v45 }
 0x145   : > { %v1278_v34 = vadd.f32 %v1270_v23, %v1254_v24  ;;  %v1407_v59 = vadd.f32 %v1396_v35, %v6465_v2 }
 0x147   : > { %v1282_v29 = vadd.f32 %v1278_v34, %v5018_v41 }
 0x148   : > { %v1398_v52 = vpop.permute.xlu1 %1397  ;;  %v1420_v31 = vpop.permute.xlu0 %1419 }
 0x149   : > { %v1284_v32 = vpack.c.bf16 %v1282_v29, %v1281_v3  ;;  %v1408_v40 = vadd.f32 %v1398_v52, %v6466_v33  ;;  %v1431_v50 = vadd.f32 %v1420_v31, %v1407_v59  ;;  %v6469_v29 = vld [vmem:[#allocation17_spill] sm:$0xff] }
 0x14b   : > { %4014 = vmatprep.subr.bf16.mxu0 %v1284_v32  ;;  %4022 = vmatprep.subr.bf16.mxu1 %v1284_v32  ;;  %v1435_v46 = vadd.f32 %v1431_v50, %v4999_v38 }
 0x14c   : > { %v1422_v51 = vpop.permute.xlu1 %1421  ;;  %v1400_v53 = vpop.permute.xlu0 %1399  ;;  %4015 = vmatpush3.bf16.msra.mxu0 %v1284_v32  ;;  %4023 = vmatpush3.bf16.msra.mxu1 %v1284_v32 }
 0x14d   : > { %v1432_v58 = vadd.f32 %v1422_v51, %v1408_v40  ;;  %v1409_v42 = vadd.f32 %v1400_v53, %v4825_v10 }
 0x14f   : > { %v1436_v19 = vadd.f32 %v1432_v58, %v5005_v48  ;;  %4017 = vmatmul.mubr.msk.bf16.vlgmr.msra.gmra.mrb[12].mxu0 %vm774_vm0, %v5075_v54  ;;  %4025 = vmatmul.mubr.msk.bf16.vlgmr.msra.gmra.mrb[12].mxu1 %vm774_vm0, %v5080_v55 }
 0x150   : > { %v1402_v56 = vpop.permute.xlu1 %1401  ;;  %v1424_v18 = vpop.permute.xlu0 %1423  ;;  %4032 = vmatprep.mubr.msk.bf16.mxu0 %vm774_vm0, %v6459_v4  ;;  %4040 = vmatprep.mubr.msk.bf16.mxu1 %vm774_vm0, %v6460_v11 }
 0x151   : > { %v1439_v61 = vpack.c.bf16 %v1436_v19, %v1435_v46  ;;  %v1410_v63 = vadd.f32 %v1402_v56, %v4829_v30  ;;  %v1433_v0 = vadd.f32 %v1424_v18, %v1409_v42 }
 0x153   : > { %4028 = vmatprep.subr.bf16.mxu0 %v1439_v61  ;;  %4036 = vmatprep.subr.bf16.mxu1 %v1439_v61  ;;  %v1437_v21 = vadd.f32 %v1433_v0, %v5011_v49 }
 0x154   : > { %v1426_v17 = vpop.permute.xlu1 %1425  ;;  %v1552_v44 = vpop.permute.xlu0 %1551  ;;  %4029 = vmatpush3.bf16.msra.mxu0 %v1439_v61  ;;  %4037 = vmatpush3.bf16.msra.mxu1 %v1439_v61 }
 0x155   : > { %v1434_v28 = vadd.f32 %v1426_v17, %v1410_v63  ;;  %v1563_v15 = vadd.f32 %v1552_v44, %v6467_v7  ;;  %v6470_v44 = vld [vmem:[#allocation18_spill] sm:$0xff] }
 0x157   : > { %v1438_v1 = vadd.f32 %v1434_v28, %v5018_v41 }
 0x158   : > { %v1554_v57 = vpop.permute.xlu1 %1553  ;;  %v1576_v5 = vpop.permute.xlu0 %1575 }
 0x159   : > { %v1440_v6 = vpack.c.bf16 %v1438_v1, %v1437_v21  ;;  %v1564_v10 = vadd.f32 %v1554_v57, %v4840_v43  ;;  %v1587_v30 = vadd.f32 %v1576_v5, %v1563_v15 }
 0x15b   : > { %4030 = vmatprep.subr.bf16.mxu0 %v1440_v6  ;;  %4038 = vmatprep.subr.bf16.mxu1 %v1440_v6  ;;  %v1591_v22 = vadd.f32 %v1587_v30, %v4999_v38 }
 0x15c   : > { %v1578_v20 = vpop.permute.xlu1 %1577  ;;  %v1556_v12 = vpop.permute.xlu0 %1555  ;;  %4031 = vmatpush3.bf16.msra.mxu0 %v1440_v6  ;;  %4039 = vmatpush3.bf16.msra.mxu1 %v1440_v6 }
 0x15d   : > { %v1588_v13 = vadd.f32 %v1578_v20, %v1564_v10  ;;  %v1565_v37 = vadd.f32 %v1556_v12, %v4844_v16  ;;  %v6472_v20 = vld [vmem:[#allocation20_spill] sm:$0xff] }
 0x15f   : > { %v1592_v27 = vadd.f32 %v1588_v13, %v5005_v48  ;;  %4033 = vmatmul.mubr.msk.bf16.vlgmr.msra.gmra.mrb[16].mxu0 %vm774_vm0, %v5075_v54  ;;  %4041 = vmatmul.mubr.msk.bf16.vlgmr.msra.gmra.mrb[16].mxu1 %vm774_vm0, %v5080_v55 }
 0x160   : > { %v1558_v9 = vpop.permute.xlu1 %1557  ;;  %v1580_v43 = vpop.permute.xlu0 %1579  ;;  %4048 = vmatprep.mubr.msk.bf16.mxu0 %vm774_vm0, %v6459_v4  ;;  %4056 = vmatprep.mubr.msk.bf16.mxu1 %vm774_vm0, %v6460_v11 }
 0x161   : > { %v1595_v36 = vpack.c.bf16 %v1592_v27, %v1591_v22  ;;  %v1566_v45 = vadd.f32 %v1558_v9, %v6468_v47  ;;  %v1589_v60 = vadd.f32 %v1580_v43, %v1565_v37 }
 0x163   : > { %4044 = vmatprep.subr.bf16.mxu0 %v1595_v36  ;;  %4052 = vmatprep.subr.bf16.mxu1 %v1595_v36  ;;  %v1593_v14 = vadd.f32 %v1589_v60, %v5011_v49 }
 0x164   : > { %v1582_v62 = vpop.permute.xlu1 %1581  ;;  %v1708_v8 = vpop.permute.xlu0 %1707  ;;  %4045 = vmatpush3.bf16.msra.mxu0 %v1595_v36  ;;  %4053 = vmatpush3.bf16.msra.mxu1 %v1595_v36 }
 0x165   : > { %v1590_v24 = vadd.f32 %v1582_v62, %v1566_v45  ;;  %v1719_v52 = vadd.f32 %v1708_v8, %v6469_v29 }
 0x167   : > { %v1594_v23 = vadd.f32 %v1590_v24, %v5018_v41 }
 0x168   : > { %v1710_v35 = vpop.permute.xlu1 %1709  ;;  %v1732_v34 = vpop.permute.xlu0 %1731 }
 0x169   : > { %v1596_v3 = vpack.c.bf16 %v1594_v23, %v1593_v14  ;;  %v1720_v16 = vadd.f32 %v1710_v35, %v4856_v25  ;;  %v1743_v31 = vadd.f32 %v1732_v34, %v1719_v52 }
 0x16b   : > { %4046 = vmatprep.subr.bf16.mxu0 %v1596_v3  ;;  %4054 = vmatprep.subr.bf16.mxu1 %v1596_v3  ;;  %v1747_v33 = vadd.f32 %v1743_v31, %v4999_v38 }
 0x16c   : > { %v1734_v32 = vpop.permute.xlu1 %1733  ;;  %v1712_v2 = vpop.permute.xlu0 %1711  ;;  %4047 = vmatpush3.bf16.msra.mxu0 %v1596_v3  ;;  %4055 = vmatpush3.bf16.msra.mxu1 %v1596_v3 }
 0x16d   : > { %v1744_v59 = vadd.f32 %v1734_v32, %v1720_v16  ;;  %v1721_v53 = vadd.f32 %v1712_v2, %v4860_v26  ;;  %v6471_v26 = vld [vmem:[#allocation19_spill] sm:$0xff] }
 0x16f   : > { %v1748_v40 = vadd.f32 %v1744_v59, %v5005_v48  ;;  %4049 = vmatmul.mubr.msk.bf16.vlgmr.msra.gmra.mrb[20].mxu0 %vm774_vm0, %v5075_v54  ;;  %4057 = vmatmul.mubr.msk.bf16.vlgmr.msra.gmra.mrb[20].mxu1 %vm774_vm0, %v5080_v55 }
 0x170   : > { %v1714_v50 = vpop.permute.xlu1 %1713  ;;  %v1736_v25 = vpop.permute.xlu0 %1735  ;;  %4064 = vmatprep.mubr.msk.bf16.mxu0 %vm774_vm0, %v6459_v4  ;;  %4072 = vmatprep.mubr.msk.bf16.mxu1 %vm774_vm0, %v6460_v11 }
 0x171   : > { %v1751_v51 = vpack.c.bf16 %v1748_v40, %v1747_v33  ;;  %v1722_v58 = vadd.f32 %v1714_v50, %v4864_v39  ;;  %v1745_v46 = vadd.f32 %v1736_v25, %v1721_v53 }
 0x173   : > { %4060 = vmatprep.subr.bf16.mxu0 %v1751_v51  ;;  %4068 = vmatprep.subr.bf16.mxu1 %v1751_v51  ;;  %v1749_v61 = vadd.f32 %v1745_v46, %v5011_v49 }
 0x174   : > { %v1738_v19 = vpop.permute.xlu1 %1737  ;;  %v1864_v56 = vpop.permute.xlu0 %1863  ;;  %4061 = vmatpush3.bf16.msra.mxu0 %v1751_v51  ;;  %4069 = vmatpush3.bf16.msra.mxu1 %v1751_v51 }
 0x175   : > { %v1746_v18 = vadd.f32 %v1738_v19, %v1722_v58  ;;  %v1875_v28 = vadd.f32 %v1864_v56, %v6470_v44 }
 0x177   : > { %v1750_v42 = vadd.f32 %v1746_v18, %v5018_v41 }
 0x178   : > { %v1866_v63 = vpop.permute.xlu1 %1865  ;;  %v1888_v0 = vpop.permute.xlu0 %1887 }
 0x179   : > { %v1752_v17 = vpack.c.bf16 %v1750_v42, %v1749_v61  ;;  %v1876_v21 = vadd.f32 %v1866_v63, %v6471_v26  ;;  %v1899_v39 = vadd.f32 %v1888_v0, %v1875_v28 }
 0x17b   : > { %4062 = vmatprep.subr.bf16.mxu0 %v1752_v17  ;;  %4070 = vmatprep.subr.bf16.mxu1 %v1752_v17  ;;  %v1903_v6 = vadd.f32 %v1899_v39, %v4999_v38  ;;  %v6473_v38 = vld [vmem:[#allocation21_spill] sm:$0xff] }
 0x17c   : > { %v1890_v1 = vpop.permute.xlu1 %1889  ;;  %v1868_v57 = vpop.permute.xlu0 %1867  ;;  %4063 = vmatpush3.bf16.msra.mxu0 %v1752_v17  ;;  %4071 = vmatpush3.bf16.msra.mxu1 %v1752_v17 }
 0x17d   : > { %v1900_v5 = vadd.f32 %v1890_v1, %v1876_v21  ;;  %v1877_v12 = vadd.f32 %v1868_v57, %v6472_v20 }
 0x17f   : > { %v1904_v7 = vadd.f32 %v1900_v5, %v5005_v48  ;;  %4065 = vmatmul.mubr.msk.bf16.vlgmr.msra.gmra.mrb[24].mxu0 %vm774_vm0, %v5075_v54  ;;  %4073 = vmatmul.mubr.msk.bf16.vlgmr.msra.gmra.mrb[24].mxu1 %vm774_vm0, %v5080_v55 }
 0x180   : > { %v1870_v15 = vpop.permute.xlu1 %1869  ;;  %v1892_v10 = vpop.permute.xlu0 %1891  ;;  %4080 = vmatprep.mubr.msk.bf16.mxu0 %vm774_vm0, %v6459_v4  ;;  %4088 = vmatprep.mubr.msk.bf16.mxu1 %vm774_vm0, %v6460_v11  ;;  %v4241_v11 = vld [vmem:[%s6400_s9] sm:$0xff]  }
 0x181   : > { %v1907_v30 = vpack.c.bf16 %v1904_v7, %v1903_v6  ;;  %v1878_v13 = vadd.f32 %v1870_v15, %v6473_v38  ;;  %v1901_v48 = vadd.f32 %v1892_v10, %v1877_v12 }
 0x183   : > { %4076 = vmatprep.subr.bf16.mxu0 %v1907_v30  ;;  %4084 = vmatprep.subr.bf16.mxu1 %v1907_v30  ;;  %v1905_v9 = vadd.f32 %v1901_v48, %v5011_v49 }
 0x184   : > { %v1894_v22 = vpop.permute.xlu1 %1893  ;;  %4077 = vmatpush3.bf16.msra.mxu0 %v1907_v30  ;;  %4085 = vmatpush3.bf16.msra.mxu1 %v1907_v30 }
 0x185   : > { %v1902_v27 = vadd.f32 %v1894_v22, %v1878_v13 }
 0x187   : > { %v1906_v43 = vadd.f32 %v1902_v27, %v5018_v41 }
 0x189   : > { %v1908_v4 = vpack.c.bf16 %v1906_v43, %v1905_v9 }
 0x18b   : > { %4078 = vmatprep.subr.bf16.mxu0 %v1908_v4  ;;  %4086 = vmatprep.subr.bf16.mxu1 %v1908_v4 }
 0x18c   : > { %4079 = vmatpush3.bf16.msra.mxu0 %v1908_v4  ;;  %4087 = vmatpush3.bf16.msra.mxu1 %v1908_v4 }
 0x18d   : > { %4092 = vmatprep.subr.bf16.mxu0 %v4241_v11 }
 0x18f   : > { %4081 = vmatmul.mubr.msk.bf16.vlgmr.msra.gmra.mrb[28].mxu0 %vm774_vm0, %v5075_v54  ;;  %4089 = vmatmul.mubr.msk.bf16.vlgmr.msra.gmra.mrb[28].mxu1 %vm774_vm0, %v5080_v55 }
 0x190   : > { %4093 = vmatpush3.bf16.msra.mxu0 %v4241_v11 }
 0x191   : > { %v5244_v49 = vpop.permute.xlu0 %746 }
 0x195   : > { %v5246_v41 = vpop.permute.xlu1 %751  ;;  %v5248_v36 = vpop.permute.xlu0 %756 }
 0x199   : > { %v5250_v37 = vpop.permute.xlu1 %761 }
 0x1f2   : > { %v3970_v47 = vpop.f32.mrb[0].mxu0  ;;  %v5252_v45 = vpop.f32.mrb[0].mxu1 }
 0x1f3   : > { %v815_v60 = vpop.f32.mrb[1].mxu0  ;;  %v5254_v62 = vpop.f32.mrb[1].mxu1  ;;  %v824_v55 = vadd.f32 %v3970_v47, %v5248_v36 }
 0x1f4   : > { %v3971_v8 = vpop.f32.mrb[2].mxu0  ;;  %v5256_v54 = vpop.f32.mrb[2].mxu1  ;;  %v816_v35 = vadd.f32 %v815_v60, %v5244_v49 }
 0x1f5   : > { %v827_v24 = vadd.f32 %v3971_v8, %v5250_v37  ;;  %v818_v14 = vpop.f32.mrb[3].mxu0  ;;  %v5260_v23 = vpop.f32.mrb[3].mxu1 }
 0x1f6   : > { %v819_v34 = vadd.f32 %v818_v14, %v5246_v41 }
 0x1f7   : > { %v2008_v3 = vpack.c.bf16 %v827_v24, %v824_v55 }
 0x1f8   : > { %v2007_v29 = vpack.c.bf16 %v819_v34, %v816_v35 }
 0x1fa   : > { %4094 = vmatprep.mubr.msk.bf16.mxu0 %vm2031_vm1, %v2007_v29 }
 0x1fb   : > { %4095 = vmatmul.mubr.msk.bf16.vlgmr.msra.gmra.mrb[32].mxu0 %vm2031_vm1, %v2008_v3 }
 0x202   : > { %v3986_v52 = vpop.f32.mrb[4].mxu0  ;;  %v5266_v16 = vpop.f32.mrb[4].mxu1 }
 0x203   : > { %v1007_v31 = vpop.f32.mrb[5].mxu0  ;;  %v5268_v32 = vpop.f32.mrb[5].mxu1  ;;  %v1016_v33 = vadd.f32 %v3986_v52, %v5248_v36 }
 0x204   : > { %v3987_v2 = vpop.f32.mrb[6].mxu0  ;;  %v5270_v59 = vpop.f32.mrb[6].mxu1  ;;  %v1008_v51 = vadd.f32 %v1007_v31, %v5244_v49 }
 0x205   : > { %v1019_v40 = vadd.f32 %v3987_v2, %v5250_v37  ;;  %v1010_v50 = vpop.f32.mrb[7].mxu0  ;;  %v5274_v25 = vpop.f32.mrb[7].mxu1 }
 0x206   : > { %v1011_v53 = vadd.f32 %v1010_v50, %v5246_v41 }
 0x207   : > { %v2010_v58 = vpack.c.bf16 %v1019_v40, %v1016_v33 }
 0x208   : > { %v2009_v46 = vpack.c.bf16 %v1011_v53, %v1008_v51 }
 0x20a   : > { %4098 = vmatprep.mubr.msk.bf16.mxu0 %vm2031_vm1, %v2009_v46 }
 0x20b   : > { %4099 = vmatmul.mubr.msk.bf16.gmra.mrb[36].mxu0 %vm2031_vm1, %v2010_v58 }
 0x212   : > { %v4002_v19 = vpop.f32.mrb[8].mxu0  ;;  %v5280_v56 = vpop.f32.mrb[8].mxu1 }
 0x213   : > { %v1163_v18 = vpop.f32.mrb[9].mxu0  ;;  %v5282_v61 = vpop.f32.mrb[9].mxu1  ;;  %v1172_v0 = vadd.f32 %v4002_v19, %v5248_v36 }
 0x214   : > { %v4003_v42 = vpop.f32.mrb[10].mxu0  ;;  %v5284_v63 = vpop.f32.mrb[10].mxu1  ;;  %v1164_v26 = vadd.f32 %v1163_v18, %v5244_v49 }
 0x215   : > { %v1175_v17 = vadd.f32 %v4003_v42, %v5250_v37  ;;  %v1166_v44 = vpop.f32.mrb[11].mxu0  ;;  %v5288_v28 = vpop.f32.mrb[11].mxu1 }
 0x216   : > { %v1167_v21 = vadd.f32 %v1166_v44, %v5246_v41 }
 0x217   : > { %v2012_v39 = vpack.c.bf16 %v1175_v17, %v1172_v0 }
 0x218   : > { %v2011_v1 = vpack.c.bf16 %v1167_v21, %v1164_v26 }
 0x21a   : > { %4102 = vmatprep.mubr.msk.bf16.mxu0 %vm2031_vm1, %v2011_v1 }
 0x21b   : > { %4103 = vmatmul.mubr.msk.bf16.gmra.mrb[40].mxu0 %vm2031_vm1, %v2012_v39 }
 0x222   : > { %v4018_v57 = vpop.f32.mrb[12].mxu0  ;;  %v5294_v5 = vpop.f32.mrb[12].mxu1 }
 0x223   : > { %v1319_v6 = vpop.f32.mrb[13].mxu0  ;;  %v5296_v7 = vpop.f32.mrb[13].mxu1  ;;  %v1328_v30 = vadd.f32 %v4018_v57, %v5248_v36  ;;  %v4242_v57 = vld [vmem:[%s6401_s10] sm:$0xff]  }
 0x224   : > { %v4019_v15 = vpop.f32.mrb[14].mxu0  ;;  %v5298_v10 = vpop.f32.mrb[14].mxu1  ;;  %v1320_v48 = vadd.f32 %v1319_v6, %v5244_v49  ;;  %4126 = vmatprep.subr.bf16.mxu1 %v4242_v57 }
 0x225   : > { %v1331_v20 = vadd.f32 %v4019_v15, %v5250_v37  ;;  %v1322_v12 = vpop.f32.mrb[15].mxu0  ;;  %v5302_v38 = vpop.f32.mrb[15].mxu1  ;;  %4127 = vmatpush3.bf16.msra.mxu1 %v4242_v57 }
 0x226   : > { %v1323_v13 = vadd.f32 %v1322_v12, %v5246_v41 }
 0x227   : > { %v2014_v22 = vpack.c.bf16 %v1331_v20, %v1328_v30 }
 0x228   : > { %v2013_v27 = vpack.c.bf16 %v1323_v13, %v1320_v48 }
 0x22a   : > { %4106 = vmatprep.mubr.msk.bf16.mxu0 %vm2031_vm1, %v2013_v27 }
 0x22b   : > { %4107 = vmatmul.mubr.msk.bf16.gmra.mrb[44].mxu0 %vm2031_vm1, %v2014_v22 }
 0x232   : > { %v4034_v9 = vpop.f32.mrb[16].mxu0  ;;  %v5308_v43 = vpop.f32.mrb[16].mxu1 }
 0x233   : > { %v1475_v4 = vpop.f32.mrb[17].mxu0  ;;  %v5310_v11 = vpop.f32.mrb[17].mxu1  ;;  %v1484_v8 = vadd.f32 %v4034_v9, %v5248_v36 }
 0x234   : > { %v4035_v47 = vpop.f32.mrb[18].mxu0  ;;  %v5312_v60 = vpop.f32.mrb[18].mxu1  ;;  %v1476_v35 = vadd.f32 %v1475_v4, %v5244_v49 }
 0x235   : > { %v1487_v55 = vadd.f32 %v4035_v47, %v5250_v37  ;;  %v1478_v24 = vpop.f32.mrb[19].mxu0  ;;  %v5316_v14 = vpop.f32.mrb[19].mxu1 }
 0x236   : > { %v1479_v34 = vadd.f32 %v1478_v24, %v5246_v41 }
 0x237   : > { %v2016_v3 = vpack.c.bf16 %v1487_v55, %v1484_v8 }
 0x238   : > { %v2015_v29 = vpack.c.bf16 %v1479_v34, %v1476_v35 }
 0x23a   : > { %4110 = vmatprep.mubr.msk.bf16.mxu0 %vm2031_vm1, %v2015_v29 }
 0x23b   : > { %4111 = vmatmul.mubr.msk.bf16.gmra.mrb[48].mxu0 %vm2031_vm1, %v2016_v3 }
 0x242   : > { %v4050_v52 = vpop.f32.mrb[20].mxu0  ;;  %v5322_v31 = vpop.f32.mrb[20].mxu1 }
 0x243   : > { %v1631_v2 = vpop.f32.mrb[21].mxu0  ;;  %v5324_v33 = vpop.f32.mrb[21].mxu1  ;;  %v1640_v51 = vadd.f32 %v4050_v52, %v5248_v36 }
 0x244   : > { %v4051_v40 = vpop.f32.mrb[22].mxu0  ;;  %v5326_v50 = vpop.f32.mrb[22].mxu1  ;;  %v1632_v19 = vadd.f32 %v1631_v2, %v5244_v49 }
 0x245   : > { %v1643_v53 = vadd.f32 %v4051_v40, %v5250_v37  ;;  %v1634_v58 = vpop.f32.mrb[23].mxu0  ;;  %v5330_v46 = vpop.f32.mrb[23].mxu1 }
 0x246   : > { %v1635_v18 = vadd.f32 %v1634_v58, %v5246_v41 }
 0x247   : > { %v2018_v42 = vpack.c.bf16 %v1643_v53, %v1640_v51 }
 0x248   : > { %v2017_v0 = vpack.c.bf16 %v1635_v18, %v1632_v19 }
 0x24a   : > { %4114 = vmatprep.mubr.msk.bf16.mxu0 %vm2031_vm1, %v2017_v0 }
 0x24b   : > { %4115 = vmatmul.mubr.msk.bf16.gmra.mrb[52].mxu0 %vm2031_vm1, %v2018_v42 }
 0x252   : > { %v4066_v17 = vpop.f32.mrb[24].mxu0  ;;  %v5336_v44 = vpop.f32.mrb[24].mxu1 }
 0x253   : > { %6474 = vst [vmem:[#allocation2_spill] sm:$0xff] %v5336_v44  ;;  %v1787_v26 = vpop.f32.mrb[25].mxu0  ;;  %v5338_v21 = vpop.f32.mrb[25].mxu1  ;;  %v1796_v6 = vadd.f32 %v4066_v17, %v5248_v36 }
 0x254   : > { %6475 = vst [vmem:[#allocation3_spill] sm:$0xff] %v5338_v21  ;;  %v4067_v39 = vpop.f32.mrb[26].mxu0  ;;  %v5340_v1 = vpop.f32.mrb[26].mxu1  ;;  %v1788_v12 = vadd.f32 %v1787_v26, %v5244_v49 }
 0x255   : > { %6476 = vst [vmem:[#allocation6_spill] sm:$0xff] %v5340_v1  ;;  %v1799_v15 = vadd.f32 %v4067_v39, %v5250_v37  ;;  %v1790_v30 = vpop.f32.mrb[27].mxu0  ;;  %v5347_v20 = vpop.f32.mrb[27].mxu1 }
 0x256   : > { %6477 = vst [vmem:[#allocation4_spill] sm:$0xff] %v5347_v20  ;;  %v1791_v13 = vadd.f32 %v1790_v30, %v5246_v41 }
 0x257   : > { %v2020_v48 = vpack.c.bf16 %v1799_v15, %v1796_v6  ;;  %v2247_v6 = vld [vmem:[%s6402_s11 + $0x30] sm:$0xff]  ;;  %v2248_v15 = vld [vmem:[%s6402_s11 + $0x38] sm:$0xff] }
 0x258   : > { %v2019_v22 = vpack.c.bf16 %v1791_v13, %v1788_v12  ;;  %v2245_v12 = vld [vmem:[%s6402_s11 + $0x20] sm:$0xff]  ;;  %v2246_v13 = vld [vmem:[%s6402_s11 + $0x28] sm:$0xff] }
 0x25a   : > { %4118 = vmatprep.mubr.msk.bf16.mxu0 %vm2031_vm1, %v2019_v22 }
 0x25b   : > { %4119 = vmatmul.mubr.msk.bf16.gmra.mrb[56].mxu0 %vm2031_vm1, %v2020_v48 }
 0x262   : > { %v4082_v27 = vpop.f32.mrb[28].mxu0  ;;  %v5353_v9 = vpop.f32.mrb[28].mxu1 }
 0x263   : > { %6478 = vst [vmem:[#allocation5_spill] sm:$0xff] %v5353_v9  ;;  %v1943_v4 = vpop.f32.mrb[29].mxu0  ;;  %v5355_v47 = vpop.f32.mrb[29].mxu1  ;;  %v1952_v24 = vadd.f32 %v4082_v27, %v5248_v36  ;;  %v2243_v36 = vld [vmem:[%s6402_s11 + $0x10] sm:$0xff] }
 0x264   : > { %6479 = vst [vmem:[#allocation7_spill] sm:$0xff] %v5355_v47  ;;  %v4083_v8 = vpop.f32.mrb[30].mxu0  ;;  %v5357_v55 = vpop.f32.mrb[30].mxu1  ;;  %v1944_v29 = vadd.f32 %v1943_v4, %v5244_v49  ;;  %v2241_v49 = vld [vmem:[%s6402_s11] sm:$0xff] }
 0x265   : > { %6480 = vst [vmem:[#allocation8_spill] sm:$0xff] %v5357_v55  ;;  %v1955_v35 = vadd.f32 %v4083_v8, %v5250_v37  ;;  %v1946_v34 = vpop.f32.mrb[31].mxu0  ;;  %v5361_v3 = vpop.f32.mrb[31].mxu1  ;;  %v2244_v37 = vld [vmem:[%s6402_s11 + $0x18] sm:$0xff] }
 0x266   : > { %6481 = vst [vmem:[#allocation9_spill] sm:$0xff] %v5361_v3  ;;  %v1947_v52 = vadd.f32 %v1946_v34, %v5246_v41  ;;  %v2242_v41 = vld [vmem:[%s6402_s11 + $0x8] sm:$0xff] }
 0x267   : > { %v2022_v2 = vpack.c.bf16 %v1955_v35, %v1952_v24 }
 0x268   : > { %v2021_v40 = vpack.c.bf16 %v1947_v52, %v1944_v29  ;;  %v2251_v52 = vld [vmem:[%s6402_s11 + $0x50] sm:$0xff] }
 0x26a   : > { %4122 = vmatprep.mubr.msk.bf16.mxu0 %vm2031_vm1, %v2021_v40 }
 0x26b   : > { %4123 = vmatmul.mubr.msk.bf16.gmra.mrb[60].mxu0 %vm2031_vm1, %v2022_v2  ;;  %v2252_v2 = vld [vmem:[%s6402_s11 + $0x58] sm:$0xff] }
 0x2ce   : > { %v4096_v51 = vpop.f32.mrb[32].mxu0 }
 0x2cf   : > { %v2114_v53 = vpop.f32.mrb[33].mxu0  ;;  %v2275_v19 = vmul.f32 %v4096_v51, %v2243_v36  ;;  %v2249_v51 = vld [vmem:[%s6402_s11 + $0x40] sm:$0xff]  ;;  %v2250_v36 = vld [vmem:[%s6402_s11 + $0x48] sm:$0xff] }
 0x2d0   : > { %v4097_v58 = vpop.f32.mrb[34].mxu0  ;;  %v2273_v0 = vmul.f32 %v2241_v49, %v2114_v53 }
 0x2d1   : > { %v2276_v18 = vmul.f32 %v4097_v58, %v2244_v37  ;;  %v2117_v42 = vpop.f32.mrb[35].mxu0 }
 0x2d2   : > { %v2274_v17 = vmul.f32 %v2242_v41, %v2117_v42 }
 0x2d3   : > { %v2306_v26 = vpack.c.bf16 %v2276_v18, %v2275_v19 }
 0x2d4   : > { %v2305_v39 = vpack.c.bf16 %v2274_v17, %v2273_v0  ;;  %v2255_v17 = vld [vmem:[%s6402_s11 + $0x70] sm:$0xff] }
 0x2d6   : > { %4128 = vmatprep.mubr.msk.bf16.mxu1 %vm2031_vm1, %v2305_v39 }
 0x2d7   : > { %4129 = vmatmul.mubr.msk.bf16.vlgmr.msra.gmra.mrb[32].mxu1 %vm2031_vm1, %v2306_v26  ;;  %v2256_v26 = vld [vmem:[%s6402_s11 + $0x78] sm:$0xff] }
 0x2de   : > { %v4100_v57 = vpop.f32.mrb[36].mxu0 }
 0x2df   : > { %v2130_v30 = vpop.f32.mrb[37].mxu0  ;;  %v2279_v22 = vmul.f32 %v4100_v57, %v2247_v6  ;;  %v2253_v57 = vld [vmem:[%s6402_s11 + $0x60] sm:$0xff]  ;;  %v2254_v6 = vld [vmem:[%s6402_s11 + $0x68] sm:$0xff] }
 0x2e0   : > { %v4101_v48 = vpop.f32.mrb[38].mxu0  ;;  %v2277_v8 = vmul.f32 %v2245_v12, %v2130_v30 }
 0x2e1   : > { %v2280_v27 = vmul.f32 %v4101_v48, %v2248_v15  ;;  %v2133_v4 = vpop.f32.mrb[39].mxu0 }
 0x2e2   : > { %v2278_v24 = vmul.f32 %v2246_v13, %v2133_v4 }
 0x2e3   : > { %v2308_v35 = vpack.c.bf16 %v2280_v27, %v2279_v22 }
 0x2e4   : > { %v2307_v34 = vpack.c.bf16 %v2278_v24, %v2277_v8  ;;  %v2259_v24 = vld [vmem:[%s6402_s11 + $0x90] sm:$0xff] }
 0x2e6   : > { %4132 = vmatprep.mubr.msk.bf16.mxu1 %vm2031_vm1, %v2307_v34 }
 0x2e7   : > { %4133 = vmatmul.mubr.msk.bf16.gmra.mrb[36].mxu1 %vm2031_vm1, %v2308_v35  ;;  %v2260_v35 = vld [vmem:[%s6402_s11 + $0x98] sm:$0xff] }
 0x2ee   : > { %v4104_v29 = vpop.f32.mrb[40].mxu0 }
 0x2ef   : > { %v2146_v40 = vpop.f32.mrb[41].mxu0  ;;  %v2283_v53 = vmul.f32 %v4104_v29, %v2251_v52  ;;  %v2257_v29 = vld [vmem:[%s6402_s11 + $0x80] sm:$0xff]  ;;  %v2258_v52 = vld [vmem:[%s6402_s11 + $0x88] sm:$0xff] }
 0x2f0   : > { %v4105_v37 = vpop.f32.mrb[42].mxu0  ;;  %v2281_v58 = vmul.f32 %v2249_v51, %v2146_v40 }
 0x2f1   : > { %v2284_v49 = vmul.f32 %v4105_v37, %v2252_v2  ;;  %v2149_v41 = vpop.f32.mrb[43].mxu0 }
 0x2f2   : > { %v2282_v19 = vmul.f32 %v2250_v36, %v2149_v41 }
 0x2f3   : > { %v2310_v18 = vpack.c.bf16 %v2284_v49, %v2283_v53 }
 0x2f4   : > { %v2309_v42 = vpack.c.bf16 %v2282_v19, %v2281_v58  ;;  %v2263_v19 = vld [vmem:[%s6402_s11 + $0xb0] sm:$0xff] }
 0x2f6   : > { %4136 = vmatprep.mubr.msk.bf16.mxu1 %vm2031_vm1, %v2309_v42 }
 0x2f7   : > { %4137 = vmatmul.mubr.msk.bf16.gmra.mrb[40].mxu1 %vm2031_vm1, %v2310_v18  ;;  %v2264_v18 = vld [vmem:[%s6402_s11 + $0xb8] sm:$0xff] }
 0x2fe   : > { %v4108_v0 = vpop.f32.mrb[44].mxu0 }
 0x2ff   : > { %v2162_v39 = vpop.f32.mrb[45].mxu0  ;;  %v2287_v30 = vmul.f32 %v4108_v0, %v2255_v17  ;;  %v2261_v0 = vld [vmem:[%s6402_s11 + $0xa0] sm:$0xff]  ;;  %v2262_v17 = vld [vmem:[%s6402_s11 + $0xa8] sm:$0xff] }
 0x300   : > { %v4109_v15 = vpop.f32.mrb[46].mxu0  ;;  %v2285_v48 = vmul.f32 %v2253_v57, %v2162_v39 }
 0x301   : > { %v2288_v12 = vmul.f32 %v4109_v15, %v2256_v26  ;;  %v2165_v13 = vpop.f32.mrb[47].mxu0 }
 0x302   : > { %v2286_v22 = vmul.f32 %v2254_v6, %v2165_v13 }
 0x303   : > { %v2312_v27 = vpack.c.bf16 %v2288_v12, %v2287_v30 }
 0x304   : > { %v2311_v4 = vpack.c.bf16 %v2286_v22, %v2285_v48  ;;  %v2267_v22 = vld [vmem:[%s6402_s11 + $0xd0] sm:$0xff] }
 0x306   : > { %4140 = vmatprep.mubr.msk.bf16.mxu1 %vm2031_vm1, %v2311_v4 }
 0x307   : > { %4141 = vmatmul.mubr.msk.bf16.gmra.mrb[44].mxu1 %vm2031_vm1, %v2312_v27  ;;  %v2268_v27 = vld [vmem:[%s6402_s11 + $0xd8] sm:$0xff] }
 0x30e   : > { %v4112_v8 = vpop.f32.mrb[48].mxu0 }
 0x30f   : > { %v2178_v34 = vpop.f32.mrb[49].mxu0  ;;  %v2291_v40 = vmul.f32 %v4112_v8, %v2259_v24  ;;  %v2265_v8 = vld [vmem:[%s6402_s11 + $0xc0] sm:$0xff]  ;;  %v2266_v24 = vld [vmem:[%s6402_s11 + $0xc8] sm:$0xff] }
 0x310   : > { %v4113_v2 = vpop.f32.mrb[50].mxu0  ;;  %v2289_v37 = vmul.f32 %v2257_v29, %v2178_v34 }
 0x311   : > { %v2292_v51 = vmul.f32 %v4113_v2, %v2260_v35  ;;  %v2181_v36 = vpop.f32.mrb[51].mxu0 }
 0x312   : > { %v2290_v53 = vmul.f32 %v2258_v52, %v2181_v36 }
 0x313   : > { %v2314_v49 = vpack.c.bf16 %v2292_v51, %v2291_v40 }
 0x314   : > { %v2313_v41 = vpack.c.bf16 %v2290_v53, %v2289_v37  ;;  %v2271_v53 = vld [vmem:[%s6402_s11 + $0xf0] sm:$0xff] }
 0x316   : > { %4144 = vmatprep.mubr.msk.bf16.mxu1 %vm2031_vm1, %v2313_v41 }
 0x317   : > { %4145 = vmatmul.mubr.msk.bf16.gmra.mrb[48].mxu1 %vm2031_vm1, %v2314_v49  ;;  %v2272_v49 = vld [vmem:[%s6402_s11 + $0xf8] sm:$0xff] }
 0x31e   : > { %v4116_v58 = vpop.f32.mrb[52].mxu0 }
 0x31f   : > { %v2194_v42 = vpop.f32.mrb[53].mxu0  ;;  %v2295_v39 = vmul.f32 %v4116_v58, %v2263_v19  ;;  %v2269_v58 = vld [vmem:[%s6402_s11 + $0xe0] sm:$0xff]  ;;  %v2270_v19 = vld [vmem:[%s6402_s11 + $0xe8] sm:$0xff] }
 0x320   : > { %v4117_v26 = vpop.f32.mrb[54].mxu0  ;;  %v2293_v15 = vmul.f32 %v2261_v0, %v2194_v42 }
 0x321   : > { %v2296_v57 = vmul.f32 %v4117_v26, %v2264_v18  ;;  %v2197_v6 = vpop.f32.mrb[55].mxu0 }
 0x322   : > { %v2294_v30 = vmul.f32 %v2262_v17, %v2197_v6 }
 0x323   : > { %v2316_v12 = vpack.c.bf16 %v2296_v57, %v2295_v39 }
 0x324   : > { %v2315_v13 = vpack.c.bf16 %v2294_v30, %v2293_v15  ;;  %v5482_v15 = vld [vmem:[%s6405_s14] sm:$0xff]   ;;  %v5488_v30 = vpop.permute.xlu0 %832 }
 0x325   : > { %6482 = vst [vmem:[#allocation10_spill] sm:$0xff] %v5482_v15  ;;  %4164 = vmatprep.mubr.msk.bf16.mxu0 %vm774_vm0, %v5482_v15 }
 0x326   : > { %4148 = vmatprep.mubr.msk.bf16.mxu1 %vm2031_vm1, %v2315_v13 }
 0x327   : > { %4149 = vmatmul.mubr.msk.bf16.gmra.mrb[52].mxu1 %vm2031_vm1, %v2316_v12  ;;  %v5490_v12 = vpop.permute.xlu1 %837 }
 0x328   : > { %6483 = vst [vmem:[#allocation13_spill] sm:$0xff] %v5490_v12  ;;  %v5492_v13 = vpop.permute.xlu0 %842 }
 0x329   : > { %v5614_v55 = vadd.f32 %v5308_v43, %v5492_v13 }
 0x32b   : > { %6484 = vst [vmem:[#allocation14_spill] sm:$0xff] %v5614_v55 }
 0x32e   : > { %v4120_v48 = vpop.f32.mrb[56].mxu0 }
 0x32f   : > { %v2210_v4 = vpop.f32.mrb[57].mxu0  ;;  %v2299_v34 = vmul.f32 %v4120_v48, %v2267_v22  ;;  %v5496_v48 = vadd.f32 %v5252_v45, %v5492_v13  ;;  %v5498_v22 = vpop.permute.xlu1 %847  ;;  %v5513_v45 = vadd.f32 %v5260_v23, %v5490_v12  ;;  %v5530_v23 = vadd.f32 %v5274_v25, %v5490_v12 }
 0x330   : > { %v4121_v35 = vpop.f32.mrb[58].mxu0  ;;  %v2297_v2 = vmul.f32 %v2265_v8, %v2210_v4  ;;  %v5507_v8 = vadd.f32 %v5256_v54, %v5498_v22 }
 0x331   : > { %v2300_v29 = vmul.f32 %v4121_v35, %v2268_v27  ;;  %v2213_v52 = vpop.f32.mrb[59].mxu0  ;;  %v5502_v27 = vadd.f32 %v5254_v62, %v5488_v30  ;;  %v2631_v4 = vsub.f32 0.0, %v5496_v48  ;;  %v2795_v25 = vsub.f32 0.0, %v5530_v23 }
 0x332   : > { %v2298_v40 = vmul.f32 %v2266_v24, %v2213_v52  ;;  %v5521_v52 = vadd.f32 %v5268_v32, %v5488_v30  ;;  %v5536_v32 = vadd.f32 %v5280_v56, %v5492_v13 }
 0x333   : > { %v2318_v51 = vpack.c.bf16 %v2300_v29, %v2299_v34  ;;  %v2629_v24 = vsub.f32 0.0, %v5502_v27  ;;  %v2637_v35 = vmul.f32 1.442695, %v2631_v4  ;;  %v2632_v34 = vsub.f32 0.0, %v5507_v8 }
 0x334   : > { %v2317_v36 = vpack.c.bf16 %v2298_v40, %v2297_v2  ;;  %v5517_v29 = vadd.f32 %v5266_v16, %v5492_v13  ;;  %v2630_v2 = vsub.f32 0.0, %v5513_v45  ;;  %v5526_v40 = vadd.f32 %v5270_v59, %v5498_v22 }
 0x335   : > { %v2633_v62 = vmul.f32 1.442695, %v2629_v24  ;;  %4245 = vpow2.f32 %v2637_v35  ;;  %v2639_v54 = vmul.f32 1.442695, %v2632_v34  ;;  %v5541_v59 = vadd.f32 %v5282_v61, %v5488_v30 }
 0x336   : > { %4152 = vmatprep.mubr.msk.bf16.mxu1 %vm2031_vm1, %v2317_v36  ;;  %v2796_v16 = vsub.f32 0.0, %v5517_v29  ;;  %v2635_v36 = vmul.f32 1.442695, %v2630_v2  ;;  %v5567_v4 = vadd.f32 %v5296_v7, %v5488_v30 }
 0x337   : > { %4153 = vmatmul.mubr.msk.bf16.gmra.mrb[56].mxu1 %vm2031_vm1, %v2318_v51  ;;  %4247 = vpow2.f32 %v2633_v62  ;;  %v2794_v51 = vsub.f32 0.0, %v5521_v52 }
 0x338   : > { %4249 = vpow2.f32 %v2639_v54 }
 0x339   : > { %4251 = vpow2.f32 %v2635_v36  ;;  %v5583_v36 = vadd.f32 %v5302_v38, %v5490_v12 }
 0x33e   : > { %v4124_v37 = vpop.f32.mrb[60].mxu0 }
 0x33f   : > { %v2226_v41 = vpop.f32.mrb[61].mxu0  ;;  %v2303_v42 = vmul.f32 %v4124_v37, %v2271_v53  ;;  %v2797_v37 = vsub.f32 0.0, %v5526_v40  ;;  %v2802_v53 = vmul.f32 1.442695, %v2796_v16  ;;  %v5578_v16 = vadd.f32 %v5298_v10, %v5498_v22 }
 0x340   : > { %v4125_v18 = vpop.f32.mrb[62].mxu0  ;;  %v2301_v26 = vmul.f32 %v2269_v58, %v2226_v41  ;;  %v2798_v41 = vmul.f32 1.442695, %v2794_v51  ;;  %v2925_v58 = vsub.f32 0.0, %v5536_v32 }
 0x341   : > { %v2304_v0 = vmul.f32 %v4125_v18, %v2272_v49  ;;  %v2229_v17 = vpop.f32.mrb[63].mxu0  ;;  %v5546_v49 = vadd.f32 %v5284_v63, %v5498_v22  ;;  %v2804_v56 = vmul.f32 1.442695, %v2797_v37  ;;  %v2800_v18 = vmul.f32 1.442695, %v2795_v25 }
 0x342   : > { %v2302_v39 = vmul.f32 %v2270_v19, %v2229_v17  ;;  %v2923_v19 = vsub.f32 0.0, %v5541_v59  ;;  %4253 = vpow2.f32 %v2802_v53  ;;  %v5555_v17 = vadd.f32 %v5288_v28, %v5490_v12 }
 0x343   : > { %v2320_v57 = vpack.c.bf16 %v2304_v0, %v2303_v42  ;;  %v4246_v0 = vpop.eup %4245  ;;  %v2926_v61 = vsub.f32 0.0, %v5546_v49  ;;  %4255 = vpow2.f32 %v2798_v41  ;;  %v3052_v53 = vsub.f32 0.0, %v5567_v4 }
 0x344   : > { %v2319_v6 = vpack.c.bf16 %v2302_v39, %v2301_v26  ;;  %v2931_v26 = vmul.f32 1.442695, %v2925_v58  ;;  %v5561_v39 = vadd.f32 %v5294_v5, %v5492_v13  ;;  %4257 = vpow2.f32 %v2804_v56  ;;  %v4248_v28 = vpop.eup %4247 }
 0x345   : > { %v2643_v35 = vadd.f32 1.0, %v4246_v0  ;;  %4259 = vpow2.f32 %v2800_v18  ;;  %v4250_v62 = vpop.eup %4249  ;;  %v2933_v54 = vmul.f32 1.442695, %v2926_v61  ;;  %v2924_v2 = vsub.f32 0.0, %v5555_v17 }
 0x346   : > { %4156 = vmatprep.mubr.msk.bf16.mxu1 %vm2031_vm1, %v2319_v6  ;;  %v2927_v6 = vmul.f32 1.442695, %v2923_v19  ;;  %4261 = vpow2.f32 %v2931_v26  ;;  %v3054_v51 = vsub.f32 0.0, %v5561_v39  ;;  %v2641_v25 = vadd.f32 1.0, %v4248_v28  ;;  %v4252_v56 = vpop.eup %4251 }
 0x347   : > { %4157 = vmatmul.mubr.msk.bf16.gmra.mrb[60].mxu1 %vm2031_vm1, %v2320_v57  ;;  %v2644_v58 = vadd.f32 1.0, %v4250_v62  ;;  %v2929_v19 = vmul.f32 1.442695, %v2924_v2  ;;  %v3055_v18 = vsub.f32 0.0, %v5578_v16  ;;  %v3053_v61 = vsub.f32 0.0, %v5583_v36 }
 0x348   : > { %4172 = vmatprep.mubr.msk.bf16.mxu1 %vm774_vm0, %v5482_v15  ;;  %4263 = vpow2.f32 %v2927_v6  ;;  %v3060_v38 = vmul.f32 1.442695, %v3054_v51  ;;  %v3056_v6 = vmul.f32 1.442695, %v3052_v53 }
 0x349   : > { %4265 = vpow2.f32 %v2933_v54  ;;  %v3058_v2 = vmul.f32 1.442695, %v3053_v61 }
 0x34a   : > { %4267 = vrcp.f32 %v2643_v35 }
 0x34b   : > { %4269 = vrcp.f32 %v2641_v25 }
 0x34c   : > { %v4254_v26 = vpop.eup %4253  ;;  %4271 = vrcp.f32 %v2644_v58 }
 0x34d   : > { %4273 = vpow2.f32 %v2929_v19  ;;  %v2808_v3 = vadd.f32 1.0, %v4254_v26 }
 0x34e   : > { %4275 = vpow2.f32 %v3060_v38 }
 0x34f   : > { %4277 = vpow2.f32 %v3056_v6 }
 0x3aa   : > { %v5550_v42 = vpop.f32.mrb[32].mxu1 }
 0x3ab   : > { %v5557_v63 = vpop.f32.mrb[33].mxu1  ;;  %v2541_v37 = vsel %vm2031_vm1, %v5550_v42, 0.0 }
 0x3ac   : > { %v5563_v57 = vpop.f32.mrb[34].mxu1  ;;  %v2538_v34 = vsel %vm2031_vm1, %v5557_v63, 0.0 }
 0x3ad   : > { %v5569_v24 = vpop.f32.mrb[35].mxu1  ;;  %v2543_v10 = vsel %vm2031_vm1, %v5563_v57, 0.0 }
 0x3ae   : > { %v2539_v5 = vsel %vm2031_vm1, %v5569_v24, 0.0 }
 0x3af   : > { %v2540_v7 = vadd.f32 %v2539_v5, %v2538_v34  ;;  %v4256_v34 = vpop.eup %4255  ;;  %v2642_v5 = vadd.f32 1.0, %v4252_v56 }
 0x3b0   : > { %v4258_v62 = vpop.eup %4257 }
 0x3b1   : > { %v2542_v41 = vadd.f32 %v2541_v37, %v2540_v7  ;;  %v3062_v7 = vmul.f32 1.442695, %v3055_v18  ;;  %v4260_v54 = vpop.eup %4259  ;;  %4279 = vrcp.f32 %v2642_v5  ;;  %v2809_v53 = vadd.f32 1.0, %v4258_v62 }
 0x3b2   : > { %v4262_v51 = vpop.eup %4261  ;;  %v2807_v19 = vadd.f32 1.0, %v4260_v54 }
 0x3b3   : > { %v2544_v0 = vadd.f32 %v2543_v10, %v2542_v41  ;;  %v2806_v41 = vadd.f32 1.0, %v4256_v34  ;;  %v4264_v25 = vpop.eup %4263  ;;  %4281 = vpow2.f32 %v3062_v7  ;;  %v2937_v38 = vadd.f32 1.0, %v4262_v51 }
 0x3b4   : > { %4283 = vpow2.f32 %v3058_v2 }
 0x3b5   : > { %v2545_v28 = vrot.slane %v2544_v0, 4  ;;  %4285 = vrcp.f32 %v2808_v3 }
 0x3b6   : > { %4287 = vrcp.f32 %v2806_v41 }
 0x3b7   : > { %v2546_v37 = vadd.f32 %v2545_v28, %v2544_v0  ;;  %v4266_v0 = vpop.eup %4265  ;;  %v2935_v28 = vadd.f32 1.0, %v4264_v25  ;;  %4289 = vrcp.f32 %v2809_v53 }
 0x3b8   : > { %v5600_v6 = vpop.eup %4267  ;;  %4291 = vrcp.f32 %v2807_v19  ;;  %v2938_v54 = vadd.f32 1.0, %v4266_v0 }
 0x3b9   : > { %v2547_v35 = vrot.slane %v2546_v37, 2  ;;  %v5606_v62 = vpop.eup %4269  ;;  %4293 = vrcp.f32 %v2937_v38 }
 0x3ba   : > { %v5592_v10 = vpop.f32.mrb[36].mxu1  ;;  %v5608_v3 = vpop.eup %4271  ;;  %4295 = vrcp.f32 %v2935_v28 }
 0x3bb   : > { %v2548_v58 = vadd.f32 %v2547_v35, %v2546_v37  ;;  %v5594_v56 = vpop.f32.mrb[37].mxu1  ;;  %v2747_v2 = vsel %vm2031_vm1, %v5592_v10, 0.0  ;;  %v4274_v35 = vpop.eup %4273  ;;  %4297 = vrcp.f32 %v2938_v54 }
 0x3bc   : > { %v5596_v18 = vpop.f32.mrb[38].mxu1  ;;  %v2744_v34 = vsel %vm2031_vm1, %v5594_v56, 0.0  ;;  %v4276_v25 = vpop.eup %4275  ;;  %v2936_v43 = vadd.f32 1.0, %v4274_v35 }
 0x3bd   : > { %v2549_v61 = vrot.slane %v2548_v58, 1  ;;  %v5598_v26 = vpop.f32.mrb[39].mxu1  ;;  %v2749_v53 = vsel %vm2031_vm1, %v5596_v18, 0.0  ;;  %v3066_v54 = vadd.f32 1.0, %v4276_v25 }
 0x3be   : > { %v2745_v5 = vsel %vm2031_vm1, %v5598_v26, 0.0  ;;  %4299 = vrcp.f32 %v2936_v43 }
 0x3bf   : > { %v2550_v7 = vadd.f32 %v2549_v61, %v2548_v58  ;;  %v2746_v37 = vadd.f32 %v2745_v5, %v2744_v34  ;;  %v4278_v58 = vpop.eup %4277  ;;  %v5634_v34 = vadd.f32 %v5310_v11, %v5488_v30  ;;  %v3183_v11 = vsub.f32 0.0, %v5614_v55 }
 0x3c0   : > { %v5630_v28 = vpop.eup %4279  ;;  %4301 = vrcp.f32 %v3066_v54  ;;  %v5668_v54 = vmul.f32 %v5600_v6, %v5496_v48  ;;  %v5682_v48 = vmul.f32 %v5608_v3, %v5507_v8 }
 0x3c1   : > { %v2552_v51 = vmul.f32 0.03125, %v2550_v7  ;;  %v2748_v41 = vadd.f32 %v2747_v2, %v2746_v37  ;;  %6487 = vst [vmem:[#allocation15_spill] sm:$0xff] %v5634_v34  ;;  %v3064_v2 = vadd.f32 1.0, %v4278_v58  ;;  %v3181_v25 = vsub.f32 0.0, %v5634_v34 }
 0x3c3   : > { %v5619_v19 = vsub.f32 %v5557_v63, %v2552_v51  ;;  %v5622_v0 = vsub.f32 %v5569_v24, %v2552_v51  ;;  %v5625_v38 = vsub.f32 %v5550_v42, %v2552_v51  ;;  %v5628_v61 = vsub.f32 %v5563_v57, %v2552_v51  ;;  %v4282_v63 = vpop.eup %4281 }
 0x3c4   : > { %v2750_v5 = vadd.f32 %v2749_v53, %v2748_v41  ;;  %v5638_v24 = vadd.f32 %v5312_v60, %v5498_v22  ;;  %v4284_v37 = vpop.eup %4283  ;;  %v5649_v60 = vadd.f32 %v5316_v14, %v5490_v12  ;;  %v3067_v15 = vadd.f32 1.0, %v4282_v63 }
 0x3c5   : > { %6485 = vst [vmem:[#allocation11_spill] sm:$0xff] %v5625_v38  ;;  %6486 = vst [vmem:[#allocation12_spill] sm:$0xff] %v5628_v61  ;;  %v2557_v42 = vmul.f32 %v5619_v19, %v5619_v19  ;;  %v2558_v57 = vmul.f32 %v5622_v0, %v5622_v0  ;;  %v2559_v7 = vmul.f32 %v5625_v38, %v5625_v38  ;;  %v4286_v51 = vpop.eup %4285  ;;  %v3065_v21 = vadd.f32 1.0, %v4284_v37 }
 0x3c6   : > { %v2751_v35 = vrot.slane %v2750_v5, 4  ;;  %v2560_v41 = vmul.f32 %v5628_v61, %v5628_v61  ;;  %v4288_v9 = vpop.eup %4287  ;;  %v3184_v44 = vsub.f32 0.0, %v5638_v24  ;;  %4303 = vrcp.f32 %v3064_v2 }
 0x3c7   : > { %v2561_v53 = vsel %vm2031_vm1, %v2557_v42, 0.0  ;;  %v2562_v47 = vsel %vm2031_vm1, %v2558_v57, 0.0  ;;  %v4290_v1 = vpop.eup %4289  ;;  %v2564_v14 = vsel %vm2031_vm1, %v2559_v7, 0.0  ;;  %v3189_v63 = vmul.f32 1.442695, %v3183_v11 }
 0x3c8   : > { %v2563_v58 = vadd.f32 %v2562_v47, %v2561_v53  ;;  %v2752_v20 = vadd.f32 %v2751_v35, %v2750_v5  ;;  %v4292_v55 = vpop.eup %4291  ;;  %v3182_v34 = vsub.f32 0.0, %v5649_v60  ;;  %v2566_v47 = vsel %vm2031_vm1, %v2560_v41, 0.0 }
 0x3c9   : > { %v4294_v57 = vpop.eup %4293  ;;  %4305 = vrcp.f32 %v3067_v15  ;;  %v3185_v37 = vmul.f32 1.442695, %v3181_v25  ;;  %v5672_v2 = vmul.f32 %v5606_v62, %v5502_v27  ;;  %v3191_v11 = vmul.f32 1.442695, %v3184_v44 }
 0x3ca   : > { %v2565_v61 = vadd.f32 %v2564_v14, %v2563_v58  ;;  %v2753_v38 = vrot.slane %v2752_v20, 2  ;;  %v5658_v42 = vpop.f32.mrb[40].mxu1  ;;  %v4296_v43 = vpop.eup %4295  ;;  %4307 = vrcp.f32 %v3065_v21  ;;  %v3187_v27 = vmul.f32 1.442695, %v3182_v34 }
 0x3cb   : > { %v5662_v5 = vpop.f32.mrb[41].mxu1  ;;  %v4298_v58 = vpop.eup %4297  ;;  %4309 = vpow2.f32 %v3189_v63  ;;  %v2876_v62 = vsel %vm2031_vm1, %v5658_v42, 0.0  ;;  %v5691_v25 = vmul.f32 %v4286_v51, %v5517_v29  ;;  %v5694_v8 = vmul.f32 %v4288_v9, %v5521_v52 }
 0x3cc   : > { %v2567_v35 = vadd.f32 %v2566_v47, %v2565_v61  ;;  %v2754_v7 = vadd.f32 %v2753_v38, %v2752_v20  ;;  %v5664_v53 = vpop.f32.mrb[42].mxu1  ;;  %v2873_v20 = vsel %vm2031_vm1, %v5662_v5, 0.0  ;;  %4311 = vpow2.f32 %v3185_v37  ;;  %v4300_v37 = vpop.eup %4299 }
 0x3cd   : > { %v5674_v41 = vpop.f32.mrb[43].mxu1  ;;  %v5688_v61 = vmul.f32 %v5630_v28, %v5513_v45  ;;  %4313 = vpow2.f32 %v3191_v11  ;;  %v2878_v63 = vsel %vm2031_vm1, %v5664_v53, 0.0  ;;  %v5702_v45 = vmul.f32 %v4292_v55, %v5530_v23  ;;  %v4302_v28 = vpop.eup %4301 }
 0x3ce   : > { %v2568_v14 = vrot.slane %v2567_v35, 4  ;;  %v2755_v15 = vrot.slane %v2754_v7, 1  ;;  %v2874_v38 = vsel %vm2031_vm1, %v5674_v41, 0.0  ;;  %4315 = vpow2.f32 %v3187_v27 }
 0x3cf   : > { %v2875_v6 = vadd.f32 %v2874_v38, %v2873_v20  ;;  %v5718_v55 = vadd.f32 %v5322_v31, %v5492_v13  ;;  %v5733_v31 = vmul.f32 %v4298_v58, %v5546_v49 }
 0x3d0   : > { %v2569_v44 = vadd.f32 %v2568_v14, %v2567_v35  ;;  %v2756_v21 = vadd.f32 %v2755_v15, %v2754_v7  ;;  %v5699_v35 = vmul.f32 %v4290_v1, %v5526_v40  ;;  %v4304_v11 = vpop.eup %4303  ;;  %v5714_v1 = vmul.f32 %v4294_v57, %v5536_v32 }
 0x3d1   : > { %v2877_v47 = vadd.f32 %v2876_v62, %v2875_v6  ;;  %6489 = vst [vmem:[#allocation17_spill] sm:$0xff] %v5718_v55  ;;  %v5730_v15 = vmul.f32 %v4296_v43, %v5541_v59  ;;  %6491 = vst [vmem:[#allocation19_spill] sm:$0xff] %v5733_v31  ;;  %v5743_v62 = vmul.f32 %v4302_v28, %v5561_v39 }
 0x3d2   : > { %v2570_v3 = vrot.slane %v2569_v44, 2  ;;  %v2757_v34 = vmul.f32 0.03125, %v2756_v21  ;;  %6488 = vst [vmem:[#allocation16_spill] sm:$0xff] %v5714_v1  ;;  %v5747_v59 = vadd.f32 %v5324_v33, %v5488_v30  ;;  %v5750_v58 = vmul.f32 %v4304_v11, %v5567_v4 }
 0x3d3   : > { %v2879_v29 = vadd.f32 %v2878_v63, %v2877_v47  ;;  %6490 = vst [vmem:[#allocation18_spill] sm:$0xff] %v5730_v15  ;;  %6493 = vst [vmem:[#allocation21_spill] sm:$0xff] %v5743_v62  ;;  %v3312_v47 = vsub.f32 0.0, %v5718_v55  ;;  %v5759_v39 = vadd.f32 %v5326_v50, %v5498_v22 }
 0x3d4   : > { %v2571_v51 = vadd.f32 %v2570_v3, %v2569_v44  ;;  %v5705_v7 = vsub.f32 %v5594_v56, %v2757_v34  ;;  %v5708_v9 = vsub.f32 %v5598_v26, %v2757_v34  ;;  %v5711_v52 = vsub.f32 %v5592_v10, %v2757_v34  ;;  %v4306_v56 = vpop.eup %4305  ;;  %6494 = vst [vmem:[#allocation22_spill] sm:$0xff] %v5747_v59 }
 0x3d5   : > { %v5721_v40 = vsub.f32 %v5596_v18, %v2757_v34  ;;  %v2880_v23 = vrot.slane %v2879_v29, 4  ;;  %v4308_v57 = vpop.eup %4307  ;;  %v5736_v18 = vmul.f32 %v4300_v37, %v5555_v17  ;;  %6495 = vst [vmem:[#allocation23_spill] sm:$0xff] %v5750_v58  ;;  %v5755_v37 = vmul.f32 %v4306_v56, %v5578_v16  ;;  %6497 = vst [vmem:[#allocation25_spill] sm:$0xff] %v5759_v39  ;;  %v5771_v56 = vpop.permute.xlu1 %2588 }
 0x3d6   : > { %v2572_v14 = vrot.slane %v2571_v51, 1  ;;  %v2762_v26 = vmul.f32 %v5705_v7, %v5705_v7  ;;  %v2763_v10 = vmul.f32 %v5708_v9, %v5708_v9  ;;  %v2764_v32 = vmul.f32 %v5711_v52, %v5711_v52  ;;  %v4310_v21 = vpop.eup %4309 }
 0x3d7   : > { %6492 = vst [vmem:[#allocation20_spill] sm:$0xff] %v5736_v18  ;;  %v2881_v20 = vadd.f32 %v2880_v23, %v2879_v29  ;;  %v2765_v27 = vmul.f32 %v5721_v40, %v5721_v40  ;;  %v4312_v43 = vpop.eup %4311  ;;  %6496 = vst [vmem:[#allocation24_spill] sm:$0xff] %v5755_v37  ;;  %v5766_v4 = vmul.f32 %v4308_v57, %v5583_v36  ;;  %v3195_v11 = vadd.f32 1.0, %v4310_v21 }
 0x3d8   : > { %v2573_v38 = vadd.f32 %v2572_v14, %v2571_v51  ;;  %v2766_v6 = vsel %vm2031_vm1, %v2762_v26, 0.0  ;;  %v2767_v44 = vsel %vm2031_vm1, %v2763_v10, 0.0  ;;  %v2769_v34 = vsel %vm2031_vm1, %v2764_v32, 0.0  ;;  %v4314_v63 = vpop.eup %4313  ;;  %v5763_v51 = vpop.permute.xlu0 %2583 }
 0x3d9   : > { %v2768_v49 = vadd.f32 %v2767_v44, %v2766_v6  ;;  %v2882_v17 = vrot.slane %v2881_v20, 2  ;;  %6498 = vst [vmem:[#allocation26_spill] sm:$0xff] %v5766_v4  ;;  %v2771_v14 = vsel %vm2031_vm1, %v2765_v27, 0.0  ;;  %v4316_v16 = vpop.eup %4315  ;;  %v3193_v50 = vadd.f32 1.0, %v4312_v43 }
 0x3da   : > { %v2574_v3 = vmul.f32 0.03125, %v2573_v38  ;;  %v5761_v28 = vpop.f32.mrb[44].mxu1  ;;  %v3310_v10 = vsub.f32 0.0, %v5747_v59  ;;  %v3196_v6 = vadd.f32 1.0, %v4314_v63  ;;  %v3318_v44 = vmul.f32 1.442695, %v3312_v47 }
 0x3db   : > { %v2770_v33 = vadd.f32 %v2769_v34, %v2768_v49  ;;  %v2883_v29 = vadd.f32 %v2882_v17, %v2881_v20  ;;  %v5769_v26 = vpop.f32.mrb[45].mxu1  ;;  %v5778_v36 = vadd.f32 %v5330_v46, %v5490_v12  ;;  %v3194_v43 = vadd.f32 1.0, %v4316_v16  ;;  %v6502_v59 = vld [vmem:[#allocation11_spill] sm:$0xff] }
 0x3dc   : > { %v2575_v23 = vadd.f32 1e-05, %v2574_v3  ;;  %v5774_v38 = vpop.f32.mrb[46].mxu1  ;;  %v3002_v49 = vsel %vm2031_vm1, %v5769_v26, 0.0  ;;  %v3313_v3 = vsub.f32 0.0, %v5759_v39  ;;  %v3005_v63 = vsel %vm2031_vm1, %v5761_v28, 0.0 }
 0x3dd   : > { %v2772_v32 = vadd.f32 %v2771_v14, %v2770_v33  ;;  %v2884_v20 = vrot.slane %v2883_v29, 1  ;;  %6499 = vst [vmem:[#allocation27_spill] sm:$0xff] %v5778_v36  ;;  %v5780_v57 = vpop.f32.mrb[47].mxu1  ;;  %v3311_v33 = vsub.f32 0.0, %v5778_v36  ;;  %v5792_v14 = vpop.permute.xlu0 %2607 }
 0x3de   : > { %4317 = vrsqrt.f32 %v2575_v23  ;;  %v3003_v17 = vsel %vm2031_vm1, %v5780_v57, 0.0 }
 0x3df   : > { %v2773_v27 = vrot.slane %v2772_v32, 4  ;;  %v2885_v21 = vadd.f32 %v2884_v20, %v2883_v29  ;;  %4319 = vrcp.f32 %v3195_v11  ;;  %v3004_v47 = vadd.f32 %v3003_v17, %v3002_v49  ;;  %v5794_v11 = vpop.permute.xlu1 %2612 }
 0x3e0   : > { %4321 = vrcp.f32 %v3193_v50  ;;  %v3007_v29 = vsel %vm2031_vm1, %v5774_v38, 0.0 }
 0x3e1   : > { %v2774_v34 = vadd.f32 %v2773_v27, %v2772_v32  ;;  %v2886_v46 = vmul.f32 0.03125, %v2885_v21  ;;  %4323 = vrcp.f32 %v3196_v6  ;;  %v3006_v23 = vadd.f32 %v3005_v63, %v3004_v47  ;;  %v5819_v39 = vpop.permute.xlu0 %2593 }
 0x3e2   : > { %4325 = vrcp.f32 %v3194_v43  ;;  %v3314_v6 = vmul.f32 1.442695, %v3310_v10  ;;  %v3320_v47 = vmul.f32 1.442695, %v3313_v3 }
 0x3e3   : > { %v2775_v16 = vrot.slane %v2774_v34, 2  ;;  %v5797_v20 = vsub.f32 %v5662_v5, %v2886_v46  ;;  %v5800_v50 = vsub.f32 %v5674_v41, %v2886_v46  ;;  %v5803_v32 = vsub.f32 %v5658_v42, %v2886_v46 }
 0x3e4   : > { %v5806_v27 = vsub.f32 %v5664_v53, %v2886_v46  ;;  %v3008_v21 = vadd.f32 %v3007_v29, %v3006_v23  ;;  %4327 = vpow2.f32 %v3318_v44  ;;  %v3316_v42 = vmul.f32 1.442695, %v3311_v33  ;;  %v5821_v44 = vpop.permute.xlu1 %2598 }
 0x3e5   : > { %6500 = vst [vmem:[#allocation28_spill] sm:$0xff] %v5803_v32  ;;  %v2776_v49 = vadd.f32 %v2775_v16, %v2774_v34  ;;  %v2891_v17 = vmul.f32 %v5797_v20, %v5797_v20  ;;  %v2892_v5 = vmul.f32 %v5800_v50, %v5800_v50  ;;  %v2893_v41 = vmul.f32 %v5803_v32, %v5803_v32 }
 0x3e6   : > { %6501 = vst [vmem:[#allocation29_spill] sm:$0xff] %v5806_v27  ;;  %v3009_v63 = vrot.slane %v3008_v21, 4  ;;  %v2894_v53 = vmul.f32 %v5806_v27, %v5806_v27  ;;  %4329 = vpow2.f32 %v3314_v6 }
 0x3e7   : > { %v2777_v43 = vrot.slane %v2776_v49, 1  ;;  %v2895_v10 = vsel %vm2031_vm1, %v2891_v17, 0.0  ;;  %v2896_v34 = vsel %vm2031_vm1, %v2892_v5, 0.0  ;;  %v2898_v23 = vsel %vm2031_vm1, %v2893_v41, 0.0 }
 0x3e8   : > { %v4318_v46 = vpop.eup %4317  ;;  %v2897_v29 = vadd.f32 %v2896_v34, %v2895_v10  ;;  %v3010_v16 = vadd.f32 %v3009_v63, %v3008_v21  ;;  %4331 = vpow2.f32 %v3320_v47  ;;  %v6503_v10 = vld [vmem:[#allocation12_spill] sm:$0xff]  ;;  %v2900_v62 = vsel %vm2031_vm1, %v2894_v53, 0.0 }
 0x3e9   : > { %v2578_v3 = vmul.f32 %v4318_v46, %v5622_v0  ;;  %v2778_v33 = vadd.f32 %v2777_v43, %v2776_v49  ;;  %v2577_v36 = vmul.f32 %v4318_v46, %v5619_v19  ;;  %v2579_v55 = vmul.f32 %v4318_v46, %v6502_v59  ;;  %v4320_v17 = vpop.eup %4319 }
 0x3ea   : > { %v2899_v5 = vadd.f32 %v2898_v23, %v2897_v29  ;;  %v3011_v37 = vrot.slane %v3010_v16, 2  ;;  %v5826_v6 = vpop.f32.mrb[48].mxu1  ;;  %v2580_v41 = vmul.f32 %v4318_v46, %v6503_v10  ;;  %v4322_v21 = vpop.eup %4321 }
 0x3eb   : > { %v2602_v63 = vmul.f32 %v5771_v56, %v2578_v3  ;;  %v2779_v34 = vmul.f32 0.03125, %v2778_v33  ;;  %v5831_v0 = vpop.f32.mrb[49].mxu1  ;;  %v2601_v19 = vmul.f32 %v5763_v51, %v2577_v36  ;;  %v4324_v49 = vpop.eup %4323  ;;  %v3134_v47 = vsel %vm2031_vm1, %v5826_v6, 0.0 }
 0x3ec   : > { %v2901_v59 = vadd.f32 %v2900_v62, %v2899_v5  ;;  %v3012_v43 = vadd.f32 %v3011_v37, %v3010_v16  ;;  %v5836_v29 = vpop.f32.mrb[50].mxu1  ;;  %v2603_v46 = vmul.f32 %v5819_v39, %v2579_v55  ;;  %v3131_v53 = vsel %vm2031_vm1, %v5831_v0, 0.0  ;;  %v5845_v10 = vpop.eup %4325 }
 0x3ed   : > { %v2626_v23 = vadd.f32 %v5794_v11, %v2602_v63  ;;  %v2780_v3 = vadd.f32 1e-05, %v2779_v34  ;;  %v5842_v33 = vpop.f32.mrb[51].mxu1  ;;  %v2625_v36 = vadd.f32 %v5792_v14, %v2601_v19  ;;  %v2604_v5 = vmul.f32 %v5821_v44, %v2580_v41  ;;  %v5850_v55 = vpop.permute.xlu0 %2617 }
 0x3ee   : > { %v2902_v62 = vrot.slane %v2901_v59, 4  ;;  %v3013_v37 = vrot.slane %v3012_v43, 1  ;;  %v3132_v16 = vsel %vm2031_vm1, %v5842_v33, 0.0  ;;  %v5852_v63 = vpop.permute.xlu1 %2622  ;;  %v5856_v19 = vpop.eup %4327  ;;  %v2627_v18 = vadd.f32 %v5850_v55, %v2603_v46  ;;  %v6506_v46 = vld [vmem:[#allocation2_spill] sm:$0xff] }
 0x3ef   : > { %4333 = vrsqrt.f32 %v2780_v3  ;;  %v3133_v34 = vadd.f32 %v3132_v16, %v3131_v53  ;;  %v2653_v4 = vmul.f32 %v5672_v2, %v2625_v36  ;;  %v2654_v58 = vmul.f32 %v5688_v61, %v2626_v23 }
 0x3f0   : > { %v2903_v31 = vadd.f32 %v2902_v62, %v2901_v59  ;;  %v3014_v1 = vadd.f32 %v3013_v37, %v3012_v43  ;;  %v2628_v15 = vadd.f32 %v5852_v63, %v2604_v5  ;;  %4335 = vpow2.f32 %v3316_v42  ;;  %v5862_v3 = vpop.eup %4329  ;;  %v6504_v59 = vld [vmem:[#allocation14_spill] sm:$0xff]  ;;  %v6508_v42 = vld [vmem:[#allocation3_spill] sm:$0xff] }
 0x3f1   : > { %v3136_v41 = vsel %vm2031_vm1, %v5836_v29, 0.0  ;;  %v3135_v27 = vadd.f32 %v3134_v47, %v3133_v34  ;;  %v2657_v32 = vpack.c.bf16 %v2654_v58, %v2653_v4  ;;  %v2655_v61 = vmul.f32 %v5668_v54, %v2627_v18  ;;  %v6509_v18 = vld [vmem:[#allocation15_spill] sm:$0xff] }
 0x3f2   : > { %v2904_v53 = vrot.slane %v2903_v31, 2  ;;  %v3015_v2 = vmul.f32 0.03125, %v3014_v1  ;;  %v2656_v23 = vmul.f32 %v5682_v48, %v2628_v15  ;;  %v5867_v43 = vmul.f32 %v4320_v17, %v6504_v59  ;;  %v5877_v4 = vpop.eup %4331  ;;  %v5911_v34 = vld [vmem:[%s6405_s14 + $0x8] sm:$0xff]  }
 0x3f3   : > { %v5871_v36 = vadd.f32 %v6506_v46, %v5492_v13  ;;  %v5875_v62 = vadd.f32 %v6508_v42, %v5488_v30  ;;  %v3137_v58 = vadd.f32 %v3136_v41, %v3135_v27  ;;  %4160 = vmatprep.subr.bf16.mxu0 %v2657_v32  ;;  %v5889_v17 = vmul.f32 %v4322_v21, %v6509_v18 }
 0x3f4   : > { %6505 = vst [vmem:[#allocation11_spill] sm:$0xff] %v5867_v43  ;;  %v2905_v1 = vadd.f32 %v2904_v53, %v2903_v31  ;;  %v5880_v54 = vsub.f32 %v5769_v26, %v3015_v2  ;;  %v5883_v48 = vsub.f32 %v5780_v57, %v3015_v2  ;;  %v5886_v15 = vsub.f32 %v5761_v28, %v3015_v2 }
 0x3f5   : > { %6507 = vst [vmem:[#allocation12_spill] sm:$0xff] %v5871_v36  ;;  %4161 = vmatpush3.bf16.msra.mxu0 %v2657_v32  ;;  %v5892_v47 = vsub.f32 %v5774_v38, %v3015_v2  ;;  %v3138_v27 = vrot.slane %v3137_v58, 4  ;;  %v2658_v37 = vpack.c.bf16 %v2656_v23, %v2655_v61  ;;  %v5901_v57 = vmul.f32 %v4324_v49, %v5638_v24  ;;  %v6511_v38 = vld [vmem:[#allocation6_spill] sm:$0xff] }
 0x3f6   : > { %v2906_v16 = vrot.slane %v2905_v1, 1  ;;  %v3020_v31 = vmul.f32 %v5880_v54, %v5880_v54  ;;  %v3021_v26 = vmul.f32 %v5883_v48, %v5883_v48  ;;  %v3022_v28 = vmul.f32 %v5886_v15, %v5886_v15 }
 0x3f7   : > { %6510 = vst [vmem:[#allocation14_spill] sm:$0xff] %v5901_v57  ;;  %v3441_v32 = vsub.f32 0.0, %v5871_v36  ;;  %v5906_v21 = vadd.f32 %v6511_v38, %v5498_v22  ;;  %v3139_v5 = vadd.f32 %v3138_v27, %v3137_v58  ;;  %4162 = vmatprep.subr.bf16.mxu0 %v2658_v37  ;;  %v3023_v53 = vmul.f32 %v5892_v47, %v5892_v47 }
 0x3f8   : > { %v2907_v41 = vadd.f32 %v2906_v16, %v2905_v1  ;;  %v3024_v24 = vsel %vm2031_vm1, %v3020_v31, 0.0  ;;  %v3025_v49 = vsel %vm2031_vm1, %v3021_v26, 0.0  ;;  %v3027_v59 = vsel %vm2031_vm1, %v3022_v28, 0.0 }
 0x3f9   : > { %6512 = vst [vmem:[#allocation2_spill] sm:$0xff] %v5906_v21  ;;  %4163 = vmatpush3.bf16.msra.mxu0 %v2658_v37  ;;  %v4334_v2 = vpop.eup %4333  ;;  %v3026_v23 = vadd.f32 %v3025_v49, %v3024_v24  ;;  %v3140_v46 = vrot.slane %v3139_v5, 2  ;;  %v6513_v37 = vld [vmem:[#allocation4_spill] sm:$0xff] }
 0x3fa   : > { %v2783_v42 = vmul.f32 %v4334_v2, %v5708_v9  ;;  %v2908_v58 = vmul.f32 0.03125, %v2907_v41  ;;  %v5920_v18 = vpop.f32.mrb[52].mxu1  ;;  %v2782_v1 = vmul.f32 %v4334_v2, %v5705_v7  ;;  %v2784_v27 = vmul.f32 %v4334_v2, %v5711_v52  ;;  %v5924_v16 = vpop.eup %4335 }
 0x3fb   : > { %v5928_v31 = vadd.f32 %v6513_v37, %v5490_v12  ;;  %v3028_v26 = vadd.f32 %v3027_v59, %v3026_v23  ;;  %v3141_v38 = vadd.f32 %v3140_v46, %v3139_v5  ;;  %v5930_v24 = vpop.f32.mrb[53].mxu1  ;;  %v2785_v9 = vmul.f32 %v4334_v2, %v5721_v40  ;;  %v6515_v37 = vld [vmem:[#allocation10_spill] sm:$0xff] }
 0x3fc   : > { %4165 = vmatmul.mubr.msk.bf16.vlgmr.msra.gmra.mrb[64].mxu0 %vm774_vm0, %v5911_v34  ;;  %v2787_v28 = vmul.f32 %v2783_v42, %v5771_v56  ;;  %v2909_v7 = vadd.f32 1e-05, %v2908_v58  ;;  %v3029_v52 = vsel %vm2031_vm1, %v3023_v53, 0.0  ;;  %v5937_v41 = vpop.f32.mrb[54].mxu1  ;;  %v2786_v49 = vmul.f32 %v2782_v1, %v5763_v51 }
 0x3fd   : > { %6514 = vst [vmem:[#allocation3_spill] sm:$0xff] %v5928_v31  ;;  %4180 = vmatprep.mubr.msk.bf16.mxu0 %vm774_vm0, %v6515_v37  ;;  %v3030_v5 = vadd.f32 %v3029_v52, %v3028_v26  ;;  %v3142_v23 = vrot.slane %v3141_v38, 1  ;;  %v3260_v59 = vsel %vm2031_vm1, %v5930_v24, 0.0  ;;  %v5944_v46 = vpop.f32.mrb[55].mxu1  ;;  %v2788_v40 = vmul.f32 %v2784_v27, %v5819_v39 }
 0x3fe   : > { %v2791_v2 = vadd.f32 %v2787_v28, %v5794_v11  ;;  %4337 = vrsqrt.f32 %v2909_v7  ;;  %v3261_v53 = vsel %vm2031_vm1, %v5944_v46, 0.0  ;;  %v2790_v42 = vadd.f32 %v2786_v49, %v5792_v14 }
 0x3ff   : > { %v3031_v58 = vrot.slane %v3030_v5, 4  ;;  %v3143_v1 = vadd.f32 %v3142_v23, %v3141_v38  ;;  %v3262_v61 = vadd.f32 %v3261_v53, %v3260_v59  ;;  %v2789_v26 = vmul.f32 %v2785_v9, %v5821_v44 }
 0x400   : > { %v3263_v52 = vsel %vm2031_vm1, %v5920_v18, 0.0  ;;  %v2818_v36 = vmul.f32 %v5694_v8, %v2790_v42  ;;  %v2819_v27 = vmul.f32 %v5702_v45, %v2791_v2  ;;  %v2792_v28 = vadd.f32 %v2788_v40, %v5850_v55 }
 0x401   : > { %v3032_v7 = vadd.f32 %v3031_v58, %v3030_v5  ;;  %v3144_v12 = vmul.f32 0.03125, %v3143_v1  ;;  %v3264_v57 = vadd.f32 %v3263_v52, %v3262_v61  ;;  %v2793_v43 = vadd.f32 %v2789_v26, %v5852_v63 }
 0x402   : > { %v5960_v38 = vmul.f32 %v5845_v10, %v5649_v60  ;;  %v3265_v9 = vsel %vm2031_vm1, %v5937_v41, 0.0  ;;  %v2822_v49 = vpack.c.bf16 %v2819_v27, %v2818_v36  ;;  %v2820_v23 = vmul.f32 %v5691_v25, %v2792_v28 }
 0x403   : > { %v3033_v8 = vrot.slane %v3032_v7, 2  ;;  %v5966_v45 = vsub.f32 %v5831_v0, %v3144_v12  ;;  %v5969_v5 = vsub.f32 %v5842_v33, %v3144_v12  ;;  %v5972_v61 = vsub.f32 %v5826_v6, %v3144_v12 }
 0x404   : > { %v5974_v59 = vmul.f32 1.442695, %v3441_v32  ;;  %v5977_v60 = vsub.f32 %v5836_v29, %v3144_v12  ;;  %v3266_v10 = vadd.f32 %v3265_v9, %v3264_v57  ;;  %4168 = vmatprep.subr.bf16.mxu1 %v2822_v49  ;;  %v2821_v36 = vmul.f32 %v5699_v35, %v2793_v43 }
 0x405   : > { %v3034_v25 = vadd.f32 %v3033_v8, %v3032_v7  ;;  %v3149_v0 = vmul.f32 %v5966_v45, %v5966_v45  ;;  %v3150_v33 = vmul.f32 %v5969_v5, %v5969_v5  ;;  %v3151_v6 = vmul.f32 %v5972_v61, %v5972_v61  ;;  %4169 = vmatpush3.bf16.msra.mxu1 %v2822_v49  ;;  %v6517_v7 = vld [vmem:[#allocation28_spill] sm:$0xff] }
 0x406   : > { %v3324_v32 = vadd.f32 1.0, %v5856_v19  ;;  %v3442_v12 = vsub.f32 0.0, %v5906_v21  ;;  %v3267_v29 = vrot.slane %v3266_v10, 4  ;;  %v2823_v57 = vpack.c.bf16 %v2821_v36, %v2820_v23 }
 0x407   : > { %v3035_v40 = vrot.slane %v3034_v25, 1  ;;  %v3152_v35 = vmul.f32 %v5977_v60, %v5977_v60  ;;  %v3153_v43 = vsel %vm2031_vm1, %v3149_v0, 0.0  ;;  %v3154_v2 = vsel %vm2031_vm1, %v3150_v33, 0.0  ;;  %v6518_v0 = vld [vmem:[#allocation29_spill] sm:$0xff] }
 0x408   : > { %v4338_v53 = vpop.eup %4337  ;;  %v6516_v42 = vsub.f32 0.0, %v5875_v62  ;;  %v3155_v1 = vadd.f32 %v3154_v2, %v3153_v43  ;;  %v3156_v19 = vsel %vm2031_vm1, %v3151_v6, 0.0  ;;  %v3268_v26 = vadd.f32 %v3267_v29, %v3266_v10  ;;  %4170 = vmatprep.subr.bf16.mxu1 %v2823_v57 }
 0x409   : > { %v2912_v52 = vmul.f32 %v4338_v53, %v5800_v50  ;;  %v3036_v27 = vadd.f32 %v3035_v40, %v3034_v25  ;;  %4171 = vmatpush3.bf16.msra.mxu1 %v2823_v57  ;;  %v2911_v28 = vmul.f32 %v4338_v53, %v5797_v20  ;;  %v2913_v9 = vmul.f32 %v4338_v53, %v6517_v7 }
 0x40a   : > { %v5994_v58 = vmul.f32 1.442695, %v6516_v42  ;;  %v3440_v49 = vsub.f32 0.0, %v5928_v31  ;;  %v3157_v23 = vadd.f32 %v3156_v19, %v3155_v1  ;;  %v3269_v8 = vrot.slane %v3268_v26, 2  ;;  %v6001_v36 = vpop.f32.mrb[56].mxu1 }
 0x40b   : > { %v2914_v33 = vmul.f32 %v4338_v53, %v6518_v0  ;;  %v2916_v6 = vmul.f32 %v2912_v52, %v5771_v56  ;;  %v3037_v10 = vmul.f32 0.03125, %v3036_v27  ;;  %v3158_v29 = vsel %vm2031_vm1, %v3152_v35, 0.0  ;;  %v6006_v50 = vpop.f32.mrb[57].mxu1 }
 0x40c   : > { %v2915_v25 = vmul.f32 %v2911_v28, %v5763_v51  ;;  %v3159_v20 = vadd.f32 %v3158_v29, %v3157_v23  ;;  %v3270_v57 = vadd.f32 %v3269_v8, %v3268_v26  ;;  %v3392_v40 = vsel %vm2031_vm1, %v6001_v36, 0.0  ;;  %4173 = vmatmul.mubr.msk.bf16.vlgmr.msra.gmra.mrb[64].mxu1 %vm774_vm0, %v5911_v34  ;;  %v6013_v43 = vpop.f32.mrb[58].mxu1  ;;  %v6520_v8 = vld [vmem:[#allocation20_spill] sm:$0xff] }
 0x40d   : > { %v2917_v2 = vmul.f32 %v2913_v9, %v5819_v39  ;;  %v2920_v53 = vadd.f32 %v2916_v6, %v5794_v11  ;;  %v3038_v42 = vadd.f32 1e-05, %v3037_v10  ;;  %v3389_v35 = vsel %vm2031_vm1, %v6006_v50, 0.0  ;;  %v6019_v1 = vpop.f32.mrb[59].mxu1  ;;  %4188 = vmatprep.mubr.msk.bf16.mxu1 %vm774_vm0, %v6515_v37  ;;  %v6519_v9 = vld [vmem:[#allocation18_spill] sm:$0xff] }
 0x40e   : > { %v2919_v19 = vadd.f32 %v2915_v25, %v5792_v14  ;;  %v3160_v26 = vrot.slane %v3159_v20, 4  ;;  %v3271_v52 = vrot.slane %v3270_v57, 1  ;;  %v3390_v27 = vsel %vm2031_vm1, %v6019_v1, 0.0 }
 0x40f   : > { %v2918_v28 = vmul.f32 %v2914_v33, %v5821_v44  ;;  %4339 = vrsqrt.f32 %v3038_v42  ;;  %v3391_v7 = vadd.f32 %v3390_v27, %v3389_v35  ;;  %v2948_v0 = vmul.f32 %v6520_v8, %v2920_v53  ;;  %v6521_v35 = vld [vmem:[#allocation16_spill] sm:$0xff] }
 0x410   : > { %v2947_v23 = vmul.f32 %v6519_v9, %v2919_v19  ;;  %v3161_v6 = vadd.f32 %v3160_v26, %v3159_v20  ;;  %v3272_v10 = vadd.f32 %v3271_v52, %v3270_v57  ;;  %v2921_v29 = vadd.f32 %v2917_v2, %v5850_v55  ;;  %v6522_v19 = vld [vmem:[#allocation19_spill] sm:$0xff] }
 0x411   : > { %v2922_v25 = vadd.f32 %v2918_v28, %v5852_v63  ;;  %4341 = vpow2.f32 %v5974_v59  ;;  %v3394_v37 = vsel %vm2031_vm1, %v6013_v43, 0.0  ;;  %v3393_v21 = vadd.f32 %v3392_v40, %v3391_v7 }
 0x412   : > { %v2951_v31 = vpack.c.bf16 %v2948_v0, %v2947_v23  ;;  %v3162_v33 = vrot.slane %v3161_v6, 2  ;;  %v3273_v42 = vmul.f32 0.03125, %v3272_v10  ;;  %v2949_v27 = vmul.f32 %v6521_v35, %v2921_v29 }
 0x413   : > { %v2950_v9 = vmul.f32 %v6522_v19, %v2922_v25  ;;  %4343 = vrcp.f32 %v3324_v32  ;;  %v3322_v20 = vadd.f32 1.0, %v5862_v3  ;;  %v6037_v57 = vmul.f32 1.442695, %v3442_v12 }
 0x414   : > { %v3395_v2 = vadd.f32 %v3394_v37, %v3393_v21  ;;  %4176 = vmatprep.subr.bf16.mxu0 %v2951_v31  ;;  %v3163_v53 = vadd.f32 %v3162_v33, %v3161_v6  ;;  %v6040_v59 = vsub.f32 %v5930_v24, %v3273_v42  ;;  %v6043_v40 = vsub.f32 %v5944_v46, %v3273_v42 }
 0x415   : > { %v6046_v26 = vsub.f32 %v5920_v18, %v3273_v42  ;;  %4177 = vmatpush3.bf16.msra.mxu0 %v2951_v31  ;;  %v3323_v52 = vadd.f32 1.0, %v5924_v16  ;;  %v6050_v32 = vsub.f32 %v5937_v41, %v3273_v42  ;;  %v2952_v12 = vpack.c.bf16 %v2950_v9, %v2949_v27 }
 0x416   : > { %v3396_v3 = vrot.slane %v3395_v2, 4  ;;  %v3164_v21 = vrot.slane %v3163_v53, 1  ;;  %v3278_v28 = vmul.f32 %v6040_v59, %v6040_v59  ;;  %v3279_v24 = vmul.f32 %v6043_v40, %v6043_v40 }
 0x417   : > { %v3280_v46 = vmul.f32 %v6046_v26, %v6046_v26  ;;  %4345 = vrcp.f32 %v3322_v20  ;;  %v6059_v18 = vadd.f32 1.0, %v5877_v4  ;;  %v3445_v16 = vmul.f32 1.442695, %v3440_v49  ;;  %4178 = vmatprep.subr.bf16.mxu0 %v2952_v12 }
 0x418   : > { %v3397_v31 = vadd.f32 %v3396_v3, %v3395_v2  ;;  %v3165_v41 = vadd.f32 %v3164_v21, %v3163_v53  ;;  %v3281_v7 = vmul.f32 %v6050_v32, %v6050_v32  ;;  %v3282_v23 = vsel %vm2031_vm1, %v3278_v28, 0.0 }
 0x419   : > { %v3283_v8 = vsel %vm2031_vm1, %v3279_v24, 0.0  ;;  %4179 = vmatpush3.bf16.msra.mxu0 %v2952_v12  ;;  %v4340_v0 = vpop.eup %4339  ;;  %4347 = vrcp.f32 %v3323_v52  ;;  %v3285_v10 = vsel %vm2031_vm1, %v3280_v46, 0.0 }
 0x41a   : > { %v3284_v6 = vadd.f32 %v3283_v8, %v3282_v23  ;;  %v3398_v29 = vrot.slane %v3397_v31, 2  ;;  %v3041_v4 = vmul.f32 %v4340_v0, %v5883_v48  ;;  %v3166_v49 = vmul.f32 0.03125, %v3165_v41  ;;  %v6067_v25 = vpop.f32.mrb[60].mxu1 }
 0x41b   : > { %v3040_v37 = vmul.f32 %v4340_v0, %v5880_v54  ;;  %v3042_v33 = vmul.f32 %v4340_v0, %v5886_v15  ;;  %v4342_v42 = vpop.eup %4341  ;;  %4349 = vpow2.f32 %v5994_v58  ;;  %v6072_v19 = vpop.f32.mrb[61].mxu1  ;;  %v3043_v9 = vmul.f32 %v4340_v0, %v5892_v47  ;;  %v6085_v58 = vld [vmem:[%s6405_s14] sm:$0xff]   ;;  %v6523_v0 = vld [vmem:[#allocation23_spill] sm:$0xff] }
 0x41c   : > { %v3286_v35 = vadd.f32 %v3285_v10, %v3284_v6  ;;  %v3399_v27 = vadd.f32 %v3398_v29, %v3397_v31  ;;  %4181 = vmatmul.mubr.msk.bf16.vlgmr.msra.gmra.mrb[68].mxu0 %vm774_vm0, %v5911_v34  ;;  %v3045_v48 = vmul.f32 %v3041_v4, %v5771_v56  ;;  %v3167_v20 = vadd.f32 1e-05, %v3166_v49  ;;  %v6079_v54 = vpop.f32.mrb[62].mxu1  ;;  %v6524_v10 = vld [vmem:[#allocation26_spill] sm:$0xff] }
 0x41d   : > { %v3287_v2 = vsel %vm2031_vm1, %v3281_v7, 0.0  ;;  %v3044_v15 = vmul.f32 %v3040_v37, %v5763_v51  ;;  %4196 = vmatprep.mubr.msk.bf16.mxu0 %vm774_vm0, %v6085_v58  ;;  %v6089_v53 = vpop.eup %4343  ;;  %v3518_v3 = vsel %vm2031_vm1, %v6072_v19, 0.0  ;;  %v6093_v12 = vpop.f32.mrb[63].mxu1  ;;  %v3046_v21 = vmul.f32 %v3042_v33, %v5819_v39 }
 0x41e   : > { %v3288_v47 = vadd.f32 %v3287_v2, %v3286_v35  ;;  %v3400_v52 = vrot.slane %v3399_v27, 1  ;;  %v3049_v28 = vadd.f32 %v3045_v48, %v5794_v11  ;;  %4351 = vrsqrt.f32 %v3167_v20  ;;  %v6525_v20 = vld [vmem:[#allocation21_spill] sm:$0xff] }
 0x41f   : > { %v3519_v24 = vsel %vm2031_vm1, %v6093_v12, 0.0  ;;  %v3048_v46 = vadd.f32 %v3044_v15, %v5792_v14  ;;  %v3047_v23 = vmul.f32 %v3043_v9, %v5821_v44  ;;  %v3521_v8 = vsel %vm2031_vm1, %v6067_v25, 0.0 }
 0x420   : > { %v3289_v31 = vrot.slane %v3288_v47, 4  ;;  %v3401_v41 = vadd.f32 %v3400_v52, %v3399_v27  ;;  %v3520_v7 = vadd.f32 %v3519_v24, %v3518_v3  ;;  %v3077_v29 = vmul.f32 %v6524_v10, %v3049_v28 }
 0x421   : > { %v3076_v6 = vmul.f32 %v6523_v0, %v3048_v46  ;;  %v3050_v4 = vadd.f32 %v3046_v21, %v5850_v55  ;;  %v6106_v49 = vpop.eup %4345  ;;  %v3051_v48 = vadd.f32 %v3047_v23, %v5852_v63  ;;  %4353 = vpow2.f32 %v3445_v16  ;;  %v6526_v16 = vld [vmem:[#allocation5_spill] sm:$0xff] }
 0x422   : > { %v3290_v37 = vadd.f32 %v3289_v31, %v3288_v47  ;;  %v3402_v33 = vmul.f32 0.03125, %v3401_v41  ;;  %v3522_v35 = vadd.f32 %v3521_v8, %v3520_v7  ;;  %v3523_v27 = vsel %vm2031_vm1, %v6079_v54, 0.0  ;;  %v6527_v31 = vld [vmem:[#allocation24_spill] sm:$0xff] }
 0x423   : > { %v3080_v9 = vpack.c.bf16 %v3077_v29, %v3076_v6  ;;  %v3078_v2 = vmul.f32 %v6525_v20, %v3050_v4  ;;  %v6112_v15 = vpop.eup %4347  ;;  %v6125_v28 = vadd.f32 %v6526_v16, %v5492_v13  ;;  %v3079_v41 = vmul.f32 %v6527_v31, %v3051_v48  ;;  %v6528_v6 = vld [vmem:[#allocation7_spill] sm:$0xff] }
 0x424   : > { %v3291_v52 = vrot.slane %v3290_v37, 2  ;;  %v6115_v3 = vsub.f32 %v6006_v50, %v3402_v33  ;;  %v6118_v21 = vsub.f32 %v6019_v1, %v3402_v33  ;;  %v6121_v47 = vsub.f32 %v6001_v36, %v3402_v33 }
 0x425   : > { %v6128_v24 = vsub.f32 %v6013_v43, %v3402_v33  ;;  %v3524_v46 = vadd.f32 %v3523_v27, %v3522_v35  ;;  %4184 = vmatprep.subr.bf16.mxu1 %v3080_v9  ;;  %v6131_v7 = vpop.eup %4349  ;;  %v3453_v23 = vadd.f32 1.0, %v4342_v42  ;;  %v3081_v0 = vpack.c.bf16 %v3079_v41, %v3078_v2 }
 0x426   : > { %v3292_v50 = vadd.f32 %v3291_v52, %v3290_v37  ;;  %v3407_v1 = vmul.f32 %v6115_v3, %v6115_v3  ;;  %v3408_v36 = vmul.f32 %v6118_v21, %v6118_v21  ;;  %v3409_v13 = vmul.f32 %v6121_v47, %v6121_v47  ;;  %4185 = vmatpush3.bf16.msra.mxu1 %v3080_v9 }
 0x427   : > { %v3410_v43 = vmul.f32 %v6128_v24, %v6128_v24  ;;  %v3525_v8 = vrot.slane %v3524_v46, 4  ;;  %v6143_v10 = vadd.f32 %v6528_v6, %v5488_v30  ;;  %v3570_v35 = vsub.f32 0.0, %v6125_v28  ;;  %4186 = vmatprep.subr.bf16.mxu1 %v3081_v0 }
 0x428   : > { %v3293_v29 = vrot.slane %v3292_v50, 1  ;;  %v3411_v4 = vsel %vm2031_vm1, %v3407_v1, 0.0  ;;  %v3412_v37 = vsel %vm2031_vm1, %v3408_v36, 0.0  ;;  %v4352_v33 = vpop.eup %4351  ;;  %v3414_v42 = vsel %vm2031_vm1, %v3409_v13, 0.0 }
 0x429   : > { %v3413_v48 = vadd.f32 %v3412_v37, %v3411_v4  ;;  %v3526_v27 = vadd.f32 %v3525_v8, %v3524_v46  ;;  %v3170_v9 = vmul.f32 %v4352_v33, %v5969_v5  ;;  %v3169_v30 = vmul.f32 %v4352_v33, %v5966_v45 }
 0x42a   : > { %v3294_v20 = vadd.f32 %v3293_v29, %v3292_v50  ;;  %4187 = vmatpush3.bf16.msra.mxu1 %v3081_v0  ;;  %v3171_v2 = vmul.f32 %v4352_v33, %v5972_v61  ;;  %v3416_v16 = vsel %vm2031_vm1, %v3410_v43, 0.0  ;;  %v3172_v41 = vmul.f32 %v4352_v33, %v5977_v60  ;;  %v6529_v50 = vld [vmem:[#allocation8_spill] sm:$0xff] }
 0x42b   : > { %v3415_v52 = vadd.f32 %v3414_v42, %v3413_v48  ;;  %v3527_v31 = vrot.slane %v3526_v27, 2  ;;  %v3174_v1 = vmul.f32 %v3170_v9, %v5771_v56  ;;  %v3173_v46 = vmul.f32 %v3169_v30, %v5763_v51  ;;  %v4354_v5 = vpop.eup %4353 }
 0x42c   : > { %v3295_v36 = vmul.f32 0.03125, %v3294_v20  ;;  %v3175_v13 = vmul.f32 %v3171_v2, %v5819_v39  ;;  %v6159_v8 = vadd.f32 %v6529_v50, %v5498_v22  ;;  %v3176_v43 = vmul.f32 %v3172_v41, %v5821_v44  ;;  %v6531_v2 = vld [vmem:[#allocation14_spill] sm:$0xff]  ;;  %v6533_v41 = vld [vmem:[#allocation13_spill] sm:$0xff] }
 0x42d   : > { %v3417_v45 = vadd.f32 %v3416_v16, %v3415_v52  ;;  %v3528_v61 = vadd.f32 %v3527_v31, %v3526_v27  ;;  %4189 = vmatmul.mubr.msk.bf16.vlgmr.msra.gmra.mrb[68].mxu1 %vm774_vm0, %v5911_v34  ;;  %v3178_v60 = vadd.f32 %v3174_v1, %v5794_v11  ;;  %v3177_v6 = vadd.f32 %v3173_v46, %v5792_v14  ;;  %v6530_v27 = vld [vmem:[#allocation11_spill] sm:$0xff]  ;;  %v6532_v16 = vld [vmem:[#allocation17_spill] sm:$0xff] }
 0x42e   : > { %v3296_v0 = vadd.f32 1e-05, %v3295_v36  ;;  %v3179_v29 = vadd.f32 %v3175_v13, %v5850_v55  ;;  %4204 = vmatprep.mubr.msk.bf16.mxu1 %vm774_vm0, %v6085_v58  ;;  %v3568_v22 = vsub.f32 0.0, %v6143_v10  ;;  %v3180_v33 = vadd.f32 %v3176_v43, %v5852_v63  ;;  %v6534_v1 = vld [vmem:[#allocation9_spill] sm:$0xff] }
 0x42f   : > { %v3418_v4 = vrot.slane %v3417_v45, 4  ;;  %v3529_v37 = vrot.slane %v3528_v61, 1  ;;  %v3205_v48 = vmul.f32 %v5889_v17, %v3177_v6  ;;  %v3206_v42 = vmul.f32 %v5960_v38, %v3178_v60  ;;  %v6535_v38 = vld [vmem:[#allocation22_spill] sm:$0xff] }
 0x430   : > { %4355 = vrsqrt.f32 %v3296_v0  ;;  %v3207_v9 = vmul.f32 %v6530_v27, %v3179_v29  ;;  %v3208_v52 = vmul.f32 %v6531_v2, %v3180_v33  ;;  %v6178_v31 = vmul.f32 %v6089_v53, %v6532_v16 }
 0x431   : > { %4357 = vpow2.f32 %v6037_v57  ;;  %v3419_v20 = vadd.f32 %v3418_v4, %v3417_v45  ;;  %v3530_v30 = vadd.f32 %v3529_v37, %v3528_v61  ;;  %v6183_v36 = vadd.f32 %v6534_v1, %v6533_v41 }
 0x432   : > { %4359 = vrcp.f32 %v6059_v18  ;;  %v3209_v17 = vpack.c.bf16 %v3206_v42, %v3205_v48  ;;  %v6187_v46 = vmul.f32 %v6106_v49, %v6535_v38  ;;  %v3210_v50 = vpack.c.bf16 %v3208_v52, %v3207_v9  ;;  %v6536_v49 = vld [vmem:[#allocation27_spill] sm:$0xff] }
 0x433   : > { %v3420_v57 = vrot.slane %v3419_v20, 2  ;;  %v3531_v13 = vmul.f32 0.03125, %v3530_v30  ;;  %4361 = vrcp.f32 %v3453_v23  ;;  %v3576_v45 = vmul.f32 1.442695, %v3570_v35 }
 0x434   : > { %v3572_v61 = vmul.f32 1.442695, %v3568_v22  ;;  %v3571_v53 = vsub.f32 0.0, %v6159_v8  ;;  %4192 = vmatprep.subr.bf16.mxu0 %v3209_v17  ;;  %v3331_v6 = vmul.f32 %v6112_v15, %v6536_v49  ;;  %v3451_v23 = vadd.f32 1.0, %v6131_v7 }
 0x435   : > { %v3421_v43 = vadd.f32 %v3420_v57, %v3419_v20  ;;  %v6191_v18 = vsub.f32 %v6072_v19, %v3531_v13  ;;  %v6194_v60 = vsub.f32 %v6093_v12, %v3531_v13  ;;  %v6197_v0 = vsub.f32 %v6067_v25, %v3531_v13  ;;  %4193 = vmatpush3.bf16.msra.mxu0 %v3209_v17 }
 0x436   : > { %v3569_v35 = vsub.f32 0.0, %v6183_v36  ;;  %v6204_v29 = vsub.f32 %v6079_v54, %v3531_v13  ;;  %4194 = vmatprep.subr.bf16.mxu0 %v3210_v50  ;;  %v3452_v4 = vadd.f32 1.0, %v4354_v5  ;;  %4363 = vpow2.f32 %v3576_v45 }
 0x437   : > { %v3422_v19 = vrot.slane %v3421_v43, 1  ;;  %v3536_v12 = vmul.f32 %v6191_v18, %v6191_v18  ;;  %v3537_v25 = vmul.f32 %v6194_v60, %v6194_v60  ;;  %v3538_v22 = vmul.f32 %v6197_v0, %v6197_v0 }
 0x438   : > { %v3578_v15 = vmul.f32 1.442695, %v3571_v53  ;;  %v3539_v7 = vmul.f32 %v6204_v29, %v6204_v29  ;;  %4365 = vpow2.f32 %v3572_v61  ;;  %v3574_v42 = vmul.f32 1.442695, %v3569_v35 }
 0x439   : > { %v3423_v54 = vadd.f32 %v3422_v19, %v3421_v43  ;;  %v3540_v37 = vsel %vm2031_vm1, %v3536_v12, 0.0  ;;  %v3541_v33 = vsel %vm2031_vm1, %v3537_v25, 0.0  ;;  %4195 = vmatpush3.bf16.msra.mxu0 %v3210_v50  ;;  %4367 = vrcp.f32 %v3451_v23  ;;  %v6537_v43 = vld [vmem:[#allocation25_spill] sm:$0xff] }
 0x43a   : > { %v4356_v48 = vpop.eup %4355  ;;  %v3542_v27 = vadd.f32 %v3541_v33, %v3540_v37  ;;  %v3543_v9 = vsel %vm2031_vm1, %v3538_v22, 0.0  ;;  %4369 = vrcp.f32 %v3452_v4  ;;  %v3545_v1 = vsel %vm2031_vm1, %v3539_v7, 0.0 }
 0x43b   : > { %v4358_v20 = vpop.eup %4357  ;;  %v3299_v5 = vmul.f32 %v4356_v48, %v6043_v40  ;;  %v3424_v30 = vmul.f32 0.03125, %v3423_v54  ;;  %v3298_v2 = vmul.f32 %v4356_v48, %v6040_v59  ;;  %v3300_v52 = vmul.f32 %v4356_v48, %v6046_v26 }
 0x43c   : > { %v4360_v16 = vpop.eup %4359  ;;  %v3544_v41 = vadd.f32 %v3543_v9, %v3542_v27  ;;  %4197 = vmatmul.mubr.msk.bf16.vlgmr.msra.gmra.mrb[72].mxu0 %vm774_vm0, %v5911_v34  ;;  %v3301_v17 = vmul.f32 %v4356_v48, %v6050_v32  ;;  %v3454_v26 = vadd.f32 1.0, %v4358_v20  ;;  %4371 = vpow2.f32 %v3578_v15 }
 0x43d   : > { %v3303_v38 = vmul.f32 %v3299_v5, %v5771_v56  ;;  %v3425_v57 = vadd.f32 1e-05, %v3424_v30  ;;  %v3302_v40 = vmul.f32 %v3298_v2, %v5763_v51  ;;  %v3304_v13 = vmul.f32 %v3300_v52, %v5819_v39  ;;  %4212 = vmatprep.mubr.msk.bf16.mxu0 %vm774_vm0, %v6085_v58  ;;  %v4362_v59 = vpop.eup %4361  ;;  %v6538_v5 = vld [vmem:[#allocation12_spill] sm:$0xff] }
 0x43e   : > { %v3546_v50 = vadd.f32 %v3545_v1, %v3544_v41  ;;  %v3305_v45 = vmul.f32 %v3301_v17, %v5821_v44  ;;  %v3333_v49 = vmul.f32 %v4360_v16, %v6537_v43 }
 0x43f   : > { %v3307_v61 = vadd.f32 %v3303_v38, %v5794_v11  ;;  %4373 = vrsqrt.f32 %v3425_v57  ;;  %v3306_v32 = vadd.f32 %v3302_v40, %v5792_v14  ;;  %v3308_v53 = vadd.f32 %v3304_v13, %v5850_v55 }
 0x440   : > { %4375 = vpow2.f32 %v3574_v42  ;;  %v3547_v23 = vrot.slane %v3546_v50, 4  ;;  %v3309_v35 = vadd.f32 %v3305_v45, %v5852_v63  ;;  %v4364_v22 = vpop.eup %4363 }
 0x441   : > { %v3334_v19 = vmul.f32 %v6187_v46, %v3306_v32  ;;  %v3335_v12 = vmul.f32 %v3331_v6, %v3307_v61  ;;  %v3336_v25 = vmul.f32 %v6178_v31, %v3308_v53  ;;  %4377 = vrcp.f32 %v3454_v26  ;;  %v6540_v53 = vld [vmem:[#allocation2_spill] sm:$0xff] }
 0x442   : > { %v3548_v4 = vadd.f32 %v3547_v23, %v3546_v50  ;;  %v3337_v15 = vmul.f32 %v3333_v49, %v3309_v35  ;;  %v4366_v7 = vpop.eup %4365  ;;  %v3582_v9 = vadd.f32 1.0, %v4364_v22  ;;  %v3461_v31 = vmul.f32 %v4362_v59, %v6538_v5  ;;  %v6539_v50 = vld [vmem:[#allocation3_spill] sm:$0xff] }
 0x443   : > { %v3338_v54 = vpack.c.bf16 %v3335_v12, %v3334_v19  ;;  %v4368_v37 = vpop.eup %4367  ;;  %v3580_v30 = vadd.f32 1.0, %v4366_v7 }
 0x444   : > { %v3549_v33 = vrot.slane %v3548_v4, 2  ;;  %v3339_v48 = vpack.c.bf16 %v3337_v15, %v3336_v25  ;;  %v4370_v27 = vpop.eup %4369  ;;  %v3459_v17 = vmul.f32 %v4368_v37, %v5875_v62  ;;  %4379 = vrcp.f32 %v3582_v9 }
 0x445   : > { %4200 = vmatprep.subr.bf16.mxu1 %v3338_v54  ;;  %v3460_v45 = vmul.f32 %v4370_v27, %v6539_v50  ;;  %4381 = vrcp.f32 %v3580_v30 }
 0x446   : > { %v3550_v42 = vadd.f32 %v3549_v33, %v3548_v4  ;;  %4201 = vmatpush3.bf16.msra.mxu1 %v3338_v54  ;;  %v4372_v20 = vpop.eup %4371 }
 0x447   : > { %4202 = vmatprep.subr.bf16.mxu1 %v3339_v48  ;;  %v3583_v38 = vadd.f32 1.0, %v4372_v20 }
 0x448   : > { %v3551_v46 = vrot.slane %v3550_v42, 1 }
 0x449   : > { %v4374_v6 = vpop.eup %4373  ;;  %4383 = vrcp.f32 %v3583_v38 }
 0x44a   : > { %v4376_v2 = vpop.eup %4375  ;;  %v3428_v52 = vmul.f32 %v4374_v6, %v6118_v21  ;;  %v3552_v16 = vadd.f32 %v3551_v46, %v3550_v42  ;;  %4203 = vmatpush3.bf16.msra.mxu1 %v3339_v48  ;;  %v3427_v41 = vmul.f32 %v4374_v6, %v6115_v3  ;;  %v3429_v1 = vmul.f32 %v4374_v6, %v6121_v47 }
 0x44b   : > { %v3430_v57 = vmul.f32 %v4374_v6, %v6128_v24  ;;  %v4378_v40 = vpop.eup %4377  ;;  %v3581_v3 = vadd.f32 1.0, %v4376_v2 }
 0x44c   : > { %v3432_v13 = vmul.f32 %v3428_v52, %v5771_v56  ;;  %v3553_v59 = vmul.f32 0.03125, %v3552_v16  ;;  %v3431_v26 = vmul.f32 %v3427_v41, %v5763_v51  ;;  %v3433_v21 = vmul.f32 %v3429_v1, %v5819_v39 }
 0x44d   : > { %4205 = vmatmul.mubr.msk.bf16.vlgmr.msra.gmra.mrb[72].mxu1 %vm774_vm0, %v5911_v34  ;;  %v3434_v62 = vmul.f32 %v3430_v57, %v5821_v44  ;;  %v3462_v43 = vmul.f32 %v4378_v40, %v6540_v53 }
 0x44e   : > { %v3436_v47 = vadd.f32 %v3432_v13, %v5794_v11  ;;  %v3554_v24 = vadd.f32 1e-05, %v3553_v59  ;;  %v3435_v61 = vadd.f32 %v3431_v26, %v5792_v14  ;;  %v3437_v32 = vadd.f32 %v3433_v21, %v5850_v55  ;;  %4220 = vmatprep.mubr.msk.bf16.mxu1 %vm774_vm0, %v6085_v58  ;;  %v4380_v4 = vpop.eup %4379 }
 0x44f   : > { %v3438_v49 = vadd.f32 %v3434_v62, %v5852_v63  ;;  %v4382_v15 = vpop.eup %4381  ;;  %v3590_v6 = vmul.f32 %v4380_v4, %v6125_v28 }
 0x450   : > { %4385 = vrsqrt.f32 %v3554_v24  ;;  %v3463_v23 = vmul.f32 %v3459_v17, %v3435_v61  ;;  %v3464_v35 = vmul.f32 %v3460_v45, %v3436_v47  ;;  %v3465_v19 = vmul.f32 %v3461_v31, %v3437_v32 }
 0x451   : > { %4387 = vrcp.f32 %v3581_v3  ;;  %v3466_v12 = vmul.f32 %v3462_v43, %v3438_v49 }
 0x452   : > { %v3467_v25 = vpack.c.bf16 %v3464_v35, %v3463_v23 }
 0x453   : > { %v3468_v22 = vpack.c.bf16 %v3466_v12, %v3465_v19  ;;  %v4384_v7 = vpop.eup %4383 }
 0x454   : > { %4208 = vmatprep.subr.bf16.mxu0 %v3467_v25 }
 0x455   : > { %4209 = vmatpush3.bf16.msra.mxu0 %v3467_v25 }
 0x456   : > { %4210 = vmatprep.subr.bf16.mxu0 %v3468_v22 }
 0x459   : > { %4211 = vmatpush3.bf16.msra.mxu0 %v3468_v22 }
 0x45a   : > { %v4386_v58 = vpop.eup %4385 }
 0x45b   : > { %v4388_v54 = vpop.eup %4387  ;;  %v3557_v37 = vmul.f32 %v4386_v58, %v6194_v60  ;;  %v3556_v33 = vmul.f32 %v4386_v58, %v6191_v18  ;;  %v3558_v48 = vmul.f32 %v4386_v58, %v6197_v0  ;;  %v3559_v27 = vmul.f32 %v4386_v58, %v6204_v29 }
 0x45c   : > { %4213 = vmatmul.mubr.msk.bf16.vlgmr.msra.gmra.mrb[76].mxu0 %vm774_vm0, %v5911_v34  ;;  %v3588_v60 = vmul.f32 %v4382_v15, %v6143_v10  ;;  %v3591_v18 = vmul.f32 %v4384_v7, %v6159_v8  ;;  %v3589_v0 = vmul.f32 %v4388_v54, %v6183_v36 }
 0x45d   : > { %v3561_v42 = vmul.f32 %v3557_v37, %v5771_v56  ;;  %v3560_v9 = vmul.f32 %v3556_v33, %v5763_v51  ;;  %v3562_v20 = vmul.f32 %v3558_v48, %v5819_v39  ;;  %v3563_v46 = vmul.f32 %v3559_v27, %v5821_v44 }
 0x45f   : > { %v3565_v29 = vadd.f32 %v3561_v42, %v5794_v11  ;;  %v3564_v5 = vadd.f32 %v3560_v9, %v5792_v14  ;;  %v3566_v56 = vadd.f32 %v3562_v20, %v5850_v55  ;;  %v3567_v51 = vadd.f32 %v3563_v46, %v5852_v63  ;;  %v6277_v11 = vpop.permute.xlu0 %2661  ;;  %v6279_v14 = vpop.permute.xlu1 %2666 }
 0x461   : > { %v3592_v39 = vmul.f32 %v3588_v60, %v3564_v5  ;;  %v3593_v31 = vmul.f32 %v3589_v0, %v3565_v29  ;;  %v3594_v44 = vmul.f32 %v3590_v6, %v3566_v56  ;;  %v3595_v30 = vmul.f32 %v3591_v18, %v3567_v51 }
 0x463   : > { %v3596_v28 = vpack.c.bf16 %v3593_v31, %v3592_v39  ;;  %v3597_v2 = vpack.c.bf16 %v3595_v30, %v3594_v44  ;;  %v6281_v55 = vpop.permute.xlu0 %2671  ;;  %v6291_v8 = vpop.permute.xlu1 %2676 }
 0x465   : > { %4216 = vmatprep.subr.bf16.mxu1 %v3596_v28 }
 0x466   : > { %4217 = vmatpush3.bf16.msra.mxu1 %v3596_v28 }
 0x467   : > { %4218 = vmatprep.subr.bf16.mxu1 %v3597_v2 }
 0x46a   : > { %4219 = vmatpush3.bf16.msra.mxu1 %v3597_v2 }
 0x46d   : > { %4221 = vmatmul.mubr.msk.bf16.vlgmr.msra.gmra.mrb[76].mxu1 %vm774_vm0, %v5911_v34 }
 0x4cf   : > { %v4166_v63 = vpop.f32.mrb[64].mxu0 }
 0x4d0   : > { %v2738_v10 = vadd.f32 %v4166_v63, %v6281_v55  ;;  %v2729_v34 = vpop.f32.mrb[65].mxu0 }
 0x4d1   : > { %v2730_v36 = vadd.f32 %v2729_v34, %v6277_v11  ;;  %v4167_v52 = vpop.f32.mrb[66].mxu0 }
 0x4d2   : > { %3649 = vst.msk [vmem:[%s6288_s27 + $0x10] sm:$0xff] %vm2031_vm1, %v2738_v10  ;;  %v2741_v16 = vadd.f32 %v4167_v52, %v6291_v8  ;;  %v2732_v41 = vpop.f32.mrb[67].mxu0 }
 0x4d3   : > { %3647 = vst.msk [vmem:[%s6288_s27] sm:$0xff] %vm2031_vm1, %v2730_v36  ;;  %v2733_v1 = vadd.f32 %v2732_v41, %v6279_v14 }
 0x4d4   : > { %3650 = vst.msk [vmem:[%s6288_s27 + $0x18] sm:$0xff] %vm2031_vm1, %v2741_v16 }
 0x4d5   : > { %3648 = vst.msk [vmem:[%s6288_s27 + $0x8] sm:$0xff] %vm2031_vm1, %v2733_v1 }
 0x4df   : > { %v4174_v17 = vpop.f32.mrb[64].mxu1 }
 0x4e0   : > { %v2867_v38 = vadd.f32 %v4174_v17, %v6281_v55  ;;  %v2858_v57 = vpop.f32.mrb[65].mxu1 }
 0x4e1   : > { %v2859_v40 = vadd.f32 %v2858_v57, %v6277_v11  ;;  %v4175_v13 = vpop.f32.mrb[66].mxu1 }
 0x4e2   : > { %3653 = vst.msk [vmem:[%s6288_s27 + $0x30] sm:$0xff] %vm2031_vm1, %v2867_v38  ;;  %v2870_v59 = vadd.f32 %v4175_v13, %v6291_v8  ;;  %v2861_v26 = vpop.f32.mrb[67].mxu1 }
 0x4e3   : > { %3651 = vst.msk [vmem:[%s6288_s27 + $0x20] sm:$0xff] %vm2031_vm1, %v2859_v40  ;;  %v2862_v21 = vadd.f32 %v2861_v26, %v6279_v14 }
 0x4e4   : > { %3654 = vst.msk [vmem:[%s6288_s27 + $0x38] sm:$0xff] %vm2031_vm1, %v2870_v59 }
 0x4e5   : > { %3652 = vst.msk [vmem:[%s6288_s27 + $0x28] sm:$0xff] %vm2031_vm1, %v2862_v21 }
 0x4ef   : > { %v4182_v50 = vpop.f32.mrb[68].mxu0 }
 0x4f0   : > { %v2996_v45 = vadd.f32 %v4182_v50, %v6281_v55  ;;  %v2987_v3 = vpop.f32.mrb[69].mxu0 }
 0x4f1   : > { %v2988_v62 = vadd.f32 %v2987_v3, %v6277_v11  ;;  %v4183_v47 = vpop.f32.mrb[70].mxu0 }
 0x4f2   : > { %3657 = vst.msk [vmem:[%s6288_s27 + $0x50] sm:$0xff] %vm2031_vm1, %v2996_v45  ;;  %v2999_v24 = vadd.f32 %v4183_v47, %v6291_v8  ;;  %v2990_v61 = vpop.f32.mrb[71].mxu0 }
 0x4f3   : > { %3655 = vst.msk [vmem:[%s6288_s27 + $0x40] sm:$0xff] %vm2031_vm1, %v2988_v62  ;;  %v2991_v32 = vadd.f32 %v2990_v61, %v6279_v14 }
 0x4f4   : > { %3658 = vst.msk [vmem:[%s6288_s27 + $0x58] sm:$0xff] %vm2031_vm1, %v2999_v24 }
 0x4f5   : > { %3656 = vst.msk [vmem:[%s6288_s27 + $0x48] sm:$0xff] %vm2031_vm1, %v2991_v32 }
 0x500   : > { %v4190_v53 = vpop.f32.mrb[68].mxu1 }
 0x501   : > { %v3125_v43 = vadd.f32 %v4190_v53, %v6281_v55  ;;  %v3116_v49 = vpop.f32.mrb[69].mxu1 }
 0x502   : > { %v3117_v23 = vadd.f32 %v3116_v49, %v6277_v11  ;;  %v4191_v35 = vpop.f32.mrb[70].mxu1 }
 0x503   : > { %3661 = vst.msk [vmem:[%s6288_s27 + $0x70] sm:$0xff] %vm2031_vm1, %v3125_v43  ;;  %v3128_v19 = vadd.f32 %v4191_v35, %v6291_v8  ;;  %v3119_v12 = vpop.f32.mrb[71].mxu1 }
 0x504   : > { %3659 = vst.msk [vmem:[%s6288_s27 + $0x60] sm:$0xff] %vm2031_vm1, %v3117_v23  ;;  %v3120_v25 = vadd.f32 %v3119_v12, %v6279_v14 }
 0x505   : > { %3662 = vst.msk [vmem:[%s6288_s27 + $0x78] sm:$0xff] %vm2031_vm1, %v3128_v19 }
 0x506   : > { %3660 = vst.msk [vmem:[%s6288_s27 + $0x68] sm:$0xff] %vm2031_vm1, %v3120_v25 }
 0x50f   : > { %v4198_v22 = vpop.f32.mrb[72].mxu0 }
 0x510   : > { %v3254_v4 = vadd.f32 %v4198_v22, %v6281_v55  ;;  %v3245_v15 = vpop.f32.mrb[73].mxu0 }
 0x511   : > { %v3246_v7 = vadd.f32 %v3245_v15, %v6277_v11  ;;  %v4199_v58 = vpop.f32.mrb[74].mxu0 }
 0x512   : > { %3665 = vst.msk [vmem:[%s6288_s27 + $0x90] sm:$0xff] %vm2031_vm1, %v3254_v4  ;;  %v3257_v54 = vadd.f32 %v4199_v58, %v6291_v8  ;;  %v3248_v37 = vpop.f32.mrb[75].mxu0 }
 0x513   : > { %3663 = vst.msk [vmem:[%s6288_s27 + $0x80] sm:$0xff] %vm2031_vm1, %v3246_v7  ;;  %v3249_v33 = vadd.f32 %v3248_v37, %v6279_v14 }
 0x514   : > { %3666 = vst.msk [vmem:[%s6288_s27 + $0x98] sm:$0xff] %vm2031_vm1, %v3257_v54 }
 0x515   : > { %3664 = vst.msk [vmem:[%s6288_s27 + $0x88] sm:$0xff] %vm2031_vm1, %v3249_v33 }
 0x520   : > { %v4206_v48 = vpop.f32.mrb[72].mxu1 }
 0x521   : > { %v3383_v27 = vadd.f32 %v4206_v48, %v6281_v55  ;;  %v3374_v42 = vpop.f32.mrb[73].mxu1 }
 0x522   : > { %v3375_v9 = vadd.f32 %v3374_v42, %v6277_v11  ;;  %v4207_v20 = vpop.f32.mrb[74].mxu1 }
 0x523   : > { %3669 = vst.msk [vmem:[%s6288_s27 + $0xb0] sm:$0xff] %vm2031_vm1, %v3383_v27  ;;  %v3386_v46 = vadd.f32 %v4207_v20, %v6291_v8  ;;  %v3377_v6 = vpop.f32.mrb[75].mxu1 }
 0x524   : > { %3667 = vst.msk [vmem:[%s6288_s27 + $0xa0] sm:$0xff] %vm2031_vm1, %v3375_v9  ;;  %v3378_v60 = vadd.f32 %v3377_v6, %v6279_v14 }
 0x525   : > { %3670 = vst.msk [vmem:[%s6288_s27 + $0xb8] sm:$0xff] %vm2031_vm1, %v3386_v46 }
 0x526   : > { %3668 = vst.msk [vmem:[%s6288_s27 + $0xa8] sm:$0xff] %vm2031_vm1, %v3378_v60 }
 0x52f   : > { %v4214_v18 = vpop.f32.mrb[76].mxu0 }
 0x530   : > { %v3512_v0 = vadd.f32 %v4214_v18, %v6281_v55  ;;  %v3503_v29 = vpop.f32.mrb[77].mxu0 }
 0x531   : > { %v3504_v5 = vadd.f32 %v3503_v29, %v6277_v11  ;;  %v4215_v56 = vpop.f32.mrb[78].mxu0 }
 0x532   : > { %3673 = vst.msk [vmem:[%s6288_s27 + $0xd0] sm:$0xff] %vm2031_vm1, %v3512_v0  ;;  %v3515_v51 = vadd.f32 %v4215_v56, %v6291_v8  ;;  %v3506_v39 = vpop.f32.mrb[79].mxu0 }
 0x533   : > { %3671 = vst.msk [vmem:[%s6288_s27 + $0xc0] sm:$0xff] %vm2031_vm1, %v3504_v5  ;;  %v3507_v31 = vadd.f32 %v3506_v39, %v6279_v14 }
 0x534   : > { %3674 = vst.msk [vmem:[%s6288_s27 + $0xd8] sm:$0xff] %vm2031_vm1, %v3515_v51 }
 0x535   : > { %3672 = vst.msk [vmem:[%s6288_s27 + $0xc8] sm:$0xff] %vm2031_vm1, %v3507_v31 }
 0x540   : > { %v4222_v44 = vpop.f32.mrb[76].mxu1 }
 0x541   : > { %v3641_v30 = vadd.f32 %v4222_v44, %v6281_v55  ;;  %v3632_v28 = vpop.f32.mrb[77].mxu1 }
 0x542   : > { %v3633_v2 = vadd.f32 %v3632_v28, %v6277_v11  ;;  %v4223_v63 = vpop.f32.mrb[78].mxu1 }
 0x543   : > { %3677 = vst.msk [vmem:[%s6288_s27 + $0xf0] sm:$0xff] %vm2031_vm1, %v3641_v30  ;;  %v3644_v10 = vadd.f32 %v4223_v63, %v6291_v8  ;;  %v3635_v34 = vpop.f32.mrb[79].mxu1 }
 0x544   : > { %3675 = vst.msk [vmem:[%s6288_s27 + $0xe0] sm:$0xff] %vm2031_vm1, %v3633_v2  ;;  %v3636_v36 = vadd.f32 %v3635_v34, %v6279_v14 }
 0x545   : > { %3678 = vst.msk [vmem:[%s6288_s27 + $0xf8] sm:$0xff] %vm2031_vm1, %v3644_v10 }
 0x546   : > { %3676 = vst.msk [vmem:[%s6288_s27 + $0xe8] sm:$0xff] %vm2031_vm1, %v3636_v36 }
 0x547 PF: > { %s26_s21 = sadd.s32 1, %s4396_s21  }
 0x548   : > { %p23_p4 = scmp.ge.s32.totalorder %s26_s21, 4  }
 0x54a   :  { %25 = sbr.rel (!%p23_p4) target bundleno = 2 (0x2), region = 114 }

</bundles_post_ra>
